<compile_context>
chip_gen: v7x
topology: tpu7x:2x2x1
jax: 0.10.0
libtpu: 0.0.40
codegen_flags: <defaults>
</compile_context>

<pallas_src>
import math

import jax
import jax.numpy as jnp
from jax import lax
from jax.experimental import pallas as pl
from jax.experimental.pallas import tpu as pltpu

DIM = 256
HEADS = 8
HEAD_DIM = DIM // HEADS
FFN_DIM = 4 * DIM
LN_EPS = 1e-5
NEG_INF = -1e30


def initial_decoder_kernel(
    id_ref,                                    # scalar prefetch (SMEM): (1,) int32
    enc_ref, mask_ref, cs_ref,                 # per-batch-tile blocks
    modal_ref, agent_ref,                      # embedding tables (resident)
    wq_ref, bq_ref, wkv_ref, bkv_ref, wo_ref, bo_ref,
    ln1w_ref, ln1b_ref,
    wf1_ref, bf1_ref, wf2_ref, bf2_ref,
    ln2w_ref, ln2b_ref,
    wg1_ref, bg1_ref, wg2_ref, bg2_ref,
    ws1_ref, bs1_ref, ws2_ref, bs2_ref,
    qc_ref, aux_ref,                           # outputs
):
    f32, bf16 = jnp.float32, jnp.bfloat16
    aid = id_ref[0]

    enc = enc_ref[...]                         # (TB, N, D) in caller dtype
    TB, N, D = enc.shape
    M = modal_ref.shape[0]
    A = agent_ref.shape[0]
    F4 = bg2_ref.shape[-1]

    enc_bf = enc.astype(bf16)                  # single bf16 cast of the encoding

    # ---- query = encoding[:, id] + (modal_embedding + agent_embedding[id]) ----
    # VPU select + sublane reduce gathers (no MXU one-hot pushes).
    tok_sel = lax.broadcasted_iota(jnp.int32, (1, N, 1), 1) == aid
    enc_row = jnp.sum(jnp.where(tok_sel, enc.astype(f32), 0.0),
                      axis=1, keepdims=True)                               # (TB, 1, D)
    ag_sel = lax.broadcasted_iota(jnp.int32, (A, 1), 0) == aid
    agent_row = jnp.sum(jnp.where(ag_sel, agent_ref[...], 0.0),
                        axis=0, keepdims=True)                             # (1, D)
    query = enc_row + (modal_ref[...] + agent_row)[None]                   # (TB, M, D)

    # ---- fused, lane-dense in-projections ----
    q2 = query.reshape(TB * M, D).astype(bf16)
    qp = jnp.dot(q2, wq_ref[...], preferred_element_type=f32) + bq_ref[...]      # (TB*M, D)
    e2 = enc_bf.reshape(TB * N, D)
    kv = jnp.dot(e2, wkv_ref[...], preferred_element_type=f32) + bkv_ref[...]    # (TB*N, 2D)

    qp_bf = qp.astype(bf16)
    kv_bf = kv.astype(bf16)
    key_pad = mask_ref[...] != 0               # (TB, 1, N) -> broadcasts over queries

    scale = 1.0 / math.sqrt(HEAD_DIM)
    head_outs = []
    for h in range(HEADS):                     # heads split only for the tiny score/PV step
        lo, hi = h * HEAD_DIM, (h + 1) * HEAD_DIM
        qh = qp_bf[:, lo:hi].reshape(TB, M, HEAD_DIM)
        kh = kv_bf[:, lo:hi].reshape(TB, N, HEAD_DIM)
        vh = kv_bf[:, D + lo:D + hi].reshape(TB, N, HEAD_DIM)

        s = jnp.einsum("bmk,bnk->bmn", qh, kh,
                       preferred_element_type=f32) * scale                 # (TB, M, N)
        s = jnp.where(key_pad, NEG_INF, s)     # key-padding mask as additive -inf bias
        s = s - jnp.max(s, axis=-1, keepdims=True)
        e = jnp.exp(s)
        p = e * pl.reciprocal(jnp.sum(e, axis=-1, keepdims=True), approx=True)
        head_outs.append(jnp.einsum("bmn,bnk->bmk", p.astype(bf16), vh,
                                    preferred_element_type=f32))           # (TB, M, Dh)

    # ---- fused out-projection: concat heads on the lane dim, one 256-wide matmul ----
    a2 = jnp.concatenate(head_outs, axis=-1).reshape(TB * M, D)            # (TB*M, D)
    attn_out = jnp.dot(a2.astype(bf16), wo_ref[...],
                       preferred_element_type=f32) + bo_ref[...]           # (TB*M, D)

    def layer_norm(x, w, b):
        mu = jnp.mean(x, axis=-1, keepdims=True)
        xc = x - mu
        var = jnp.mean(xc * xc, axis=-1, keepdims=True)
        return xc * lax.rsqrt(var + LN_EPS) * w + b

    h1 = layer_norm(attn_out, ln1w_ref[...], ln1b_ref[...])                # norm_1

    # ---- FFN: Linear(256->1024) -> GELU -> Linear(1024->256) ----
    # TODO(synk): nn.GELU() uses the exact erf form; tanh approximation used in-kernel.
    f = jnp.dot(h1.astype(bf16), wf1_ref[...],
                preferred_element_type=f32) + bf1_ref[...]
    f = jax.nn.gelu(f, approximate=True)
    f = jnp.dot(f.astype(bf16), wf2_ref[...],
                preferred_element_type=f32) + bf2_ref[...]
    qc = layer_norm(f + h1, ln2w_ref[...], ln2b_ref[...])                  # norm_2, (TB*M, D)
    qc_ref[...] = qc.reshape(TB, M, D).astype(qc_ref.dtype)

    def elu(x):
        return jnp.where(x > 0, x, jnp.exp(jnp.minimum(x, 0.0)) - 1.0)

    qc_bf = qc.astype(bf16)

    # ---- GMM predictor: gaussian head ----
    g = elu(jnp.dot(qc_bf, wg1_ref[...], preferred_element_type=f32) + bg1_ref[...])
    res = jnp.dot(g.astype(bf16), wg2_ref[...],
                  preferred_element_type=f32) + bg2_ref[...]               # (TB*M, F4)
    # predictions[..., :2] += current_state[:, :2] : wrapper-precomputed (x,y,0,0)*F row.
    res = res.reshape(TB, M, F4) + cs_ref[...]

    # ---- GMM predictor: score head (final 64->1 as a VPU reduce, no 1-lane matmul) ----
    sc = elu(jnp.dot(qc_bf, ws1_ref[...], preferred_element_type=f32) + bs1_ref[...])
    score = (jnp.sum(sc * ws2_ref[...], axis=-1, keepdims=True)
             + bs2_ref[...]).reshape(TB, M, 1)

    # ---- pack predictions + scores into one lane-dense (multiple-of-128) output slab ----
    PAD = aux_ref.shape[-1]
    parts = [res, score]
    if PAD > F4 + 1:
        parts.append(jnp.zeros((TB, M, PAD - (F4 + 1)), f32))
    aux_ref[...] = jnp.concatenate(parts, axis=-1).astype(aux_ref.dtype)


def init_params(key, modalities, neighbors, future_len):
    """Synthetic parameters in PyTorch layouts (Linear weight = (out, in))."""
    dim = DIM
    ks = iter(jax.random.split(key, 16))

    def lin(kk, out_d, in_d):
        bound = 1.0 / math.sqrt(in_d)
        kw, kb = jax.random.split(kk)
        w = jax.random.uniform(kw, (out_d, in_d), jnp.float32, -bound, bound)
        b = jax.random.uniform(kb, (out_d,), jnp.float32, -bound, bound)
        return w, b

    p = {}
    p["modal_emb"] = jax.random.normal(next(ks), (modalities, dim), jnp.float32)
    p["agent_emb"] = jax.random.normal(next(ks), (neighbors + 1, dim), jnp.float32)
    p["in_proj_w"] = jax.random.normal(next(ks), (3 * dim, dim), jnp.float32) / math.sqrt(dim)
    p["in_proj_b"] = jnp.zeros((3 * dim,), jnp.float32)
    p["out_proj_w"], p["out_proj_b"] = lin(next(ks), dim, dim)
    p["ln1_w"] = jnp.ones((dim,), jnp.float32)
    p["ln1_b"] = jnp.zeros((dim,), jnp.float32)
    p["ln2_w"] = jnp.ones((dim,), jnp.float32)
    p["ln2_b"] = jnp.zeros((dim,), jnp.float32)
    p["ffn1_w"], p["ffn1_b"] = lin(next(ks), FFN_DIM, dim)
    p["ffn2_w"], p["ffn2_b"] = lin(next(ks), dim, FFN_DIM)
    p["g1_w"], p["g1_b"] = lin(next(ks), 512, dim)
    p["g2_w"], p["g2_b"] = lin(next(ks), future_len * 4, 512)
    p["s1_w"], p["s1_b"] = lin(next(ks), 64, dim)
    p["s2_w"], p["s2_b"] = lin(next(ks), 1, 64)
    return p


def prepare_params(p):
    """PyTorch layouts -> kernel layouts: (in,out) transposes, fused Wq / Wkv / Wo,
    bf16 MXU weights, f32 biases / norm params."""
    dim = DIM
    bf16, f32 = jnp.bfloat16, jnp.float32
    row = lambda v: v.reshape(1, -1).astype(f32)

    w_in, b_in = p["in_proj_w"], p["in_proj_b"]
    wq = w_in[:dim].T.astype(bf16)                                          # (D, D)
    bq = row(b_in[:dim])
    wkv = jnp.concatenate([w_in[dim:2 * dim].T, w_in[2 * dim:].T],
                          axis=1).astype(bf16)                              # (D, 2D)
    bkv = row(jnp.concatenate([b_in[dim:2 * dim], b_in[2 * dim:]]))
    wo = p["out_proj_w"].T.astype(bf16)                                     # (D, D)

    return (
        p["modal_emb"].astype(f32),
        p["agent_emb"].astype(f32),
        wq, bq, wkv, bkv, wo, row(p["out_proj_b"]),
        row(p["ln1_w"]), row(p["ln1_b"]),
        p["ffn1_w"].T.astype(bf16), row(p["ffn1_b"]),
        p["ffn2_w"].T.astype(bf16), row(p["ffn2_b"]),
        row(p["ln2_w"]), row(p["ln2_b"]),
        p["g1_w"].T.astype(bf16), row(p["g1_b"]),
        p["g2_w"].T.astype(bf16), row(p["g2_b"]),
        p["s1_w"].T.astype(bf16), row(p["s1_b"]),
        p["s2_w"].astype(f32),                     # (1, 64) used as a VPU reduce weight
        p["s2_b"].reshape(1, 1).astype(f32),
    )


def initial_decoder(agent_id, current_state, encoding, mask, params, *, batch_tile=8):
    """Forward of InitialDecoder (inference).
    agent_id: int; current_state: (B, S>=2) f32; encoding: (B, N, 256) f32 or bf16;
    mask: (B, N) bool key-padding mask (True = ignore) or None.
    Returns (query_content (B,M,256), predictions (B,M,F,4), scores (B,M))."""
    kp = prepare_params(params)
    M = params["modal_emb"].shape[0]
    F4 = params["g2_w"].shape[0]
    future_len = F4 // 4
    B, N, dim = encoding.shape
    PAD = ((F4 + 1 + 127) // 128) * 128        # lane-dense packed pred+score slab width

    TB = max(1, min(batch_tile, B))            # batch elements per grid step
    Bp = ((B + TB - 1) // TB) * TB
    num_steps = Bp // TB

    id_arr = jnp.asarray(agent_id, jnp.int32).reshape(1)

    if mask is None:
        mask_i8 = jnp.zeros((B, 1, N), jnp.int8)
    else:
        mask_i8 = mask.astype(jnp.int8).reshape(B, 1, N)      # narrow-dtype mask stream

    xy = current_state[:, :2].astype(jnp.float32)                                   # (B, 2)
    cs_row = jnp.tile(jnp.concatenate([xy, jnp.zeros((B, 2), jnp.float32)], axis=1),
                      (1, future_len)).reshape(B, 1, F4)       # (x,y,0,0) * F, per batch

    enc_in = encoding                          # stream in caller dtype (bf16 halves DMA)
    if Bp != B:
        padn = Bp - B
        enc_in = jnp.concatenate([enc_in, jnp.zeros((padn, N, dim), enc_in.dtype)], 0)
        mask_i8 = jnp.concatenate([mask_i8, jnp.zeros((padn, 1, N), jnp.int8)], 0)
        cs_row = jnp.concatenate([cs_row, jnp.zeros((padn, 1, F4), jnp.float32)], 0)

    per_batch = lambda shape: pl.BlockSpec(shape, lambda b, idr: (b, 0, 0))
    resident = lambda arr: pl.BlockSpec(arr.shape, lambda b, idr: (0, 0))

    grid_spec = pltpu.PrefetchScalarGridSpec(
        num_scalar_prefetch=1,
        grid=(num_steps,),
        in_specs=[per_batch((TB, N, dim)), per_batch((TB, 1, N)), per_batch((TB, 1, F4))]
                 + [resident(a) for a in kp],
        out_specs=[per_batch((TB, M, dim)), per_batch((TB, M, PAD))],
    )
    out_shape = (jax.ShapeDtypeStruct((Bp, M, dim), jnp.float32),
                 jax.ShapeDtypeStruct((Bp, M, PAD), jnp.float32))

    # Weight-DMA bound for small batches: only shard grid steps across TensorCores when
    # each core gets enough steps to amortize its own copy of the resident weights.
    semantics = ("parallel",) if num_steps >= 4 else ("arbitrary",)

    qc, aux = pl.pallas_call(
        initial_decoder_kernel,
        out_shape=out_shape,
        grid_spec=grid_spec,
        compiler_params=pltpu.CompilerParams(dimension_semantics=semantics),
    )(id_arr, enc_in, mask_i8, cs_row, *kp)

    qc = qc[:B]
    predictions = aux[:B, :, :F4].reshape(B, M, future_len, 4)
    scores = aux[:B, :, F4]
    return qc, predictions, scores


if __name__ == "__main__":
    MODALITIES = 8
    NEIGHBORS = 10
    FUTURE_LEN = 8
    B, N = 2, 16

    key = jax.random.PRNGKey(0)
    k_params, k_enc, k_state = jax.random.split(key, 3)
    params = init_params(k_params, MODALITIES, NEIGHBORS, FUTURE_LEN)

    encoding = jax.random.normal(k_enc, (B, N, DIM), jnp.float32)
    current_state = jax.random.normal(k_state, (B, 4), jnp.float32)
    # key-padding mask: last 3 tokens of batch element 1 are padding
    mask = jnp.zeros((B, N), jnp.bool_).at[1, N - 3:].set(True)
    agent_id = 3   # indexes agent_query_embedding (size NEIGHBORS+1) and encoding tokens

    query_content, predictions, scores = initial_decoder(
        agent_id, current_state, encoding, mask, params)
    jax.block_until_ready((query_content, predictions, scores))

    assert query_content.shape == (B, MODALITIES, DIM)
    assert predictions.shape == (B, MODALITIES, FUTURE_LEN, 4)
    assert scores.shape == (B, MODALITIES)
    assert query_content.dtype == jnp.float32
    assert bool(jnp.all(jnp.isfinite(query_content)))
    assert bool(jnp.all(jnp.isfinite(predictions)))
    assert bool(jnp.all(jnp.isfinite(scores)))
    print("KERNEL_OK")
</pallas_src>

<mosaic_0001>
module attributes {stable_mosaic.version = 11 : i64} {
  func.func @initial_decoder_kernel(%arg0: i32, %arg1: memref<1xi32, #tpu.memory_space<smem>>, %arg2: memref<2x16x256xf32, #tpu.memory_space<vmem>>, %arg3: memref<2x1x16xi8, #tpu.memory_space<vmem>>, %arg4: memref<2x1x32xf32, #tpu.memory_space<vmem>>, %arg5: memref<8x256xf32, #tpu.memory_space<vmem>>, %arg6: memref<11x256xf32, #tpu.memory_space<vmem>>, %arg7: memref<256x256xbf16, #tpu.memory_space<vmem>>, %arg8: memref<1x256xf32, #tpu.memory_space<vmem>>, %arg9: memref<256x512xbf16, #tpu.memory_space<vmem>>, %arg10: memref<1x512xf32, #tpu.memory_space<vmem>>, %arg11: memref<256x256xbf16, #tpu.memory_space<vmem>>, %arg12: memref<1x256xf32, #tpu.memory_space<vmem>>, %arg13: memref<1x256xf32, #tpu.memory_space<vmem>>, %arg14: memref<1x256xf32, #tpu.memory_space<vmem>>, %arg15: memref<256x1024xbf16, #tpu.memory_space<vmem>>, %arg16: memref<1x1024xf32, #tpu.memory_space<vmem>>, %arg17: memref<1024x256xbf16, #tpu.memory_space<vmem>>, %arg18: memref<1x256xf32, #tpu.memory_space<vmem>>, %arg19: memref<1x256xf32, #tpu.memory_space<vmem>>, %arg20: memref<1x256xf32, #tpu.memory_space<vmem>>, %arg21: memref<256x512xbf16, #tpu.memory_space<vmem>>, %arg22: memref<1x512xf32, #tpu.memory_space<vmem>>, %arg23: memref<512x32xbf16, #tpu.memory_space<vmem>>, %arg24: memref<1x32xf32, #tpu.memory_space<vmem>>, %arg25: memref<256x64xbf16, #tpu.memory_space<vmem>>, %arg26: memref<1x64xf32, #tpu.memory_space<vmem>>, %arg27: memref<1x64xf32, #tpu.memory_space<vmem>>, %arg28: memref<1x1xf32, #tpu.memory_space<vmem>>, %arg29: memref<2x8x256xf32, #tpu.memory_space<vmem>>, %arg30: memref<2x8x128xf32, #tpu.memory_space<vmem>>) attributes {dimension_semantics = [#tpu.dimension_semantics<arbitrary>], iteration_bounds = array<i64: 1>, scalar_prefetch = 1 : i64, scratch_operands = 0 : i64, tpu.core_type = #tpu.core_type<tc>, window_params = [{transform_indices = @transform_0, window_bounds = array<i64: 2, 16, 256>}, {transform_indices = @transform_1, window_bounds = array<i64: 2, 1, 16>}, {transform_indices = @transform_2, window_bounds = array<i64: 2, 1, 32>}, {pipeline_mode = #tpu.pipeline_mode<synchronous>, transform_indices = @transform_3, window_bounds = array<i64: 8, 256>}, {pipeline_mode = #tpu.pipeline_mode<synchronous>, transform_indices = @transform_4, window_bounds = array<i64: 11, 256>}, {pipeline_mode = #tpu.pipeline_mode<synchronous>, transform_indices = @transform_5, window_bounds = array<i64: 256, 256>}, {pipeline_mode = #tpu.pipeline_mode<synchronous>, transform_indices = @transform_6, window_bounds = array<i64: 1, 256>}, {pipeline_mode = #tpu.pipeline_mode<synchronous>, transform_indices = @transform_7, window_bounds = array<i64: 256, 512>}, {pipeline_mode = #tpu.pipeline_mode<synchronous>, transform_indices = @transform_8, window_bounds = array<i64: 1, 512>}, {pipeline_mode = #tpu.pipeline_mode<synchronous>, transform_indices = @transform_9, window_bounds = array<i64: 256, 256>}, {pipeline_mode = #tpu.pipeline_mode<synchronous>, transform_indices = @transform_10, window_bounds = array<i64: 1, 256>}, {pipeline_mode = #tpu.pipeline_mode<synchronous>, transform_indices = @transform_11, window_bounds = array<i64: 1, 256>}, {pipeline_mode = #tpu.pipeline_mode<synchronous>, transform_indices = @transform_12, window_bounds = array<i64: 1, 256>}, {pipeline_mode = #tpu.pipeline_mode<synchronous>, transform_indices = @transform_13, window_bounds = array<i64: 256, 1024>}, {pipeline_mode = #tpu.pipeline_mode<synchronous>, transform_indices = @transform_14, window_bounds = array<i64: 1, 1024>}, {pipeline_mode = #tpu.pipeline_mode<synchronous>, transform_indices = @transform_15, window_bounds = array<i64: 1024, 256>}, {pipeline_mode = #tpu.pipeline_mode<synchronous>, transform_indices = @transform_16, window_bounds = array<i64: 1, 256>}, {pipeline_mode = #tpu.pipeline_mode<synchronous>, transform_indices = @transform_17, window_bounds = array<i64: 1, 256>}, {pipeline_mode = #tpu.pipeline_mode<synchronous>, transform_indices = @transform_18, window_bounds = array<i64: 1, 256>}, {pipeline_mode = #tpu.pipeline_mode<synchronous>, transform_indices = @transform_19, window_bounds = array<i64: 256, 512>}, {pipeline_mode = #tpu.pipeline_mode<synchronous>, transform_indices = @transform_20, window_bounds = array<i64: 1, 512>}, {pipeline_mode = #tpu.pipeline_mode<synchronous>, transform_indices = @transform_21, window_bounds = array<i64: 512, 32>}, {pipeline_mode = #tpu.pipeline_mode<synchronous>, transform_indices = @transform_22, window_bounds = array<i64: 1, 32>}, {pipeline_mode = #tpu.pipeline_mode<synchronous>, transform_indices = @transform_23, window_bounds = array<i64: 256, 64>}, {pipeline_mode = #tpu.pipeline_mode<synchronous>, transform_indices = @transform_24, window_bounds = array<i64: 1, 64>}, {pipeline_mode = #tpu.pipeline_mode<synchronous>, transform_indices = @transform_25, window_bounds = array<i64: 1, 64>}, {pipeline_mode = #tpu.pipeline_mode<synchronous>, transform_indices = @transform_26, window_bounds = array<i64: 1, 1>}, {transform_indices = @transform_27, window_bounds = array<i64: 2, 8, 256>}, {transform_indices = @transform_28, window_bounds = array<i64: 2, 8, 128>}]} {
    %c0 = arith.constant 0 : index
    %0 = memref.load %arg1[%c0] : memref<1xi32, #tpu.memory_space<smem>>
    %c0_0 = arith.constant 0 : index
    %c0_1 = arith.constant 0 : index
    %c0_2 = arith.constant 0 : index
    %1 = vector.load %arg2[%c0_0, %c0_1, %c0_2] : memref<2x16x256xf32, #tpu.memory_space<vmem>>, vector<2x16x256xf32>
    %2 = arith.truncf %1 : vector<2x16x256xf32> to vector<2x16x256xbf16>
    %3 = tpu.iota {dimensions = array<i32: 1>} : vector<1x16x1xi32>
    %4 = vector.broadcast %0 : i32 to vector<1x16x1xi32>
    %5 = arith.cmpi eq, %3, %4 : vector<1x16x1xi32>
    %cst = arith.constant 0.000000e+00 : f32
    %6 = vector.shape_cast %5 : vector<1x16x1xi1> to vector<1x16x1xi1>
    %7 = vector.broadcast %6 : vector<1x16x1xi1> to vector<2x16x256xi1>
    %8 = vector.broadcast %cst : f32 to vector<2x16x256xf32>
    %9 = arith.select %7, %1, %8 : vector<2x16x256xi1>, vector<2x16x256xf32>
    %cst_3 = arith.constant dense<0.000000e+00> : vector<2x256xf32>
    %10 = vector.multi_reduction <add>, %9, %cst_3 [1] : vector<2x16x256xf32> to vector<2x256xf32>
    %11 = vector.shape_cast %10 : vector<2x256xf32> to vector<2x1x256xf32>
    %12 = tpu.iota {dimensions = array<i32: 0>} : vector<11x1xi32>
    %13 = vector.broadcast %0 : i32 to vector<11x1xi32>
    %14 = arith.cmpi eq, %12, %13 : vector<11x1xi32>
    %c0_4 = arith.constant 0 : index
    %c0_5 = arith.constant 0 : index
    %15 = vector.load %arg6[%c0_4, %c0_5] : memref<11x256xf32, #tpu.memory_space<vmem>>, vector<11x256xf32>
    %cst_6 = arith.constant 0.000000e+00 : f32
    %16 = vector.shape_cast %14 : vector<11x1xi1> to vector<11x1xi1>
    %17 = vector.broadcast %16 : vector<11x1xi1> to vector<11x256xi1>
    %18 = vector.broadcast %cst_6 : f32 to vector<11x256xf32>
    %19 = arith.select %17, %15, %18 : vector<11x256xi1>, vector<11x256xf32>
    %cst_7 = arith.constant dense<0.000000e+00> : vector<256xf32>
    %20 = vector.multi_reduction <add>, %19, %cst_7 [0] : vector<11x256xf32> to vector<256xf32>
    %21 = vector.shape_cast %20 : vector<256xf32> to vector<1x256xf32>
    %c0_8 = arith.constant 0 : index
    %c0_9 = arith.constant 0 : index
    %22 = vector.load %arg5[%c0_8, %c0_9] : memref<8x256xf32, #tpu.memory_space<vmem>>, vector<8x256xf32>
    %23 = vector.broadcast %21 : vector<1x256xf32> to vector<8x256xf32>
    %24 = arith.addf %22, %23 : vector<8x256xf32>
    %25 = vector.shape_cast %24 : vector<8x256xf32> to vector<1x8x256xf32>
    %26 = vector.broadcast %11 : vector<2x1x256xf32> to vector<2x8x256xf32>
    %27 = vector.broadcast %25 : vector<1x8x256xf32> to vector<2x8x256xf32>
    %28 = arith.addf %26, %27 : vector<2x8x256xf32>
    %29 = vector.shape_cast %28 : vector<2x8x256xf32> to vector<16x256xf32>
    %30 = arith.truncf %29 : vector<16x256xf32> to vector<16x256xbf16>
    %c0_10 = arith.constant 0 : index
    %c0_11 = arith.constant 0 : index
    %31 = vector.load %arg7[%c0_10, %c0_11] : memref<256x256xbf16, #tpu.memory_space<vmem>>, vector<256x256xbf16>
    %cst_12 = arith.constant dense<0.000000e+00> : vector<16x256xf32>
    %32 = tpu.matmul %30, %31, %cst_12 {dimension_numbers = #tpu.dot_dimension_numbers<[1], [0], [0], [1], [0, 0, 1, 1], [], []>} : vector<16x256xbf16>, vector<256x256xbf16>, vector<16x256xf32> -> vector<16x256xf32>
    %c0_13 = arith.constant 0 : index
    %c0_14 = arith.constant 0 : index
    %33 = vector.load %arg8[%c0_13, %c0_14] : memref<1x256xf32, #tpu.memory_space<vmem>>, vector<1x256xf32>
    %34 = vector.broadcast %33 : vector<1x256xf32> to vector<16x256xf32>
    %35 = arith.addf %32, %34 : vector<16x256xf32>
    %36 = vector.shape_cast %2 : vector<2x16x256xbf16> to vector<32x256xbf16>
    %c0_15 = arith.constant 0 : index
    %c0_16 = arith.constant 0 : index
    %37 = vector.load %arg9[%c0_15, %c0_16] : memref<256x512xbf16, #tpu.memory_space<vmem>>, vector<256x512xbf16>
    %cst_17 = arith.constant dense<0.000000e+00> : vector<32x512xf32>
    %38 = tpu.matmul %36, %37, %cst_17 {dimension_numbers = #tpu.dot_dimension_numbers<[1], [0], [0], [1], [0, 0, 1, 1], [], []>} : vector<32x256xbf16>, vector<256x512xbf16>, vector<32x512xf32> -> vector<32x512xf32>
    %c0_18 = arith.constant 0 : index
    %c0_19 = arith.constant 0 : index
    %39 = vector.load %arg10[%c0_18, %c0_19] : memref<1x512xf32, #tpu.memory_space<vmem>>, vector<1x512xf32>
    %40 = vector.broadcast %39 : vector<1x512xf32> to vector<32x512xf32>
    %41 = arith.addf %38, %40 : vector<32x512xf32>
    %42 = arith.truncf %35 : vector<16x256xf32> to vector<16x256xbf16>
    %43 = arith.truncf %41 : vector<32x512xf32> to vector<32x512xbf16>
    %c0_20 = arith.constant 0 : index
    %c0_21 = arith.constant 0 : index
    %c0_22 = arith.constant 0 : index
    %44 = vector.load %arg3[%c0_20, %c0_21, %c0_22] : memref<2x1x16xi8, #tpu.memory_space<vmem>>, vector<2x1x16xi8>
    %c0_i8 = arith.constant 0 : i8
    %45 = vector.broadcast %c0_i8 : i8 to vector<2x1x16xi8>
    %46 = arith.cmpi ne, %44, %45 : vector<2x1x16xi8>
    %47 = vector.extract_strided_slice %42 {offsets = [0, 0], sizes = [16, 32], strides = [1, 1]} : vector<16x256xbf16> to vector<16x32xbf16>
    %48 = vector.shape_cast %47 : vector<16x32xbf16> to vector<2x8x32xbf16>
    %49 = vector.extract_strided_slice %43 {offsets = [0, 0], sizes = [32, 32], strides = [1, 1]} : vector<32x512xbf16> to vector<32x32xbf16>
    %50 = vector.shape_cast %49 : vector<32x32xbf16> to vector<2x16x32xbf16>
    %51 = vector.extract_strided_slice %43 {offsets = [0, 256], sizes = [32, 32], strides = [1, 1]} : vector<32x512xbf16> to vector<32x32xbf16>
    %52 = vector.shape_cast %51 : vector<32x32xbf16> to vector<2x16x32xbf16>
    "tpu.trace_start"() <{level = 10 : i32, message = "bmk,bnk->bmn"}> : () -> ()
    %cst_23 = arith.constant dense<0.000000e+00> : vector<2x8x16xf32>
    %53 = tpu.matmul %48, %50, %cst_23 {dimension_numbers = #tpu.dot_dimension_numbers<[2], [2], [1], [1], [0, 0, 0, 1, 1, 1], [0], [0]>} : vector<2x8x32xbf16>, vector<2x16x32xbf16>, vector<2x8x16xf32> -> vector<2x8x16xf32>
    "tpu.trace_stop"() : () -> ()
    %cst_24 = arith.constant 0.176776692 : f32
    %54 = vector.broadcast %cst_24 : f32 to vector<2x8x16xf32>
    %55 = arith.mulf %53, %54 : vector<2x8x16xf32>
    %cst_25 = arith.constant -1.000000e+30 : f32
    %56 = vector.shape_cast %46 : vector<2x1x16xi1> to vector<2x1x16xi1>
    %57 = vector.broadcast %56 : vector<2x1x16xi1> to vector<2x8x16xi1>
    %58 = vector.broadcast %cst_25 : f32 to vector<2x8x16xf32>
    %59 = arith.select %57, %58, %55 : vector<2x8x16xi1>, vector<2x8x16xf32>
    %cst_26 = arith.constant dense<0xFF800000> : vector<2x8xf32>
    %60 = vector.multi_reduction <maximumf>, %59, %cst_26 [2] : vector<2x8x16xf32> to vector<2x8xf32>
    %61 = vector.shape_cast %60 : vector<2x8xf32> to vector<2x8x1xf32>
    %62 = vector.broadcast %61 : vector<2x8x1xf32> to vector<2x8x16xf32>
    %63 = arith.subf %59, %62 : vector<2x8x16xf32>
    %64 = math.exp %63 : vector<2x8x16xf32>
    %cst_27 = arith.constant dense<0.000000e+00> : vector<2x8xf32>
    %65 = vector.multi_reduction <add>, %64, %cst_27 [2] : vector<2x8x16xf32> to vector<2x8xf32>
    %66 = vector.shape_cast %65 : vector<2x8xf32> to vector<2x8x1xf32>
    %67 = tpu.reciprocal %66 {approx = true} : vector<2x8x1xf32> -> vector<2x8x1xf32>
    %68 = vector.broadcast %67 : vector<2x8x1xf32> to vector<2x8x16xf32>
    %69 = arith.mulf %64, %68 : vector<2x8x16xf32>
    %70 = arith.truncf %69 : vector<2x8x16xf32> to vector<2x8x16xbf16>
    "tpu.trace_start"() <{level = 10 : i32, message = "bmn,bnk->bmk"}> : () -> ()
    %cst_28 = arith.constant dense<0.000000e+00> : vector<2x8x32xf32>
    %71 = tpu.matmul %70, %52, %cst_28 {dimension_numbers = #tpu.dot_dimension_numbers<[2], [1], [1], [2], [0, 0, 0, 1, 1, 2], [0], [0]>} : vector<2x8x16xbf16>, vector<2x16x32xbf16>, vector<2x8x32xf32> -> vector<2x8x32xf32>
    "tpu.trace_stop"() : () -> ()
    %72 = vector.extract_strided_slice %42 {offsets = [0, 32], sizes = [16, 32], strides = [1, 1]} : vector<16x256xbf16> to vector<16x32xbf16>
    %73 = vector.shape_cast %72 : vector<16x32xbf16> to vector<2x8x32xbf16>
    %74 = vector.extract_strided_slice %43 {offsets = [0, 32], sizes = [32, 32], strides = [1, 1]} : vector<32x512xbf16> to vector<32x32xbf16>
    %75 = vector.shape_cast %74 : vector<32x32xbf16> to vector<2x16x32xbf16>
    %76 = vector.extract_strided_slice %43 {offsets = [0, 288], sizes = [32, 32], strides = [1, 1]} : vector<32x512xbf16> to vector<32x32xbf16>
    %77 = vector.shape_cast %76 : vector<32x32xbf16> to vector<2x16x32xbf16>
    "tpu.trace_start"() <{level = 10 : i32, message = "bmk,bnk->bmn"}> : () -> ()
    %cst_29 = arith.constant dense<0.000000e+00> : vector<2x8x16xf32>
    %78 = tpu.matmul %73, %75, %cst_29 {dimension_numbers = #tpu.dot_dimension_numbers<[2], [2], [1], [1], [0, 0, 0, 1, 1, 1], [0], [0]>} : vector<2x8x32xbf16>, vector<2x16x32xbf16>, vector<2x8x16xf32> -> vector<2x8x16xf32>
    "tpu.trace_stop"() : () -> ()
    %cst_30 = arith.constant 0.176776692 : f32
    %79 = vector.broadcast %cst_30 : f32 to vector<2x8x16xf32>
    %80 = arith.mulf %78, %79 : vector<2x8x16xf32>
    %cst_31 = arith.constant -1.000000e+30 : f32
    %81 = vector.shape_cast %46 : vector<2x1x16xi1> to vector<2x1x16xi1>
    %82 = vector.broadcast %81 : vector<2x1x16xi1> to vector<2x8x16xi1>
    %83 = vector.broadcast %cst_31 : f32 to vector<2x8x16xf32>
    %84 = arith.select %82, %83, %80 : vector<2x8x16xi1>, vector<2x8x16xf32>
    %cst_32 = arith.constant dense<0xFF800000> : vector<2x8xf32>
    %85 = vector.multi_reduction <maximumf>, %84, %cst_32 [2] : vector<2x8x16xf32> to vector<2x8xf32>
    %86 = vector.shape_cast %85 : vector<2x8xf32> to vector<2x8x1xf32>
    %87 = vector.broadcast %86 : vector<2x8x1xf32> to vector<2x8x16xf32>
    %88 = arith.subf %84, %87 : vector<2x8x16xf32>
    %89 = math.exp %88 : vector<2x8x16xf32>
    %cst_33 = arith.constant dense<0.000000e+00> : vector<2x8xf32>
    %90 = vector.multi_reduction <add>, %89, %cst_33 [2] : vector<2x8x16xf32> to vector<2x8xf32>
    %91 = vector.shape_cast %90 : vector<2x8xf32> to vector<2x8x1xf32>
    %92 = tpu.reciprocal %91 {approx = true} : vector<2x8x1xf32> -> vector<2x8x1xf32>
    %93 = vector.broadcast %92 : vector<2x8x1xf32> to vector<2x8x16xf32>
    %94 = arith.mulf %89, %93 : vector<2x8x16xf32>
    %95 = arith.truncf %94 : vector<2x8x16xf32> to vector<2x8x16xbf16>
    "tpu.trace_start"() <{level = 10 : i32, message = "bmn,bnk->bmk"}> : () -> ()
    %cst_34 = arith.constant dense<0.000000e+00> : vector<2x8x32xf32>
    %96 = tpu.matmul %95, %77, %cst_34 {dimension_numbers = #tpu.dot_dimension_numbers<[2], [1], [1], [2], [0, 0, 0, 1, 1, 2], [0], [0]>} : vector<2x8x16xbf16>, vector<2x16x32xbf16>, vector<2x8x32xf32> -> vector<2x8x32xf32>
    "tpu.trace_stop"() : () -> ()
    %97 = vector.extract_strided_slice %42 {offsets = [0, 64], sizes = [16, 32], strides = [1, 1]} : vector<16x256xbf16> to vector<16x32xbf16>
    %98 = vector.shape_cast %97 : vector<16x32xbf16> to vector<2x8x32xbf16>
    %99 = vector.extract_strided_slice %43 {offsets = [0, 64], sizes = [32, 32], strides = [1, 1]} : vector<32x512xbf16> to vector<32x32xbf16>
    %100 = vector.shape_cast %99 : vector<32x32xbf16> to vector<2x16x32xbf16>
    %101 = vector.extract_strided_slice %43 {offsets = [0, 320], sizes = [32, 32], strides = [1, 1]} : vector<32x512xbf16> to vector<32x32xbf16>
    %102 = vector.shape_cast %101 : vector<32x32xbf16> to vector<2x16x32xbf16>
    "tpu.trace_start"() <{level = 10 : i32, message = "bmk,bnk->bmn"}> : () -> ()
    %cst_35 = arith.constant dense<0.000000e+00> : vector<2x8x16xf32>
    %103 = tpu.matmul %98, %100, %cst_35 {dimension_numbers = #tpu.dot_dimension_numbers<[2], [2], [1], [1], [0, 0, 0, 1, 1, 1], [0], [0]>} : vector<2x8x32xbf16>, vector<2x16x32xbf16>, vector<2x8x16xf32> -> vector<2x8x16xf32>
    "tpu.trace_stop"() : () -> ()
    %cst_36 = arith.constant 0.176776692 : f32
    %104 = vector.broadcast %cst_36 : f32 to vector<2x8x16xf32>
    %105 = arith.mulf %103, %104 : vector<2x8x16xf32>
    %cst_37 = arith.constant -1.000000e+30 : f32
    %106 = vector.shape_cast %46 : vector<2x1x16xi1> to vector<2x1x16xi1>
    %107 = vector.broadcast %106 : vector<2x1x16xi1> to vector<2x8x16xi1>
    %108 = vector.broadcast %cst_37 : f32 to vector<2x8x16xf32>
    %109 = arith.select %107, %108, %105 : vector<2x8x16xi1>, vector<2x8x16xf32>
    %cst_38 = arith.constant dense<0xFF800000> : vector<2x8xf32>
    %110 = vector.multi_reduction <maximumf>, %109, %cst_38 [2] : vector<2x8x16xf32> to vector<2x8xf32>
    %111 = vector.shape_cast %110 : vector<2x8xf32> to vector<2x8x1xf32>
    %112 = vector.broadcast %111 : vector<2x8x1xf32> to vector<2x8x16xf32>
    %113 = arith.subf %109, %112 : vector<2x8x16xf32>
    %114 = math.exp %113 : vector<2x8x16xf32>
    %cst_39 = arith.constant dense<0.000000e+00> : vector<2x8xf32>
    %115 = vector.multi_reduction <add>, %114, %cst_39 [2] : vector<2x8x16xf32> to vector<2x8xf32>
    %116 = vector.shape_cast %115 : vector<2x8xf32> to vector<2x8x1xf32>
    %117 = tpu.reciprocal %116 {approx = true} : vector<2x8x1xf32> -> vector<2x8x1xf32>
    %118 = vector.broadcast %117 : vector<2x8x1xf32> to vector<2x8x16xf32>
    %119 = arith.mulf %114, %118 : vector<2x8x16xf32>
    %120 = arith.truncf %119 : vector<2x8x16xf32> to vector<2x8x16xbf16>
    "tpu.trace_start"() <{level = 10 : i32, message = "bmn,bnk->bmk"}> : () -> ()
    %cst_40 = arith.constant dense<0.000000e+00> : vector<2x8x32xf32>
    %121 = tpu.matmul %120, %102, %cst_40 {dimension_numbers = #tpu.dot_dimension_numbers<[2], [1], [1], [2], [0, 0, 0, 1, 1, 2], [0], [0]>} : vector<2x8x16xbf16>, vector<2x16x32xbf16>, vector<2x8x32xf32> -> vector<2x8x32xf32>
    "tpu.trace_stop"() : () -> ()
    %122 = vector.extract_strided_slice %42 {offsets = [0, 96], sizes = [16, 32], strides = [1, 1]} : vector<16x256xbf16> to vector<16x32xbf16>
    %123 = vector.shape_cast %122 : vector<16x32xbf16> to vector<2x8x32xbf16>
    %124 = vector.extract_strided_slice %43 {offsets = [0, 96], sizes = [32, 32], strides = [1, 1]} : vector<32x512xbf16> to vector<32x32xbf16>
    %125 = vector.shape_cast %124 : vector<32x32xbf16> to vector<2x16x32xbf16>
    %126 = vector.extract_strided_slice %43 {offsets = [0, 352], sizes = [32, 32], strides = [1, 1]} : vector<32x512xbf16> to vector<32x32xbf16>
    %127 = vector.shape_cast %126 : vector<32x32xbf16> to vector<2x16x32xbf16>
    "tpu.trace_start"() <{level = 10 : i32, message = "bmk,bnk->bmn"}> : () -> ()
    %cst_41 = arith.constant dense<0.000000e+00> : vector<2x8x16xf32>
    %128 = tpu.matmul %123, %125, %cst_41 {dimension_numbers = #tpu.dot_dimension_numbers<[2], [2], [1], [1], [0, 0, 0, 1, 1, 1], [0], [0]>} : vector<2x8x32xbf16>, vector<2x16x32xbf16>, vector<2x8x16xf32> -> vector<2x8x16xf32>
    "tpu.trace_stop"() : () -> ()
    %cst_42 = arith.constant 0.176776692 : f32
    %129 = vector.broadcast %cst_42 : f32 to vector<2x8x16xf32>
    %130 = arith.mulf %128, %129 : vector<2x8x16xf32>
    %cst_43 = arith.constant -1.000000e+30 : f32
    %131 = vector.shape_cast %46 : vector<2x1x16xi1> to vector<2x1x16xi1>
    %132 = vector.broadcast %131 : vector<2x1x16xi1> to vector<2x8x16xi1>
    %133 = vector.broadcast %cst_43 : f32 to vector<2x8x16xf32>
    %134 = arith.select %132, %133, %130 : vector<2x8x16xi1>, vector<2x8x16xf32>
    %cst_44 = arith.constant dense<0xFF800000> : vector<2x8xf32>
    %135 = vector.multi_reduction <maximumf>, %134, %cst_44 [2] : vector<2x8x16xf32> to vector<2x8xf32>
    %136 = vector.shape_cast %135 : vector<2x8xf32> to vector<2x8x1xf32>
    %137 = vector.broadcast %136 : vector<2x8x1xf32> to vector<2x8x16xf32>
    %138 = arith.subf %134, %137 : vector<2x8x16xf32>
    %139 = math.exp %138 : vector<2x8x16xf32>
    %cst_45 = arith.constant dense<0.000000e+00> : vector<2x8xf32>
    %140 = vector.multi_reduction <add>, %139, %cst_45 [2] : vector<2x8x16xf32> to vector<2x8xf32>
    %141 = vector.shape_cast %140 : vector<2x8xf32> to vector<2x8x1xf32>
    %142 = tpu.reciprocal %141 {approx = true} : vector<2x8x1xf32> -> vector<2x8x1xf32>
    %143 = vector.broadcast %142 : vector<2x8x1xf32> to vector<2x8x16xf32>
    %144 = arith.mulf %139, %143 : vector<2x8x16xf32>
    %145 = arith.truncf %144 : vector<2x8x16xf32> to vector<2x8x16xbf16>
    "tpu.trace_start"() <{level = 10 : i32, message = "bmn,bnk->bmk"}> : () -> ()
    %cst_46 = arith.constant dense<0.000000e+00> : vector<2x8x32xf32>
    %146 = tpu.matmul %145, %127, %cst_46 {dimension_numbers = #tpu.dot_dimension_numbers<[2], [1], [1], [2], [0, 0, 0, 1, 1, 2], [0], [0]>} : vector<2x8x16xbf16>, vector<2x16x32xbf16>, vector<2x8x32xf32> -> vector<2x8x32xf32>
    "tpu.trace_stop"() : () -> ()
    %147 = vector.extract_strided_slice %42 {offsets = [0, 128], sizes = [16, 32], strides = [1, 1]} : vector<16x256xbf16> to vector<16x32xbf16>
    %148 = vector.shape_cast %147 : vector<16x32xbf16> to vector<2x8x32xbf16>
    %149 = vector.extract_strided_slice %43 {offsets = [0, 128], sizes = [32, 32], strides = [1, 1]} : vector<32x512xbf16> to vector<32x32xbf16>
    %150 = vector.shape_cast %149 : vector<32x32xbf16> to vector<2x16x32xbf16>
    %151 = vector.extract_strided_slice %43 {offsets = [0, 384], sizes = [32, 32], strides = [1, 1]} : vector<32x512xbf16> to vector<32x32xbf16>
    %152 = vector.shape_cast %151 : vector<32x32xbf16> to vector<2x16x32xbf16>
    "tpu.trace_start"() <{level = 10 : i32, message = "bmk,bnk->bmn"}> : () -> ()
    %cst_47 = arith.constant dense<0.000000e+00> : vector<2x8x16xf32>
    %153 = tpu.matmul %148, %150, %cst_47 {dimension_numbers = #tpu.dot_dimension_numbers<[2], [2], [1], [1], [0, 0, 0, 1, 1, 1], [0], [0]>} : vector<2x8x32xbf16>, vector<2x16x32xbf16>, vector<2x8x16xf32> -> vector<2x8x16xf32>
    "tpu.trace_stop"() : () -> ()
    %cst_48 = arith.constant 0.176776692 : f32
    %154 = vector.broadcast %cst_48 : f32 to vector<2x8x16xf32>
    %155 = arith.mulf %153, %154 : vector<2x8x16xf32>
    %cst_49 = arith.constant -1.000000e+30 : f32
    %156 = vector.shape_cast %46 : vector<2x1x16xi1> to vector<2x1x16xi1>
    %157 = vector.broadcast %156 : vector<2x1x16xi1> to vector<2x8x16xi1>
    %158 = vector.broadcast %cst_49 : f32 to vector<2x8x16xf32>
    %159 = arith.select %157, %158, %155 : vector<2x8x16xi1>, vector<2x8x16xf32>
    %cst_50 = arith.constant dense<0xFF800000> : vector<2x8xf32>
    %160 = vector.multi_reduction <maximumf>, %159, %cst_50 [2] : vector<2x8x16xf32> to vector<2x8xf32>
    %161 = vector.shape_cast %160 : vector<2x8xf32> to vector<2x8x1xf32>
    %162 = vector.broadcast %161 : vector<2x8x1xf32> to vector<2x8x16xf32>
    %163 = arith.subf %159, %162 : vector<2x8x16xf32>
    %164 = math.exp %163 : vector<2x8x16xf32>
    %cst_51 = arith.constant dense<0.000000e+00> : vector<2x8xf32>
    %165 = vector.multi_reduction <add>, %164, %cst_51 [2] : vector<2x8x16xf32> to vector<2x8xf32>
    %166 = vector.shape_cast %165 : vector<2x8xf32> to vector<2x8x1xf32>
    %167 = tpu.reciprocal %166 {approx = true} : vector<2x8x1xf32> -> vector<2x8x1xf32>
    %168 = vector.broadcast %167 : vector<2x8x1xf32> to vector<2x8x16xf32>
    %169 = arith.mulf %164, %168 : vector<2x8x16xf32>
    %170 = arith.truncf %169 : vector<2x8x16xf32> to vector<2x8x16xbf16>
    "tpu.trace_start"() <{level = 10 : i32, message = "bmn,bnk->bmk"}> : () -> ()
    %cst_52 = arith.constant dense<0.000000e+00> : vector<2x8x32xf32>
    %171 = tpu.matmul %170, %152, %cst_52 {dimension_numbers = #tpu.dot_dimension_numbers<[2], [1], [1], [2], [0, 0, 0, 1, 1, 2], [0], [0]>} : vector<2x8x16xbf16>, vector<2x16x32xbf16>, vector<2x8x32xf32> -> vector<2x8x32xf32>
    "tpu.trace_stop"() : () -> ()
    %172 = vector.extract_strided_slice %42 {offsets = [0, 160], sizes = [16, 32], strides = [1, 1]} : vector<16x256xbf16> to vector<16x32xbf16>
    %173 = vector.shape_cast %172 : vector<16x32xbf16> to vector<2x8x32xbf16>
    %174 = vector.extract_strided_slice %43 {offsets = [0, 160], sizes = [32, 32], strides = [1, 1]} : vector<32x512xbf16> to vector<32x32xbf16>
    %175 = vector.shape_cast %174 : vector<32x32xbf16> to vector<2x16x32xbf16>
    %176 = vector.extract_strided_slice %43 {offsets = [0, 416], sizes = [32, 32], strides = [1, 1]} : vector<32x512xbf16> to vector<32x32xbf16>
    %177 = vector.shape_cast %176 : vector<32x32xbf16> to vector<2x16x32xbf16>
    "tpu.trace_start"() <{level = 10 : i32, message = "bmk,bnk->bmn"}> : () -> ()
    %cst_53 = arith.constant dense<0.000000e+00> : vector<2x8x16xf32>
    %178 = tpu.matmul %173, %175, %cst_53 {dimension_numbers = #tpu.dot_dimension_numbers<[2], [2], [1], [1], [0, 0, 0, 1, 1, 1], [0], [0]>} : vector<2x8x32xbf16>, vector<2x16x32xbf16>, vector<2x8x16xf32> -> vector<2x8x16xf32>
    "tpu.trace_stop"() : () -> ()
    %cst_54 = arith.constant 0.176776692 : f32
    %179 = vector.broadcast %cst_54 : f32 to vector<2x8x16xf32>
    %180 = arith.mulf %178, %179 : vector<2x8x16xf32>
    %cst_55 = arith.constant -1.000000e+30 : f32
    %181 = vector.shape_cast %46 : vector<2x1x16xi1> to vector<2x1x16xi1>
    %182 = vector.broadcast %181 : vector<2x1x16xi1> to vector<2x8x16xi1>
    %183 = vector.broadcast %cst_55 : f32 to vector<2x8x16xf32>
    %184 = arith.select %182, %183, %180 : vector<2x8x16xi1>, vector<2x8x16xf32>
    %cst_56 = arith.constant dense<0xFF800000> : vector<2x8xf32>
    %185 = vector.multi_reduction <maximumf>, %184, %cst_56 [2] : vector<2x8x16xf32> to vector<2x8xf32>
    %186 = vector.shape_cast %185 : vector<2x8xf32> to vector<2x8x1xf32>
    %187 = vector.broadcast %186 : vector<2x8x1xf32> to vector<2x8x16xf32>
    %188 = arith.subf %184, %187 : vector<2x8x16xf32>
    %189 = math.exp %188 : vector<2x8x16xf32>
    %cst_57 = arith.constant dense<0.000000e+00> : vector<2x8xf32>
    %190 = vector.multi_reduction <add>, %189, %cst_57 [2] : vector<2x8x16xf32> to vector<2x8xf32>
    %191 = vector.shape_cast %190 : vector<2x8xf32> to vector<2x8x1xf32>
    %192 = tpu.reciprocal %191 {approx = true} : vector<2x8x1xf32> -> vector<2x8x1xf32>
    %193 = vector.broadcast %192 : vector<2x8x1xf32> to vector<2x8x16xf32>
    %194 = arith.mulf %189, %193 : vector<2x8x16xf32>
    %195 = arith.truncf %194 : vector<2x8x16xf32> to vector<2x8x16xbf16>
    "tpu.trace_start"() <{level = 10 : i32, message = "bmn,bnk->bmk"}> : () -> ()
    %cst_58 = arith.constant dense<0.000000e+00> : vector<2x8x32xf32>
    %196 = tpu.matmul %195, %177, %cst_58 {dimension_numbers = #tpu.dot_dimension_numbers<[2], [1], [1], [2], [0, 0, 0, 1, 1, 2], [0], [0]>} : vector<2x8x16xbf16>, vector<2x16x32xbf16>, vector<2x8x32xf32> -> vector<2x8x32xf32>
    "tpu.trace_stop"() : () -> ()
    %197 = vector.extract_strided_slice %42 {offsets = [0, 192], sizes = [16, 32], strides = [1, 1]} : vector<16x256xbf16> to vector<16x32xbf16>
    %198 = vector.shape_cast %197 : vector<16x32xbf16> to vector<2x8x32xbf16>
    %199 = vector.extract_strided_slice %43 {offsets = [0, 192], sizes = [32, 32], strides = [1, 1]} : vector<32x512xbf16> to vector<32x32xbf16>
    %200 = vector.shape_cast %199 : vector<32x32xbf16> to vector<2x16x32xbf16>
    %201 = vector.extract_strided_slice %43 {offsets = [0, 448], sizes = [32, 32], strides = [1, 1]} : vector<32x512xbf16> to vector<32x32xbf16>
    %202 = vector.shape_cast %201 : vector<32x32xbf16> to vector<2x16x32xbf16>
    "tpu.trace_start"() <{level = 10 : i32, message = "bmk,bnk->bmn"}> : () -> ()
    %cst_59 = arith.constant dense<0.000000e+00> : vector<2x8x16xf32>
    %203 = tpu.matmul %198, %200, %cst_59 {dimension_numbers = #tpu.dot_dimension_numbers<[2], [2], [1], [1], [0, 0, 0, 1, 1, 1], [0], [0]>} : vector<2x8x32xbf16>, vector<2x16x32xbf16>, vector<2x8x16xf32> -> vector<2x8x16xf32>
    "tpu.trace_stop"() : () -> ()
    %cst_60 = arith.constant 0.176776692 : f32
    %204 = vector.broadcast %cst_60 : f32 to vector<2x8x16xf32>
    %205 = arith.mulf %203, %204 : vector<2x8x16xf32>
    %cst_61 = arith.constant -1.000000e+30 : f32
    %206 = vector.shape_cast %46 : vector<2x1x16xi1> to vector<2x1x16xi1>
    %207 = vector.broadcast %206 : vector<2x1x16xi1> to vector<2x8x16xi1>
    %208 = vector.broadcast %cst_61 : f32 to vector<2x8x16xf32>
    %209 = arith.select %207, %208, %205 : vector<2x8x16xi1>, vector<2x8x16xf32>
    %cst_62 = arith.constant dense<0xFF800000> : vector<2x8xf32>
    %210 = vector.multi_reduction <maximumf>, %209, %cst_62 [2] : vector<2x8x16xf32> to vector<2x8xf32>
    %211 = vector.shape_cast %210 : vector<2x8xf32> to vector<2x8x1xf32>
    %212 = vector.broadcast %211 : vector<2x8x1xf32> to vector<2x8x16xf32>
    %213 = arith.subf %209, %212 : vector<2x8x16xf32>
    %214 = math.exp %213 : vector<2x8x16xf32>
    %cst_63 = arith.constant dense<0.000000e+00> : vector<2x8xf32>
    %215 = vector.multi_reduction <add>, %214, %cst_63 [2] : vector<2x8x16xf32> to vector<2x8xf32>
    %216 = vector.shape_cast %215 : vector<2x8xf32> to vector<2x8x1xf32>
    %217 = tpu.reciprocal %216 {approx = true} : vector<2x8x1xf32> -> vector<2x8x1xf32>
    %218 = vector.broadcast %217 : vector<2x8x1xf32> to vector<2x8x16xf32>
    %219 = arith.mulf %214, %218 : vector<2x8x16xf32>
    %220 = arith.truncf %219 : vector<2x8x16xf32> to vector<2x8x16xbf16>
    "tpu.trace_start"() <{level = 10 : i32, message = "bmn,bnk->bmk"}> : () -> ()
    %cst_64 = arith.constant dense<0.000000e+00> : vector<2x8x32xf32>
    %221 = tpu.matmul %220, %202, %cst_64 {dimension_numbers = #tpu.dot_dimension_numbers<[2], [1], [1], [2], [0, 0, 0, 1, 1, 2], [0], [0]>} : vector<2x8x16xbf16>, vector<2x16x32xbf16>, vector<2x8x32xf32> -> vector<2x8x32xf32>
    "tpu.trace_stop"() : () -> ()
    %222 = vector.extract_strided_slice %42 {offsets = [0, 224], sizes = [16, 32], strides = [1, 1]} : vector<16x256xbf16> to vector<16x32xbf16>
    %223 = vector.shape_cast %222 : vector<16x32xbf16> to vector<2x8x32xbf16>
    %224 = vector.extract_strided_slice %43 {offsets = [0, 224], sizes = [32, 32], strides = [1, 1]} : vector<32x512xbf16> to vector<32x32xbf16>
    %225 = vector.shape_cast %224 : vector<32x32xbf16> to vector<2x16x32xbf16>
    %226 = vector.extract_strided_slice %43 {offsets = [0, 480], sizes = [32, 32], strides = [1, 1]} : vector<32x512xbf16> to vector<32x32xbf16>
    %227 = vector.shape_cast %226 : vector<32x32xbf16> to vector<2x16x32xbf16>
    "tpu.trace_start"() <{level = 10 : i32, message = "bmk,bnk->bmn"}> : () -> ()
    %cst_65 = arith.constant dense<0.000000e+00> : vector<2x8x16xf32>
    %228 = tpu.matmul %223, %225, %cst_65 {dimension_numbers = #tpu.dot_dimension_numbers<[2], [2], [1], [1], [0, 0, 0, 1, 1, 1], [0], [0]>} : vector<2x8x32xbf16>, vector<2x16x32xbf16>, vector<2x8x16xf32> -> vector<2x8x16xf32>
    "tpu.trace_stop"() : () -> ()
    %cst_66 = arith.constant 0.176776692 : f32
    %229 = vector.broadcast %cst_66 : f32 to vector<2x8x16xf32>
    %230 = arith.mulf %228, %229 : vector<2x8x16xf32>
    %cst_67 = arith.constant -1.000000e+30 : f32
    %231 = vector.shape_cast %46 : vector<2x1x16xi1> to vector<2x1x16xi1>
    %232 = vector.broadcast %231 : vector<2x1x16xi1> to vector<2x8x16xi1>
    %233 = vector.broadcast %cst_67 : f32 to vector<2x8x16xf32>
    %234 = arith.select %232, %233, %230 : vector<2x8x16xi1>, vector<2x8x16xf32>
    %cst_68 = arith.constant dense<0xFF800000> : vector<2x8xf32>
    %235 = vector.multi_reduction <maximumf>, %234, %cst_68 [2] : vector<2x8x16xf32> to vector<2x8xf32>
    %236 = vector.shape_cast %235 : vector<2x8xf32> to vector<2x8x1xf32>
    %237 = vector.broadcast %236 : vector<2x8x1xf32> to vector<2x8x16xf32>
    %238 = arith.subf %234, %237 : vector<2x8x16xf32>
    %239 = math.exp %238 : vector<2x8x16xf32>
    %cst_69 = arith.constant dense<0.000000e+00> : vector<2x8xf32>
    %240 = vector.multi_reduction <add>, %239, %cst_69 [2] : vector<2x8x16xf32> to vector<2x8xf32>
    %241 = vector.shape_cast %240 : vector<2x8xf32> to vector<2x8x1xf32>
    %242 = tpu.reciprocal %241 {approx = true} : vector<2x8x1xf32> -> vector<2x8x1xf32>
    %243 = vector.broadcast %242 : vector<2x8x1xf32> to vector<2x8x16xf32>
    %244 = arith.mulf %239, %243 : vector<2x8x16xf32>
    %245 = arith.truncf %244 : vector<2x8x16xf32> to vector<2x8x16xbf16>
    "tpu.trace_start"() <{level = 10 : i32, message = "bmn,bnk->bmk"}> : () -> ()
    %cst_70 = arith.constant dense<0.000000e+00> : vector<2x8x32xf32>
    %246 = tpu.matmul %245, %227, %cst_70 {dimension_numbers = #tpu.dot_dimension_numbers<[2], [1], [1], [2], [0, 0, 0, 1, 1, 2], [0], [0]>} : vector<2x8x16xbf16>, vector<2x16x32xbf16>, vector<2x8x32xf32> -> vector<2x8x32xf32>
    "tpu.trace_stop"() : () -> ()
    %247 = tpu.concatenate %71, %96, %121, %146, %171, %196, %221, %246 in 2 : vector<2x8x32xf32>, vector<2x8x32xf32>, vector<2x8x32xf32>, vector<2x8x32xf32>, vector<2x8x32xf32>, vector<2x8x32xf32>, vector<2x8x32xf32>, vector<2x8x32xf32> -> vector<2x8x256xf32>
    %248 = vector.shape_cast %247 : vector<2x8x256xf32> to vector<16x256xf32>
    %249 = arith.truncf %248 : vector<16x256xf32> to vector<16x256xbf16>
    %c0_71 = arith.constant 0 : index
    %c0_72 = arith.constant 0 : index
    %250 = vector.load %arg11[%c0_71, %c0_72] : memref<256x256xbf16, #tpu.memory_space<vmem>>, vector<256x256xbf16>
    %cst_73 = arith.constant dense<0.000000e+00> : vector<16x256xf32>
    %251 = tpu.matmul %249, %250, %cst_73 {dimension_numbers = #tpu.dot_dimension_numbers<[1], [0], [0], [1], [0, 0, 1, 1], [], []>} : vector<16x256xbf16>, vector<256x256xbf16>, vector<16x256xf32> -> vector<16x256xf32>
    %c0_74 = arith.constant 0 : index
    %c0_75 = arith.constant 0 : index
    %252 = vector.load %arg12[%c0_74, %c0_75] : memref<1x256xf32, #tpu.memory_space<vmem>>, vector<1x256xf32>
    %253 = vector.broadcast %252 : vector<1x256xf32> to vector<16x256xf32>
    %254 = arith.addf %251, %253 : vector<16x256xf32>
    %c0_76 = arith.constant 0 : index
    %c0_77 = arith.constant 0 : index
    %255 = vector.load %arg13[%c0_76, %c0_77] : memref<1x256xf32, #tpu.memory_space<vmem>>, vector<1x256xf32>
    %c0_78 = arith.constant 0 : index
    %c0_79 = arith.constant 0 : index
    %256 = vector.load %arg14[%c0_78, %c0_79] : memref<1x256xf32, #tpu.memory_space<vmem>>, vector<1x256xf32>
    %cst_80 = arith.constant dense<0.000000e+00> : vector<16xf32>
    %257 = vector.multi_reduction <add>, %254, %cst_80 [1] : vector<16x256xf32> to vector<16xf32>
    %258 = vector.shape_cast %257 : vector<16xf32> to vector<16x1xf32>
    %cst_81 = arith.constant 2.560000e+02 : f32
    %259 = vector.broadcast %cst_81 : f32 to vector<16x1xf32>
    %260 = arith.divf %258, %259 : vector<16x1xf32>
    %261 = vector.broadcast %260 : vector<16x1xf32> to vector<16x256xf32>
    %262 = arith.subf %254, %261 : vector<16x256xf32>
    %263 = arith.mulf %262, %262 : vector<16x256xf32>
    %cst_82 = arith.constant dense<0.000000e+00> : vector<16xf32>
    %264 = vector.multi_reduction <add>, %263, %cst_82 [1] : vector<16x256xf32> to vector<16xf32>
    %265 = vector.shape_cast %264 : vector<16xf32> to vector<16x1xf32>
    %cst_83 = arith.constant 2.560000e+02 : f32
    %266 = vector.broadcast %cst_83 : f32 to vector<16x1xf32>
    %267 = arith.divf %265, %266 : vector<16x1xf32>
    %cst_84 = arith.constant 9.99999974E-6 : f32
    %268 = vector.broadcast %cst_84 : f32 to vector<16x1xf32>
    %269 = arith.addf %267, %268 : vector<16x1xf32>
    %270 = math.rsqrt %269 : vector<16x1xf32>
    %271 = vector.broadcast %270 : vector<16x1xf32> to vector<16x256xf32>
    %272 = arith.mulf %262, %271 : vector<16x256xf32>
    %273 = vector.broadcast %255 : vector<1x256xf32> to vector<16x256xf32>
    %274 = arith.mulf %272, %273 : vector<16x256xf32>
    %275 = vector.broadcast %256 : vector<1x256xf32> to vector<16x256xf32>
    %276 = arith.addf %274, %275 : vector<16x256xf32>
    %277 = arith.truncf %276 : vector<16x256xf32> to vector<16x256xbf16>
    %c0_85 = arith.constant 0 : index
    %c0_86 = arith.constant 0 : index
    %278 = vector.load %arg15[%c0_85, %c0_86] : memref<256x1024xbf16, #tpu.memory_space<vmem>>, vector<256x1024xbf16>
    %cst_87 = arith.constant dense<0.000000e+00> : vector<16x1024xf32>
    %279 = tpu.matmul %277, %278, %cst_87 {dimension_numbers = #tpu.dot_dimension_numbers<[1], [0], [0], [1], [0, 0, 1, 1], [], []>} : vector<16x256xbf16>, vector<256x1024xbf16>, vector<16x1024xf32> -> vector<16x1024xf32>
    %c0_88 = arith.constant 0 : index
    %c0_89 = arith.constant 0 : index
    %280 = vector.load %arg16[%c0_88, %c0_89] : memref<1x1024xf32, #tpu.memory_space<vmem>>, vector<1x1024xf32>
    %281 = vector.broadcast %280 : vector<1x1024xf32> to vector<16x1024xf32>
    %282 = arith.addf %279, %281 : vector<16x1024xf32>
    %283 = arith.mulf %282, %282 : vector<16x1024xf32>
    %284 = arith.mulf %282, %283 : vector<16x1024xf32>
    %cst_90 = arith.constant 4.471500e-02 : f32
    %285 = vector.broadcast %cst_90 : f32 to vector<16x1024xf32>
    %286 = arith.mulf %285, %284 : vector<16x1024xf32>
    %287 = arith.addf %282, %286 : vector<16x1024xf32>
    %cst_91 = arith.constant 0.797884583 : f32
    %288 = vector.broadcast %cst_91 : f32 to vector<16x1024xf32>
    %289 = arith.mulf %288, %287 : vector<16x1024xf32>
    %290 = math.tanh %289 : vector<16x1024xf32>
    %cst_92 = arith.constant 1.000000e+00 : f32
    %291 = vector.broadcast %cst_92 : f32 to vector<16x1024xf32>
    %292 = arith.addf %291, %290 : vector<16x1024xf32>
    %cst_93 = arith.constant 5.000000e-01 : f32
    %293 = vector.broadcast %cst_93 : f32 to vector<16x1024xf32>
    %294 = arith.mulf %293, %292 : vector<16x1024xf32>
    %295 = arith.mulf %282, %294 : vector<16x1024xf32>
    %296 = arith.truncf %295 : vector<16x1024xf32> to vector<16x1024xbf16>
    %c0_94 = arith.constant 0 : index
    %c0_95 = arith.constant 0 : index
    %297 = vector.load %arg17[%c0_94, %c0_95] : memref<1024x256xbf16, #tpu.memory_space<vmem>>, vector<1024x256xbf16>
    %cst_96 = arith.constant dense<0.000000e+00> : vector<16x256xf32>
    %298 = tpu.matmul %296, %297, %cst_96 {dimension_numbers = #tpu.dot_dimension_numbers<[1], [0], [0], [1], [0, 0, 1, 1], [], []>} : vector<16x1024xbf16>, vector<1024x256xbf16>, vector<16x256xf32> -> vector<16x256xf32>
    %c0_97 = arith.constant 0 : index
    %c0_98 = arith.constant 0 : index
    %299 = vector.load %arg18[%c0_97, %c0_98] : memref<1x256xf32, #tpu.memory_space<vmem>>, vector<1x256xf32>
    %300 = vector.broadcast %299 : vector<1x256xf32> to vector<16x256xf32>
    %301 = arith.addf %298, %300 : vector<16x256xf32>
    %302 = arith.addf %301, %276 : vector<16x256xf32>
    %c0_99 = arith.constant 0 : index
    %c0_100 = arith.constant 0 : index
    %303 = vector.load %arg19[%c0_99, %c0_100] : memref<1x256xf32, #tpu.memory_space<vmem>>, vector<1x256xf32>
    %c0_101 = arith.constant 0 : index
    %c0_102 = arith.constant 0 : index
    %304 = vector.load %arg20[%c0_101, %c0_102] : memref<1x256xf32, #tpu.memory_space<vmem>>, vector<1x256xf32>
    %cst_103 = arith.constant dense<0.000000e+00> : vector<16xf32>
    %305 = vector.multi_reduction <add>, %302, %cst_103 [1] : vector<16x256xf32> to vector<16xf32>
    %306 = vector.shape_cast %305 : vector<16xf32> to vector<16x1xf32>
    %cst_104 = arith.constant 2.560000e+02 : f32
    %307 = vector.broadcast %cst_104 : f32 to vector<16x1xf32>
    %308 = arith.divf %306, %307 : vector<16x1xf32>
    %309 = vector.broadcast %308 : vector<16x1xf32> to vector<16x256xf32>
    %310 = arith.subf %302, %309 : vector<16x256xf32>
    %311 = arith.mulf %310, %310 : vector<16x256xf32>
    %cst_105 = arith.constant dense<0.000000e+00> : vector<16xf32>
    %312 = vector.multi_reduction <add>, %311, %cst_105 [1] : vector<16x256xf32> to vector<16xf32>
    %313 = vector.shape_cast %312 : vector<16xf32> to vector<16x1xf32>
    %cst_106 = arith.constant 2.560000e+02 : f32
    %314 = vector.broadcast %cst_106 : f32 to vector<16x1xf32>
    %315 = arith.divf %313, %314 : vector<16x1xf32>
    %cst_107 = arith.constant 9.99999974E-6 : f32
    %316 = vector.broadcast %cst_107 : f32 to vector<16x1xf32>
    %317 = arith.addf %315, %316 : vector<16x1xf32>
    %318 = math.rsqrt %317 : vector<16x1xf32>
    %319 = vector.broadcast %318 : vector<16x1xf32> to vector<16x256xf32>
    %320 = arith.mulf %310, %319 : vector<16x256xf32>
    %321 = vector.broadcast %303 : vector<1x256xf32> to vector<16x256xf32>
    %322 = arith.mulf %320, %321 : vector<16x256xf32>
    %323 = vector.broadcast %304 : vector<1x256xf32> to vector<16x256xf32>
    %324 = arith.addf %322, %323 : vector<16x256xf32>
    %325 = vector.shape_cast %324 : vector<16x256xf32> to vector<2x8x256xf32>
    %c0_108 = arith.constant 0 : index
    %c0_109 = arith.constant 0 : index
    %c0_110 = arith.constant 0 : index
    %326 = vector.load %arg29[%c0_108, %c0_109, %c0_110] : memref<2x8x256xf32, #tpu.memory_space<vmem>>, vector<2x8x256xf32>
    tpu.vector_store %arg29[%c0_108, %c0_109, %c0_110], %325 {strides = array<i32>} : memref<2x8x256xf32, #tpu.memory_space<vmem>>, vector<2x8x256xf32>,
    %327 = arith.truncf %324 : vector<16x256xf32> to vector<16x256xbf16>
    %c0_111 = arith.constant 0 : index
    %c0_112 = arith.constant 0 : index
    %328 = vector.load %arg21[%c0_111, %c0_112] : memref<256x512xbf16, #tpu.memory_space<vmem>>, vector<256x512xbf16>
    %cst_113 = arith.constant dense<0.000000e+00> : vector<16x512xf32>
    %329 = tpu.matmul %327, %328, %cst_113 {dimension_numbers = #tpu.dot_dimension_numbers<[1], [0], [0], [1], [0, 0, 1, 1], [], []>} : vector<16x256xbf16>, vector<256x512xbf16>, vector<16x512xf32> -> vector<16x512xf32>
    %c0_114 = arith.constant 0 : index
    %c0_115 = arith.constant 0 : index
    %330 = vector.load %arg22[%c0_114, %c0_115] : memref<1x512xf32, #tpu.memory_space<vmem>>, vector<1x512xf32>
    %331 = vector.broadcast %330 : vector<1x512xf32> to vector<16x512xf32>
    %332 = arith.addf %329, %331 : vector<16x512xf32>
    %cst_116 = arith.constant 0.000000e+00 : f32
    %333 = vector.broadcast %cst_116 : f32 to vector<16x512xf32>
    %334 = arith.cmpf ogt, %332, %333 : vector<16x512xf32>
    %cst_117 = arith.constant 0.000000e+00 : f32
    %335 = vector.broadcast %cst_117 : f32 to vector<16x512xf32>
    %336 = arith.minimumf %332, %335 : vector<16x512xf32>
    %337 = math.exp %336 : vector<16x512xf32>
    %cst_118 = arith.constant 1.000000e+00 : f32
    %338 = vector.broadcast %cst_118 : f32 to vector<16x512xf32>
    %339 = arith.subf %337, %338 : vector<16x512xf32>
    %340 = arith.select %334, %332, %339 : vector<16x512xi1>, vector<16x512xf32>
    %341 = arith.truncf %340 : vector<16x512xf32> to vector<16x512xbf16>
    %c0_119 = arith.constant 0 : index
    %c0_120 = arith.constant 0 : index
    %342 = vector.load %arg23[%c0_119, %c0_120] : memref<512x32xbf16, #tpu.memory_space<vmem>>, vector<512x32xbf16>
    %cst_121 = arith.constant dense<0.000000e+00> : vector<16x32xf32>
    %343 = tpu.matmul %341, %342, %cst_121 {dimension_numbers = #tpu.dot_dimension_numbers<[1], [0], [0], [1], [0, 0, 1, 1], [], []>} : vector<16x512xbf16>, vector<512x32xbf16>, vector<16x32xf32> -> vector<16x32xf32>
    %c0_122 = arith.constant 0 : index
    %c0_123 = arith.constant 0 : index
    %344 = vector.load %arg24[%c0_122, %c0_123] : memref<1x32xf32, #tpu.memory_space<vmem>>, vector<1x32xf32>
    %345 = vector.broadcast %344 : vector<1x32xf32> to vector<16x32xf32>
    %346 = arith.addf %343, %345 : vector<16x32xf32>
    %347 = vector.shape_cast %346 : vector<16x32xf32> to vector<2x8x32xf32>
    %c0_124 = arith.constant 0 : index
    %c0_125 = arith.constant 0 : index
    %c0_126 = arith.constant 0 : index
    %348 = vector.load %arg4[%c0_124, %c0_125, %c0_126] : memref<2x1x32xf32, #tpu.memory_space<vmem>>, vector<2x1x32xf32>
    %349 = vector.broadcast %348 : vector<2x1x32xf32> to vector<2x8x32xf32>
    %350 = arith.addf %347, %349 : vector<2x8x32xf32>
    %c0_127 = arith.constant 0 : index
    %c0_128 = arith.constant 0 : index
    %351 = vector.load %arg25[%c0_127, %c0_128] : memref<256x64xbf16, #tpu.memory_space<vmem>>, vector<256x64xbf16>
    %cst_129 = arith.constant dense<0.000000e+00> : vector<16x64xf32>
    %352 = tpu.matmul %327, %351, %cst_129 {dimension_numbers = #tpu.dot_dimension_numbers<[1], [0], [0], [1], [0, 0, 1, 1], [], []>} : vector<16x256xbf16>, vector<256x64xbf16>, vector<16x64xf32> -> vector<16x64xf32>
    %c0_130 = arith.constant 0 : index
    %c0_131 = arith.constant 0 : index
    %353 = vector.load %arg26[%c0_130, %c0_131] : memref<1x64xf32, #tpu.memory_space<vmem>>, vector<1x64xf32>
    %354 = vector.broadcast %353 : vector<1x64xf32> to vector<16x64xf32>
    %355 = arith.addf %352, %354 : vector<16x64xf32>
    %cst_132 = arith.constant 0.000000e+00 : f32
    %356 = vector.broadcast %cst_132 : f32 to vector<16x64xf32>
    %357 = arith.cmpf ogt, %355, %356 : vector<16x64xf32>
    %cst_133 = arith.constant 0.000000e+00 : f32
    %358 = vector.broadcast %cst_133 : f32 to vector<16x64xf32>
    %359 = arith.minimumf %355, %358 : vector<16x64xf32>
    %360 = math.exp %359 : vector<16x64xf32>
    %cst_134 = arith.constant 1.000000e+00 : f32
    %361 = vector.broadcast %cst_134 : f32 to vector<16x64xf32>
    %362 = arith.subf %360, %361 : vector<16x64xf32>
    %363 = arith.select %357, %355, %362 : vector<16x64xi1>, vector<16x64xf32>
    %c0_135 = arith.constant 0 : index
    %c0_136 = arith.constant 0 : index
    %364 = vector.load %arg27[%c0_135, %c0_136] : memref<1x64xf32, #tpu.memory_space<vmem>>, vector<1x64xf32>
    %365 = vector.broadcast %364 : vector<1x64xf32> to vector<16x64xf32>
    %366 = arith.mulf %363, %365 : vector<16x64xf32>
    %cst_137 = arith.constant dense<0.000000e+00> : vector<16xf32>
    %367 = vector.multi_reduction <add>, %366, %cst_137 [1] : vector<16x64xf32> to vector<16xf32>
    %368 = vector.shape_cast %367 : vector<16xf32> to vector<16x1xf32>
    %c0_138 = arith.constant 0 : index
    %c0_139 = arith.constant 0 : index
    %369 = vector.load %arg28[%c0_138, %c0_139] : memref<1x1xf32, #tpu.memory_space<vmem>>, vector<1x1xf32>
    %370 = vector.broadcast %369 : vector<1x1xf32> to vector<16x1xf32>
    %371 = arith.addf %368, %370 : vector<16x1xf32>
    %372 = vector.shape_cast %371 : vector<16x1xf32> to vector<2x8x1xf32>
    %cst_140 = arith.constant 0.000000e+00 : f32
    %373 = vector.broadcast %cst_140 : f32 to vector<2x8x95xf32>
    %374 = tpu.concatenate %350, %372, %373 in 2 : vector<2x8x32xf32>, vector<2x8x1xf32>, vector<2x8x95xf32> -> vector<2x8x128xf32>
    %c0_141 = arith.constant 0 : index
    %c0_142 = arith.constant 0 : index
    %c0_143 = arith.constant 0 : index
    %375 = vector.load %arg30[%c0_141, %c0_142, %c0_143] : memref<2x8x128xf32, #tpu.memory_space<vmem>>, vector<2x8x128xf32>
    tpu.vector_store %arg30[%c0_141, %c0_142, %c0_143], %374 {strides = array<i32>} : memref<2x8x128xf32, #tpu.memory_space<vmem>>, vector<2x8x128xf32>,
    return
  }
  func.func @transform_0(%arg0: i32, %arg1: memref<1xi32, #tpu.memory_space<smem>>) -> (i32, i32, i32) {
    %c0_i32 = arith.constant 0 : i32
    %c0_i32_0 = arith.constant 0 : i32
    %c0_i32_1 = arith.constant 0 : i32
    return %arg0, %c0_i32, %c0_i32_0 : i32, i32, i32
  }
  func.func @transform_1(%arg0: i32, %arg1: memref<1xi32, #tpu.memory_space<smem>>) -> (i32, i32, i32) {
    %c0_i32 = arith.constant 0 : i32
    %c0_i32_0 = arith.constant 0 : i32
    %c0_i32_1 = arith.constant 0 : i32
    return %arg0, %c0_i32, %c0_i32_0 : i32, i32, i32
  }
  func.func @transform_2(%arg0: i32, %arg1: memref<1xi32, #tpu.memory_space<smem>>) -> (i32, i32, i32) {
    %c0_i32 = arith.constant 0 : i32
    %c0_i32_0 = arith.constant 0 : i32
    %c0_i32_1 = arith.constant 0 : i32
    return %arg0, %c0_i32, %c0_i32_0 : i32, i32, i32
  }
  func.func @transform_3(%arg0: i32, %arg1: memref<1xi32, #tpu.memory_space<smem>>) -> (i32, i32) {
    %c0_i32 = arith.constant 0 : i32
    %c0_i32_0 = arith.constant 0 : i32
    %c0_i32_1 = arith.constant 0 : i32
    return %c0_i32, %c0_i32_0 : i32, i32
  }
  func.func @transform_4(%arg0: i32, %arg1: memref<1xi32, #tpu.memory_space<smem>>) -> (i32, i32) {
    %c0_i32 = arith.constant 0 : i32
    %c0_i32_0 = arith.constant 0 : i32
    %c0_i32_1 = arith.constant 0 : i32
    return %c0_i32, %c0_i32_0 : i32, i32
  }
  func.func @transform_5(%arg0: i32, %arg1: memref<1xi32, #tpu.memory_space<smem>>) -> (i32, i32) {
    %c0_i32 = arith.constant 0 : i32
    %c0_i32_0 = arith.constant 0 : i32
    %c0_i32_1 = arith.constant 0 : i32
    return %c0_i32, %c0_i32_0 : i32, i32
  }
  func.func @transform_6(%arg0: i32, %arg1: memref<1xi32, #tpu.memory_space<smem>>) -> (i32, i32) {
    %c0_i32 = arith.constant 0 : i32
    %c0_i32_0 = arith.constant 0 : i32
    %c0_i32_1 = arith.constant 0 : i32
    return %c0_i32, %c0_i32_0 : i32, i32
  }
  func.func @transform_7(%arg0: i32, %arg1: memref<1xi32, #tpu.memory_space<smem>>) -> (i32, i32) {
    %c0_i32 = arith.constant 0 : i32
    %c0_i32_0 = arith.constant 0 : i32
    %c0_i32_1 = arith.constant 0 : i32
    return %c0_i32, %c0_i32_0 : i32, i32
  }
  func.func @transform_8(%arg0: i32, %arg1: memref<1xi32, #tpu.memory_space<smem>>) -> (i32, i32) {
    %c0_i32 = arith.constant 0 : i32
    %c0_i32_0 = arith.constant 0 : i32
    %c0_i32_1 = arith.constant 0 : i32
    return %c0_i32, %c0_i32_0 : i32, i32
  }
  func.func @transform_9(%arg0: i32, %arg1: memref<1xi32, #tpu.memory_space<smem>>) -> (i32, i32) {
    %c0_i32 = arith.constant 0 : i32
    %c0_i32_0 = arith.constant 0 : i32
    %c0_i32_1 = arith.constant 0 : i32
    return %c0_i32, %c0_i32_0 : i32, i32
  }
  func.func @transform_10(%arg0: i32, %arg1: memref<1xi32, #tpu.memory_space<smem>>) -> (i32, i32) {
    %c0_i32 = arith.constant 0 : i32
    %c0_i32_0 = arith.constant 0 : i32
    %c0_i32_1 = arith.constant 0 : i32
    return %c0_i32, %c0_i32_0 : i32, i32
  }
  func.func @transform_11(%arg0: i32, %arg1: memref<1xi32, #tpu.memory_space<smem>>) -> (i32, i32) {
    %c0_i32 = arith.constant 0 : i32
    %c0_i32_0 = arith.constant 0 : i32
    %c0_i32_1 = arith.constant 0 : i32
    return %c0_i32, %c0_i32_0 : i32, i32
  }
  func.func @transform_12(%arg0: i32, %arg1: memref<1xi32, #tpu.memory_space<smem>>) -> (i32, i32) {
    %c0_i32 = arith.constant 0 : i32
    %c0_i32_0 = arith.constant 0 : i32
    %c0_i32_1 = arith.constant 0 : i32
    return %c0_i32, %c0_i32_0 : i32, i32
  }
  func.func @transform_13(%arg0: i32, %arg1: memref<1xi32, #tpu.memory_space<smem>>) -> (i32, i32) {
    %c0_i32 = arith.constant 0 : i32
    %c0_i32_0 = arith.constant 0 : i32
    %c0_i32_1 = arith.constant 0 : i32
    return %c0_i32, %c0_i32_0 : i32, i32
  }
  func.func @transform_14(%arg0: i32, %arg1: memref<1xi32, #tpu.memory_space<smem>>) -> (i32, i32) {
    %c0_i32 = arith.constant 0 : i32
    %c0_i32_0 = arith.constant 0 : i32
    %c0_i32_1 = arith.constant 0 : i32
    return %c0_i32, %c0_i32_0 : i32, i32
  }
  func.func @transform_15(%arg0: i32, %arg1: memref<1xi32, #tpu.memory_space<smem>>) -> (i32, i32) {
    %c0_i32 = arith.constant 0 : i32
    %c0_i32_0 = arith.constant 0 : i32
    %c0_i32_1 = arith.constant 0 : i32
    return %c0_i32, %c0_i32_0 : i32, i32
  }
  func.func @transform_16(%arg0: i32, %arg1: memref<1xi32, #tpu.memory_space<smem>>) -> (i32, i32) {
    %c0_i32 = arith.constant 0 : i32
    %c0_i32_0 = arith.constant 0 : i32
    %c0_i32_1 = arith.constant 0 : i32
    return %c0_i32, %c0_i32_0 : i32, i32
  }
  func.func @transform_17(%arg0: i32, %arg1: memref<1xi32, #tpu.memory_space<smem>>) -> (i32, i32) {
    %c0_i32 = arith.constant 0 : i32
    %c0_i32_0 = arith.constant 0 : i32
    %c0_i32_1 = arith.constant 0 : i32
    return %c0_i32, %c0_i32_0 : i32, i32
  }
  func.func @transform_18(%arg0: i32, %arg1: memref<1xi32, #tpu.memory_space<smem>>) -> (i32, i32) {
    %c0_i32 = arith.constant 0 : i32
    %c0_i32_0 = arith.constant 0 : i32
    %c0_i32_1 = arith.constant 0 : i32
    return %c0_i32, %c0_i32_0 : i32, i32
  }
  func.func @transform_19(%arg0: i32, %arg1: memref<1xi32, #tpu.memory_space<smem>>) -> (i32, i32) {
    %c0_i32 = arith.constant 0 : i32
    %c0_i32_0 = arith.constant 0 : i32
    %c0_i32_1 = arith.constant 0 : i32
    return %c0_i32, %c0_i32_0 : i32, i32
  }
  func.func @transform_20(%arg0: i32, %arg1: memref<1xi32, #tpu.memory_space<smem>>) -> (i32, i32) {
    %c0_i32 = arith.constant 0 : i32
    %c0_i32_0 = arith.constant 0 : i32
    %c0_i32_1 = arith.constant 0 : i32
    return %c0_i32, %c0_i32_0 : i32, i32
  }
  func.func @transform_21(%arg0: i32, %arg1: memref<1xi32, #tpu.memory_space<smem>>) -> (i32, i32) {
    %c0_i32 = arith.constant 0 : i32
    %c0_i32_0 = arith.constant 0 : i32
    %c0_i32_1 = arith.constant 0 : i32
    return %c0_i32, %c0_i32_0 : i32, i32
  }
  func.func @transform_22(%arg0: i32, %arg1: memref<1xi32, #tpu.memory_space<smem>>) -> (i32, i32) {
    %c0_i32 = arith.constant 0 : i32
    %c0_i32_0 = arith.constant 0 : i32
    %c0_i32_1 = arith.constant 0 : i32
    return %c0_i32, %c0_i32_0 : i32, i32
  }
  func.func @transform_23(%arg0: i32, %arg1: memref<1xi32, #tpu.memory_space<smem>>) -> (i32, i32) {
    %c0_i32 = arith.constant 0 : i32
    %c0_i32_0 = arith.constant 0 : i32
    %c0_i32_1 = arith.constant 0 : i32
    return %c0_i32, %c0_i32_0 : i32, i32
  }
  func.func @transform_24(%arg0: i32, %arg1: memref<1xi32, #tpu.memory_space<smem>>) -> (i32, i32) {
    %c0_i32 = arith.constant 0 : i32
    %c0_i32_0 = arith.constant 0 : i32
    %c0_i32_1 = arith.constant 0 : i32
    return %c0_i32, %c0_i32_0 : i32, i32
  }
  func.func @transform_25(%arg0: i32, %arg1: memref<1xi32, #tpu.memory_space<smem>>) -> (i32, i32) {
    %c0_i32 = arith.constant 0 : i32
    %c0_i32_0 = arith.constant 0 : i32
    %c0_i32_1 = arith.constant 0 : i32
    return %c0_i32, %c0_i32_0 : i32, i32
  }
  func.func @transform_26(%arg0: i32, %arg1: memref<1xi32, #tpu.memory_space<smem>>) -> (i32, i32) {
    %c0_i32 = arith.constant 0 : i32
    %c0_i32_0 = arith.constant 0 : i32
    %c0_i32_1 = arith.constant 0 : i32
    return %c0_i32, %c0_i32_0 : i32, i32
  }
  func.func @transform_27(%arg0: i32, %arg1: memref<1xi32, #tpu.memory_space<smem>>) -> (i32, i32, i32) {
    %c0_i32 = arith.constant 0 : i32
    %c0_i32_0 = arith.constant 0 : i32
    %c0_i32_1 = arith.constant 0 : i32
    return %arg0, %c0_i32, %c0_i32_0 : i32, i32, i32
  }
  func.func @transform_28(%arg0: i32, %arg1: memref<1xi32, #tpu.memory_space<smem>>) -> (i32, i32, i32) {
    %c0_i32 = arith.constant 0 : i32
    %c0_i32_0 = arith.constant 0 : i32
    %c0_i32_1 = arith.constant 0 : i32
    return %arg0, %c0_i32, %c0_i32_0 : i32, i32, i32
  }
}

</mosaic_0001>

<bundles_post_ra>
// kernel: tpu_custom_call.1
= control target key start
LH: loop header
LB: loop body
LE: loop exit
PB: predicated region body
PF: predicated region fallthrough
CT: control target
= control target key end

     0   :  { %s8855_s6 = smov 1   ;;  %s8856_s10 = smov 2   ;;  %s10077_s0 = inlined_call_operand.smem [shape: u32[30], index: -1, kind: input, shape index: {}] }
   0x1   :  { %s8924_s5 = sld [smem:[%s10077_s0]]   ;;  %s8857_s14 = smov 3  }
   0x2   :  { %s8929_s9 = sld [smem:[%s10077_s0 + %s8855_s6]]   ;;  %s8858_s18 = smov 4  }
   0x3   :  { %s8934_s13 = sld [smem:[%s10077_s0 + %s8856_s10]]   ;;  %s8859_s22 = smov 5  }
   0x4   :  { %s8939_s17 = sld [smem:[%s10077_s0 + %s8857_s14]]   ;;  %s8860_s26 = smov 6  }
   0x5   :  { %s8944_s21 = sld [smem:[%s10077_s0 + %s8858_s18]]   ;;  %s8861_s30 = smov 7  }
   0x6   :  { %s8949_s25 = sld [smem:[%s10077_s0 + %s8859_s22]]   ;;  %s8862_s4 = smov 8  }
   0x7   :  { %10089 = sst [smem:[#allocation50_spill]] %s8924_s5  ;;  %s8863_s10 = smov 9  }
   0x8   :  { %s8954_s29 = sld [smem:[%s10077_s0 + %s8860_s26]]   ;;  %s8864_s15 = smov 10  }
   0x9   :  { %10090 = sst [smem:[#allocation51_spill]] %s8934_s13  ;;  %s8865_s20 = smov 11  }
   0xa   :  { %10091 = sst [smem:[#allocation52_spill]] %s8939_s17  ;;  %s8866_s26 = smov 12  }
   0xb   :  { %s8959_s3 = sld [smem:[%s10077_s0 + %s8861_s30]]   ;;  %s8867_s1 = smov 13  }
   0xc   :  { %10092 = sst [smem:[#allocation53_spill]] %s8949_s25  ;;  %s8868_s7 = smov 14  }
   0xd   :  { %s8964_s8 = sld [smem:[%s10077_s0 + %s8862_s4]]   ;;  %s8870_s22 = smov 16  }
   0xe   :  { %s8969_s14 = sld [smem:[%s10077_s0 + %s8863_s10]]   ;;  %s8871_s28 = smov 17  }
   0xf   :  { %s8974_s19 = sld [smem:[%s10077_s0 + %s8864_s15]]   ;;  %s8869_s15 = smov 15  }
  0x10   :  { %s8979_s24 = sld [smem:[%s10077_s0 + %s8865_s20]]   ;;  %s8882_s23 = smov 28  }
  0x11   :  { %s8984_s30 = sld [smem:[%s10077_s0 + %s8866_s26]]  }
  0x12   :  { %s8989_s6 = sld [smem:[%s10077_s0 + %s8867_s1]]   ;;  %s8883_s1 = smov 29  }
  0x13   :  { %10093 = sst [smem:[#allocation54_spill]] %s8964_s8 }
  0x14   :  { %s8994_s12 = sld [smem:[%s10077_s0 + %s8868_s7]]   ;;  %s8872_s7 = smov 18  }
  0x15   :  { %s8999_s20 = sld [smem:[%s10077_s0 + %s8869_s15]]   ;;  %s8873_s15 = smov 19  }
  0x16   :  { %s9004_s27 = sld [smem:[%s10077_s0 + %s8870_s22]]   ;;  %s8874_s22 = smov 20  }
  0x17   :  { %s9009_s4 = sld [smem:[%s10077_s0 + %s8871_s28]]   ;;  %s8875_s28 = smov 21  }
  0x18   :  { %s9014_s17 = sld [smem:[%s10077_s0 + %s8872_s7]]   ;;  %s8876_s7 = smov 22  }
  0x19   :  { %s9019_s13 = sld [smem:[%s10077_s0 + %s8873_s15]]   ;;  %s8877_s15 = smov 23  }
  0x1a   :  { %s9024_s25 = sld [smem:[%s10077_s0 + %s8874_s22]]   ;;  %s8878_s22 = smov 24  }
  0x1b   :  { %10094 = sst [smem:[#allocation55_spill]] %s8999_s20 }
  0x1c   :  { %s9029_s5 = sld [smem:[%s10077_s0 + %s8875_s28]]   ;;  %s8879_s28 = smov 25  }
  0x1d   :  { %10095 = sst [smem:[#allocation56_spill]] %s9009_s4 }
  0x1e   :  { %s9034_s8 = sld [smem:[%s10077_s0 + %s8876_s7]]   ;;  %s8880_s7 = smov 26  }
  0x1f   :  { %10096 = sst [smem:[#allocation57_spill]] %s9019_s13 }
  0x20   :  { %s9039_s13 = sld [smem:[%s10077_s0 + %s8877_s15]]   ;;  %s8881_s15 = smov 27  }
  0x21   :  { %s9044_s4 = sld [smem:[%s10077_s0 + %s8878_s22]]  }
  0x22   :  { %10097 = sst [smem:[#allocation58_spill]] %s9029_s5 }
  0x23   :  { %s9049_s5 = sld [smem:[%s10077_s0 + %s8879_s28]]  }
  0x24   :  { %10098 = sst [smem:[#allocation59_spill]] %s9034_s8 }
  0x25   :  { %s9054_s8 = sld [smem:[%s10077_s0 + %s8880_s7]]  }
  0x26   :  { %s6733_s20 = sld [smem:[%s10077_s0 + %s8881_s15]]  }
  0x27   :  { %10099 = sst [smem:[#allocation60_spill]] %s9044_s4 }
  0x28   :  { %s9062_s4 = sld [smem:[%s10077_s0 + %s8882_s23]]  }
  0x29   :  { %10100 = sst [smem:[#allocation61_spill]] %s9049_s5 }
  0x2a   :  { %s9067_s5 = sld [smem:[%s10077_s0 + %s8883_s1]]  }
  0x2c   :  { %v66_v0 = vstv %s6733_s20 }
  0x2d   :  { %67 = vst [vmem:[#allocation4] sm:$0x1] %v66_v0 }
  0x2e   :  { %68 = vsyncpa [#allocation6], 0 }
  0x2f   :  { %69 = vsyncpa [#allocation9], 0 }
  0x30   :  { %70 = vsyncpa [#allocation12], 0 }
  0x31   :  { %71 = vsyncpa [#allocation15], 0 }
  0x32   :  { %72 = vsyncpa [#allocation18], 0 }
  0x33   :  { %73 = vsyncpa [#allocation21], 0 }
  0x34   :  { %74 = vsyncpa [#allocation24], 0 }
  0x35   :  { %75 = vsyncpa [#allocation27], 0 }
  0x36   :  { %76 = vsyncpa [#allocation30], 0 }
  0x37   :  { %77 = vsyncpa [#allocation33], 0 }
  0x38   :  { %78 = vsyncpa [#allocation7], 0 }
  0x39   :  { %79 = vsyncpa [#allocation37], 0  ;;  %s8884_s7 = smov [#allocation8]   ;;  %s8885_s10 = smov [#allocation11]  }
  0x3a   :  { %s102_s0 = sshll.u32 %s8884_s7, 4  ;;  %s126_s20 = sshll.u32 %s8885_s10, 4  ;;  %s103_s0 = int_to_ptr.vmem [resolvable:$true] %s102_s0  ;;  %s127_s20 = int_to_ptr.vmem [resolvable:$true] %s126_s20 }
  0x3b   :  { %s8369_s11 = scalar_lea.hbm %s8944_s21, 256 }
  0x3c   :  { %p8370_p0 = scmp.ne.s32.totalorder %s8944_s21, %s8369_s11  ;;  %p8373_p1 = scmp.lt.u32.totalorder %s8369_s11, %s8944_s21 }
  0x3e   :  { %p8375_p2 = pnand %p8373_p1, %p8370_p0 }
  0x40   :  { %8378 = shalt.err (!%p8375_p2)
}
  0x41   :  { %s8379_s15 = scalar_lea.vmem %s103_s0, 256  ;;  %p8384_p4 = scmp.lt.s32.totalorder %s103_s0, %s103_s0 }
  0x42   :  { %p8380_p3 = scmp.ne.s32.totalorder %s103_s0, %s8379_s15  ;;  %p8385_p5 = scmp.lt.s32.totalorder %s8379_s15, %s8379_s15 }
  0x44   :  { %p8386_p6 = por %p8385_p5, %p8384_p4 }
  0x46   :  { %p8387_p7 = pnand %p8386_p6, %p8380_p3 }
  0x48   :  { %8390 = shalt.err (!%p8387_p7)
}
  0x49   :  { %105 = dma.hbm_to_vmem [thread:$0]  %s8944_s21, 256, %s103_s0, [#allocation9]  }
  0x4a   :  { %s8391_s16 = scalar_lea.hbm %s8959_s3, 32 }
  0x4b   :  { %p8392_p8 = scmp.ne.s32.totalorder %s8959_s3, %s8391_s16  ;;  %p8395_p9 = scmp.lt.u32.totalorder %s8391_s16, %s8959_s3 }
  0x4d   :  { %p8397_p10 = pnand %p8395_p9, %p8392_p8 }
  0x4f   :  { %8400 = shalt.err (!%p8397_p10)
}
  0x50   :  { %s8401_s18 = scalar_lea.vmem %s127_s20, 32  ;;  %p8406_p12 = scmp.lt.s32.totalorder %s127_s20, %s127_s20 }
  0x51   :  { %p8402_p11 = scmp.ne.s32.totalorder %s127_s20, %s8401_s18  ;;  %p8407_p13 = scmp.lt.s32.totalorder %s8401_s18, %s8401_s18 }
  0x53   :  { %p8408_p0 = por %p8407_p13, %p8406_p12 }
  0x55   :  { %p8409_p1 = pnand %p8408_p0, %p8402_p11 }
  0x57   :  { %8412 = shalt.err (!%p8409_p1)
}
  0x58   :  { %129 = dma.hbm_to_vmem [thread:$0]  %s8959_s3, 32, %s127_s20, [#allocation12]  }
  0x59   :  { %s8886_s23 = smov [#allocation14]   ;;  %s8887_s21 = smov [#allocation17]  }
  0x5a   :  { %s147_s22 = sshll.u32 %s8886_s23, 4  ;;  %s170_s26 = sshll.u32 %s8887_s21, 4  ;;  %s148_s22 = int_to_ptr.vmem [resolvable:$true] %s147_s22  ;;  %s171_s26 = int_to_ptr.vmem [resolvable:$true] %s170_s26 }
  0x5b   :  { %s8413_s1 = scalar_lea.hbm %s8974_s19, 4096 }
  0x5c   :  { %p8414_p2 = scmp.ne.s32.totalorder %s8974_s19, %s8413_s1  ;;  %p8417_p3 = scmp.lt.u32.totalorder %s8413_s1, %s8974_s19 }
  0x5e   :  { %p8419_p4 = pnand %p8417_p3, %p8414_p2 }
  0x60   :  { %8422 = shalt.err (!%p8419_p4)
}
  0x61   :  { %s8423_s28 = scalar_lea.vmem %s148_s22, 4096  ;;  %p8428_p6 = scmp.lt.s32.totalorder %s148_s22, %s148_s22 }
  0x62   :  { %p8424_p5 = scmp.ne.s32.totalorder %s148_s22, %s8423_s28  ;;  %p8429_p7 = scmp.lt.s32.totalorder %s8423_s28, %s8423_s28 }
  0x64   :  { %p8430_p8 = por %p8429_p7, %p8428_p6 }
  0x66   :  { %p8431_p9 = pnand %p8430_p8, %p8424_p5 }
  0x68   :  { %8434 = shalt.err (!%p8431_p9)
}
  0x69   :  { %s8888_s2 = smov 128   ;;  %s8889_s3 = smov 8  }
  0x6a   :  { %153 = dma.hbm_to_vmem [thread:$0]  %s8974_s19, 4096, %s148_s22, [#allocation15], %s8888_s2, %s8888_s2, %s8889_s3  }
  0x6b   :  { %s8435_s7 = scalar_lea.hbm %s8984_s30, 32 }
  0x6c   :  { %p8436_p10 = scmp.ne.s32.totalorder %s8984_s30, %s8435_s7  ;;  %p8439_p11 = scmp.lt.u32.totalorder %s8435_s7, %s8984_s30 }
  0x6e   :  { %p8441_p12 = pnand %p8439_p11, %p8436_p10 }
  0x70   :  { %8444 = shalt.err (!%p8441_p12)
}
  0x71   :  { %s8445_s0 = scalar_lea.vmem %s171_s26, 32  ;;  %p8450_p0 = scmp.lt.s32.totalorder %s171_s26, %s171_s26 }
  0x72   :  { %p8446_p13 = scmp.ne.s32.totalorder %s171_s26, %s8445_s0  ;;  %p8451_p1 = scmp.lt.s32.totalorder %s8445_s0, %s8445_s0 }
  0x74   :  { %p8452_p2 = por %p8451_p1, %p8450_p0 }
  0x76   :  { %p8453_p3 = pnand %p8452_p2, %p8446_p13 }
  0x78   :  { %8456 = shalt.err (!%p8453_p3)
}
  0x79   :  { %173 = dma.hbm_to_vmem [thread:$0]  %s8984_s30, 32, %s171_s26, [#allocation18]  }
  0x7a   :  { %s8890_s10 = smov [#allocation20]   ;;  %s8457_s19 = scalar_lea.hbm %s8994_s12, 16384 }
  0x7b   :  { %s189_s20 = sshll.u32 %s8890_s10, 4  ;;  %p8458_p4 = scmp.ne.s32.totalorder %s8994_s12, %s8457_s19  ;;  %s190_s20 = int_to_ptr.vmem [resolvable:$true] %s189_s20 }
  0x7c   :  { %p8461_p5 = scmp.lt.u32.totalorder %s8457_s19, %s8994_s12 }
  0x7e   :  { %p8463_p6 = pnand %p8461_p5, %p8458_p4 }
  0x80   :  { %8466 = shalt.err (!%p8463_p6)
}
  0x81   :  { %s8467_s11 = scalar_lea.vmem %s190_s20, 16384  ;;  %p8472_p8 = scmp.lt.s32.totalorder %s190_s20, %s190_s20 }
  0x82   :  { %p8468_p7 = scmp.ne.s32.totalorder %s190_s20, %s8467_s11  ;;  %p8473_p9 = scmp.lt.s32.totalorder %s8467_s11, %s8467_s11 }
  0x84   :  { %p8474_p10 = por %p8473_p9, %p8472_p8 }
  0x86   :  { %p8475_p11 = pnand %p8474_p10, %p8468_p7 }
  0x88   :  { %8478 = shalt.err (!%p8475_p11)
}
  0x89   :  { %s8891_s15 = smov 512   ;;  %s8892_s30 = smov 32  }
  0x8a   :  { %195 = dma.hbm_to_vmem [thread:$0]  %s8994_s12, 16384, %s190_s20, [#allocation21], %s8891_s15, %s8891_s15, %s8892_s30  }
  0x8b   :  { %s8893_s16 = smov [#allocation23]   ;;  %s8894_s23 = smov [#allocation26]  }
  0x8c   :  { %s211_s18 = sshll.u32 %s8893_s16, 4  ;;  %s234_s22 = sshll.u32 %s8894_s23, 4  ;;  %s212_s18 = int_to_ptr.vmem [resolvable:$true] %s211_s18  ;;  %s235_s22 = int_to_ptr.vmem [resolvable:$true] %s234_s22 }
  0x8d   :  { %s8479_s21 = scalar_lea.hbm %s9004_s27, 16384 }
  0x8e   :  { %p8480_p12 = scmp.ne.s32.totalorder %s9004_s27, %s8479_s21  ;;  %p8483_p13 = scmp.lt.u32.totalorder %s8479_s21, %s9004_s27 }
  0x90   :  { %p8485_p0 = pnand %p8483_p13, %p8480_p12 }
  0x92   :  { %8488 = shalt.err (!%p8485_p0)
}
  0x93   :  { %s8489_s26 = scalar_lea.vmem %s212_s18, 16384  ;;  %p8494_p2 = scmp.lt.s32.totalorder %s212_s18, %s212_s18 }
  0x94   :  { %p8490_p1 = scmp.ne.s32.totalorder %s212_s18, %s8489_s26  ;;  %p8495_p3 = scmp.lt.s32.totalorder %s8489_s26, %s8489_s26 }
  0x96   :  { %p8496_p4 = por %p8495_p3, %p8494_p2 }
  0x98   :  { %p8497_p5 = pnand %p8496_p4, %p8490_p1 }
  0x9a   :  { %8500 = shalt.err (!%p8497_p5)
}
  0x9b   :  { %217 = dma.hbm_to_vmem [thread:$0]  %s9004_s27, 16384, %s212_s18, [#allocation24], %s8888_s2, %s8888_s2, %s8889_s3  }
  0x9c   :  { %s8501_s12 = scalar_lea.hbm %s9014_s17, 32 }
  0x9d   :  { %p8502_p6 = scmp.ne.s32.totalorder %s9014_s17, %s8501_s12  ;;  %p8505_p7 = scmp.lt.u32.totalorder %s8501_s12, %s9014_s17 }
  0x9f   :  { %p8507_p8 = pnand %p8505_p7, %p8502_p6 }
  0xa1   :  { %8510 = shalt.err (!%p8507_p8)
}
  0xa2   :  { %s8511_s1 = scalar_lea.vmem %s235_s22, 32  ;;  %p8516_p10 = scmp.lt.s32.totalorder %s235_s22, %s235_s22 }
  0xa3   :  { %p8512_p9 = scmp.ne.s32.totalorder %s235_s22, %s8511_s1  ;;  %p8517_p11 = scmp.lt.s32.totalorder %s8511_s1, %s8511_s1 }
  0xa5   :  { %p8518_p12 = por %p8517_p11, %p8516_p10 }
  0xa7   :  { %p8519_p13 = pnand %p8518_p12, %p8512_p9 }
  0xa9   :  { %8522 = shalt.err (!%p8519_p13)
}
  0xaa   :  { %237 = dma.hbm_to_vmem [thread:$0]  %s9014_s17, 32, %s235_s22, [#allocation27]  }
  0xab   :  { %s8895_s28 = smov [#allocation29]   ;;  %s8896_s7 = smov [#allocation32]  }
  0xac   :  { %s253_s27 = sshll.u32 %s8895_s28, 4  ;;  %s278_s0 = sshll.u32 %s8896_s7, 4  ;;  %s254_s27 = int_to_ptr.vmem [resolvable:$true] %s253_s27  ;;  %s279_s0 = int_to_ptr.vmem [resolvable:$true] %s278_s0 }
  0xad   :  { %s8523_s10 = scalar_lea.hbm %s9024_s25, 8192 }
  0xae   :  { %p8524_p0 = scmp.ne.s32.totalorder %s9024_s25, %s8523_s10  ;;  %p8527_p1 = scmp.lt.u32.totalorder %s8523_s10, %s9024_s25 }
  0xb0   :  { %p8529_p2 = pnand %p8527_p1, %p8524_p0 }
  0xb2   :  { %8532 = shalt.err (!%p8529_p2)
}
  0xb3   :  { %s8533_s20 = scalar_lea.vmem %s254_s27, 8192  ;;  %p8538_p4 = scmp.lt.s32.totalorder %s254_s27, %s254_s27 }
  0xb4   :  { %p8534_p3 = scmp.ne.s32.totalorder %s254_s27, %s8533_s20  ;;  %p8539_p5 = scmp.lt.s32.totalorder %s8533_s20, %s8533_s20 }
  0xb6   :  { %p8540_p6 = por %p8539_p5, %p8538_p4 }
  0xb8   :  { %p8541_p7 = pnand %p8540_p6, %p8534_p3 }
  0xba   :  { %8544 = shalt.err (!%p8541_p7)
}
  0xbb   :  { %s8897_s19 = smov 256   ;;  %s8898_s17 = smov 16  }
  0xbc   :  { %259 = dma.hbm_to_vmem [thread:$0]  %s9024_s25, 8192, %s254_s27, [#allocation30], %s8897_s19, %s8897_s19, %s8898_s17  }
  0xbd   :  { %s8545_s11 = scalar_lea.hbm %s9039_s13, 16 }
  0xbe   :  { %p8546_p8 = scmp.ne.s32.totalorder %s9039_s13, %s8545_s11  ;;  %p8549_p9 = scmp.lt.u32.totalorder %s8545_s11, %s9039_s13 }
  0xc0   :  { %p8551_p10 = pnand %p8549_p9, %p8546_p8 }
  0xc2   :  { %8554 = shalt.err (!%p8551_p10)
}
  0xc3   :  { %s8555_s15 = scalar_lea.vmem %s279_s0, 16  ;;  %s8559_s16 = scalar_lea.vmem %s279_s0, 32 }
  0xc4   :  { %p8556_p11 = scmp.ne.s32.totalorder %s279_s0, %s8555_s15  ;;  %p8560_p12 = scmp.lt.s32.totalorder %s279_s0, %s279_s0 }
  0xc5   :  { %p8561_p13 = scmp.lt.s32.totalorder %s8559_s16, %s8555_s15 }
  0xc7   :  { %p8562_p0 = por %p8561_p13, %p8560_p12 }
  0xc9   :  { %p8563_p1 = pnand %p8562_p0, %p8556_p11 }
  0xcb   :  { %8566 = shalt.err (!%p8563_p1)
}
  0xcc   :  { %281 = dma.hbm_to_vmem [thread:$0]  %s9039_s13, 16, %s279_s0, [#allocation33]  }
  0xcd   :  { %s8899_s25 = smov [#allocation5]   ;;  %s8900_s23 = smov [#allocation10]  }
  0xce   :  { %s85_s18 = sshll.u32 %s8899_s25, 4  ;;  %s113_s22 = sshll.u32 %s8900_s23, 4  ;;  %s86_s18 = int_to_ptr.vmem [resolvable:$true] %s85_s18  ;;  %s114_s22 = int_to_ptr.vmem [resolvable:$true] %s113_s22 }
  0xcf   :  { %s8567_s21 = scalar_lea.hbm %s8929_s9, 1024 }
  0xd0   :  { %p8568_p2 = scmp.ne.s32.totalorder %s8929_s9, %s8567_s21  ;;  %p8571_p3 = scmp.lt.u32.totalorder %s8567_s21, %s8929_s9 }
  0xd2   :  { %p8573_p4 = pnand %p8571_p3, %p8568_p2 }
  0xd4   :  { %8576 = shalt.err (!%p8573_p4)
}
  0xd5   :  { %s8577_s26 = scalar_lea.vmem %s86_s18, 1024  ;;  %p8582_p6 = scmp.lt.s32.totalorder %s86_s18, %s86_s18 }
  0xd6   :  { %p8578_p5 = scmp.ne.s32.totalorder %s86_s18, %s8577_s26  ;;  %p8583_p7 = scmp.lt.s32.totalorder %s8577_s26, %s8577_s26 }
  0xd8   :  { %p8584_p8 = por %p8583_p7, %p8582_p6 }
  0xda   :  { %p8585_p9 = pnand %p8584_p8, %p8578_p5 }
  0xdc   :  { %8588 = shalt.err (!%p8585_p9)
}
  0xdd   :  { %91 = dma.hbm_to_vmem [thread:$0]  %s8929_s9, 1024, %s86_s18, [#allocation6], %s8897_s19, %s8897_s19, %s8898_s17  }
  0xde   :  { %s8589_s13 = scalar_lea.hbm %s8954_s29, 4096 }
  0xdf   :  { %p8590_p10 = scmp.ne.s32.totalorder %s8954_s29, %s8589_s13  ;;  %p8593_p11 = scmp.lt.u32.totalorder %s8589_s13, %s8954_s29 }
  0xe1   :  { %p8595_p12 = pnand %p8593_p11, %p8590_p10 }
  0xe3   :  { %8598 = shalt.err (!%p8595_p12)
}
  0xe4   :  { %s8599_s12 = scalar_lea.vmem %s114_s22, 4096  ;;  %p8604_p0 = scmp.lt.s32.totalorder %s114_s22, %s114_s22 }
  0xe5   :  { %p8600_p13 = scmp.ne.s32.totalorder %s114_s22, %s8599_s12  ;;  %p8605_p1 = scmp.lt.s32.totalorder %s8599_s12, %s8599_s12 }
  0xe7   :  { %p8606_p2 = por %p8605_p1, %p8604_p0 }
  0xe9   :  { %p8607_p3 = pnand %p8606_p2, %p8600_p13 }
  0xeb   :  { %8610 = shalt.err (!%p8607_p3)
}
  0xec   :  { %119 = dma.hbm_to_vmem [thread:$0]  %s8954_s29, 4096, %s114_s22, [#allocation9], %s8888_s2, %s8888_s2, %s8889_s3  }
  0xed   :  { %s8901_s9 = smov [#allocation13]   ;;  %s8902_s28 = smov [#allocation16]  }
  0xee   :  { %s138_s1 = sshll.u32 %s8901_s9, 4  ;;  %s160_s27 = sshll.u32 %s8902_s28, 4  ;;  %s139_s1 = int_to_ptr.vmem [resolvable:$true] %s138_s1  ;;  %s161_s27 = int_to_ptr.vmem [resolvable:$true] %s160_s27 }
  0xef   :  { %s8611_s7 = scalar_lea.hbm %s8969_s14, 64 }
  0xf0   :  { %p8612_p4 = scmp.ne.s32.totalorder %s8969_s14, %s8611_s7  ;;  %p8615_p5 = scmp.lt.u32.totalorder %s8611_s7, %s8969_s14 }
  0xf2   :  { %p8617_p6 = pnand %p8615_p5, %p8612_p4 }
  0xf4   :  { %8620 = shalt.err (!%p8617_p6)
}
  0xf5   :  { %s8621_s0 = scalar_lea.vmem %s139_s1, 64  ;;  %p8626_p8 = scmp.lt.s32.totalorder %s139_s1, %s139_s1 }
  0xf6   :  { %p8622_p7 = scmp.ne.s32.totalorder %s139_s1, %s8621_s0  ;;  %p8627_p9 = scmp.lt.s32.totalorder %s8621_s0, %s8621_s0 }
  0xf8   :  { %p8628_p10 = por %p8627_p9, %p8626_p8 }
  0xfa   :  { %p8629_p11 = pnand %p8628_p10, %p8622_p7 }
  0xfc   :  { %8632 = shalt.err (!%p8629_p11)
}
  0xfd   :  { %141 = dma.hbm_to_vmem [thread:$0]  %s8969_s14, 64, %s139_s1, [#allocation12]  }
  0xfe   :  { %s8633_s29 = scalar_lea.hbm %s8979_s24, 32 }
  0xff   :  { %p8634_p12 = scmp.ne.s32.totalorder %s8979_s24, %s8633_s29  ;;  %p8637_p13 = scmp.lt.u32.totalorder %s8633_s29, %s8979_s24 }
 0x101   :  { %p8639_p0 = pnand %p8637_p13, %p8634_p12 }
 0x103   :  { %8642 = shalt.err (!%p8639_p0)
}
 0x104   :  { %s8643_s10 = scalar_lea.vmem %s161_s27, 32  ;;  %p8648_p2 = scmp.lt.s32.totalorder %s161_s27, %s161_s27 }
 0x105   :  { %p8644_p1 = scmp.ne.s32.totalorder %s161_s27, %s8643_s10  ;;  %p8649_p3 = scmp.lt.s32.totalorder %s8643_s10, %s8643_s10 }
 0x107   :  { %p8650_p4 = por %p8649_p3, %p8648_p2 }
 0x109   :  { %p8651_p5 = pnand %p8650_p4, %p8644_p1 }
 0x10b   :  { %8654 = shalt.err (!%p8651_p5)
}
 0x10c   :  { %163 = dma.hbm_to_vmem [thread:$0]  %s8979_s24, 32, %s161_s27, [#allocation15]  }
 0x10d   :  { %s8903_s20 = smov [#allocation19]   ;;  %s8904_s11 = smov [#allocation22]  }
 0x10e   :  { %s180_s14 = sshll.u32 %s8903_s20, 4  ;;  %s202_s15 = sshll.u32 %s8904_s11, 4  ;;  %s181_s14 = int_to_ptr.vmem [resolvable:$true] %s180_s14  ;;  %s203_s15 = int_to_ptr.vmem [resolvable:$true] %s202_s15 }
 0x10f   :  { %s8655_s16 = scalar_lea.hbm %s8989_s6, 32 }
 0x110   :  { %p8656_p6 = scmp.ne.s32.totalorder %s8989_s6, %s8655_s16  ;;  %p8659_p7 = scmp.lt.u32.totalorder %s8655_s16, %s8989_s6 }
 0x112   :  { %p8661_p8 = pnand %p8659_p7, %p8656_p6 }
 0x114   :  { %8664 = shalt.err (!%p8661_p8)
}
 0x115   :  { %s8665_s25 = scalar_lea.vmem %s181_s14, 32  ;;  %p8670_p10 = scmp.lt.s32.totalorder %s181_s14, %s181_s14 }
 0x116   :  { %p8666_p9 = scmp.ne.s32.totalorder %s181_s14, %s8665_s25  ;;  %p8671_p11 = scmp.lt.s32.totalorder %s8665_s25, %s8665_s25 }
 0x118   :  { %p8672_p12 = por %p8671_p11, %p8670_p10 }
 0x11a   :  { %p8673_p13 = pnand %p8672_p12, %p8666_p9 }
 0x11c   :  { %8676 = shalt.err (!%p8673_p13)
}
 0x11d   :  { %s10101_s18 = sld [smem:[#allocation55_spill]] }
 0x11e   :  { %183 = dma.hbm_to_vmem [thread:$0]  %s8989_s6, 32, %s181_s14, [#allocation18]  }
 0x123   :  { %s8677_s24 = scalar_lea.hbm %s10101_s18, 128 }
 0x124   :  { %p8678_p0 = scmp.ne.s32.totalorder %s10101_s18, %s8677_s24  ;;  %p8681_p1 = scmp.lt.u32.totalorder %s8677_s24, %s10101_s18 }
 0x126   :  { %p8683_p2 = pnand %p8681_p1, %p8678_p0 }
 0x128   :  { %8686 = shalt.err (!%p8683_p2)
}
 0x129   :  { %s8687_s23 = scalar_lea.vmem %s203_s15, 128  ;;  %p8692_p4 = scmp.lt.s32.totalorder %s203_s15, %s203_s15 }
 0x12a   :  { %p8688_p3 = scmp.ne.s32.totalorder %s203_s15, %s8687_s23  ;;  %p8693_p5 = scmp.lt.s32.totalorder %s8687_s23, %s8687_s23 }
 0x12c   :  { %p8694_p6 = por %p8693_p5, %p8692_p4 }
 0x12e   :  { %p8695_p7 = pnand %p8694_p6, %p8688_p3 }
 0x130   :  { %8698 = shalt.err (!%p8695_p7)
}
 0x131   :  { %s10102_s22 = sld [smem:[#allocation56_spill]]  ;;  %s8905_s21 = smov [#allocation25]  }
 0x132   :  { %205 = dma.hbm_to_vmem [thread:$0]  %s10101_s18, 128, %s203_s15, [#allocation21]  }
 0x133   :  { %s224_s6 = sshll.u32 %s8905_s21, 4  ;;  %s8906_s26 = smov [#allocation28]   ;;  %s225_s6 = int_to_ptr.vmem [resolvable:$true] %s224_s6 }
 0x134   :  { %s244_s13 = sshll.u32 %s8906_s26, 4  ;;  %s245_s13 = int_to_ptr.vmem [resolvable:$true] %s244_s13 }
 0x137   :  { %s8699_s12 = scalar_lea.hbm %s10102_s22, 32 }
 0x138   :  { %p8700_p8 = scmp.ne.s32.totalorder %s10102_s22, %s8699_s12  ;;  %p8703_p9 = scmp.lt.u32.totalorder %s8699_s12, %s10102_s22 }
 0x13a   :  { %p8705_p10 = pnand %p8703_p9, %p8700_p8 }
 0x13c   :  { %8708 = shalt.err (!%p8705_p10)
}
 0x13d   :  { %s8709_s9 = scalar_lea.vmem %s225_s6, 32  ;;  %p8714_p12 = scmp.lt.s32.totalorder %s225_s6, %s225_s6 }
 0x13e   :  { %p8710_p11 = scmp.ne.s32.totalorder %s225_s6, %s8709_s9  ;;  %p8715_p13 = scmp.lt.s32.totalorder %s8709_s9, %s8709_s9 }
 0x140   :  { %p8716_p0 = por %p8715_p13, %p8714_p12 }
 0x142   :  { %p8717_p1 = pnand %p8716_p0, %p8710_p11 }
 0x144   :  { %8720 = shalt.err (!%p8717_p1)
}
 0x145   :  { %s10103_s1 = sld [smem:[#allocation57_spill]] }
 0x146   :  { %227 = dma.hbm_to_vmem [thread:$0]  %s10102_s22, 32, %s225_s6, [#allocation24]  }
 0x14b   :  { %s8721_s28 = scalar_lea.hbm %s10103_s1, 32 }
 0x14c   :  { %p8722_p2 = scmp.ne.s32.totalorder %s10103_s1, %s8721_s28  ;;  %p8725_p3 = scmp.lt.u32.totalorder %s8721_s28, %s10103_s1 }
 0x14e   :  { %p8727_p4 = pnand %p8725_p3, %p8722_p2 }
 0x150   :  { %8730 = shalt.err (!%p8727_p4)
}
 0x151   :  { %s8731_s27 = scalar_lea.vmem %s245_s13, 32  ;;  %p8736_p6 = scmp.lt.s32.totalorder %s245_s13, %s245_s13 }
 0x152   :  { %p8732_p5 = scmp.ne.s32.totalorder %s245_s13, %s8731_s27  ;;  %p8737_p7 = scmp.lt.s32.totalorder %s8731_s27, %s8731_s27 }
 0x154   :  { %p8738_p8 = por %p8737_p7, %p8736_p6 }
 0x156   :  { %p8739_p9 = pnand %p8738_p8, %p8732_p5 }
 0x158   :  { %8742 = shalt.err (!%p8739_p9)
}
 0x159   :  { %s10104_s7 = sld [smem:[#allocation58_spill]]  ;;  %s8907_s0 = smov [#allocation31]  }
 0x15a   :  { %247 = dma.hbm_to_vmem [thread:$0]  %s10103_s1, 32, %s245_s13, [#allocation27]  }
 0x15b   :  { %s266_s29 = sshll.u32 %s8907_s0, 4  ;;  %s8908_s10 = smov [#allocation34]   ;;  %s267_s29 = int_to_ptr.vmem [resolvable:$true] %s266_s29 }
 0x15c   :  { %s290_s20 = sshll.u32 %s8908_s10, 4  ;;  %s291_s20 = int_to_ptr.vmem [resolvable:$true] %s290_s20 }
 0x15f   :  { %s8743_s14 = scalar_lea.hbm %s10104_s7, 64 }
 0x160   :  { %p8744_p10 = scmp.ne.s32.totalorder %s10104_s7, %s8743_s14  ;;  %p8747_p11 = scmp.lt.u32.totalorder %s8743_s14, %s10104_s7 }
 0x162   :  { %p8749_p12 = pnand %p8747_p11, %p8744_p10 }
 0x164   :  { %8752 = shalt.err (!%p8749_p12)
}
 0x165   :  { %s8753_s11 = scalar_lea.vmem %s267_s29, 64  ;;  %p8758_p0 = scmp.lt.s32.totalorder %s267_s29, %s267_s29 }
 0x166   :  { %p8754_p13 = scmp.ne.s32.totalorder %s267_s29, %s8753_s11  ;;  %p8759_p1 = scmp.lt.s32.totalorder %s8753_s11, %s8753_s11 }
 0x168   :  { %p8760_p2 = por %p8759_p1, %p8758_p0 }
 0x16a   :  { %p8761_p3 = pnand %p8760_p2, %p8754_p13 }
 0x16c   :  { %8764 = shalt.err (!%p8761_p3)
}
 0x16d   :  { %s10105_s15 = sld [smem:[#allocation61_spill]] }
 0x16e   :  { %269 = dma.hbm_to_vmem [thread:$0]  %s10104_s7, 64, %s267_s29, [#allocation30]  }
 0x173   :  { %s8765_s16 = scalar_lea.hbm %s10105_s15, 16 }
 0x174   :  { %p8766_p4 = scmp.ne.s32.totalorder %s10105_s15, %s8765_s16  ;;  %p8769_p5 = scmp.lt.u32.totalorder %s8765_s16, %s10105_s15 }
 0x176   :  { %p8771_p6 = pnand %p8769_p5, %p8766_p4 }
 0x178   :  { %8774 = shalt.err (!%p8771_p6)
}
 0x179   :  { %s8775_s25 = scalar_lea.vmem %s291_s20, 16  ;;  %s8779_s18 = scalar_lea.vmem %s291_s20, 32 }
 0x17a   :  { %p8776_p7 = scmp.ne.s32.totalorder %s291_s20, %s8775_s25  ;;  %p8780_p8 = scmp.lt.s32.totalorder %s291_s20, %s291_s20 }
 0x17b   :  { %p8781_p9 = scmp.lt.s32.totalorder %s8779_s18, %s8775_s25 }
 0x17d   :  { %p8782_p10 = por %p8781_p9, %p8780_p8 }
 0x17f   :  { %p8783_p11 = pnand %p8782_p10, %p8776_p7 }
 0x181   :  { %8786 = shalt.err (!%p8783_p11)
}
 0x182   :  { %293 = dma.hbm_to_vmem [thread:$0]  %s10105_s15, 16, %s291_s20, [#allocation33]  }
 0x183   :  { %8831 = dma.done.wait [#allocation6], 1024  }
 0x184   :  { %8832 = vsyncadd [#allocation6], 4294966272 }
 0x185   :  { %8833 = dma.done.wait [#allocation9], 4352  }
 0x186   :  { %8834 = vsyncadd [#allocation9], 4294962944 }
 0x187   :  { %8835 = dma.done.wait [#allocation12], 96  }
 0x188   :  { %8836 = vsyncadd [#allocation12], 4294967200 }
 0x189   :  { %8837 = dma.done.wait [#allocation15], 4128  }
 0x18a   :  { %8838 = vsyncadd [#allocation15], 4294963168 }
 0x18b   :  { %8839 = dma.done.wait [#allocation18], 64  }
 0x18c   :  { %8840 = vsyncadd [#allocation18], 4294967232 }
 0x18d   :  { %8841 = dma.done.wait [#allocation21], 16512  }
 0x18e   :  { %8842 = vsyncadd [#allocation21], 4294950784 }
 0x18f   :  { %8843 = dma.done.wait [#allocation24], 16416  }
 0x190   :  { %8844 = vsyncadd [#allocation24], 4294950880 }
 0x191   :  { %8845 = dma.done.wait [#allocation27], 64  }
 0x192   :  { %8846 = vsyncadd [#allocation27], 4294967232 }
 0x193   :  { %8847 = dma.done.wait [#allocation30], 8256  }
 0x194   :  { %8848 = vsyncadd [#allocation30], 4294959040 }
 0x195   :  { %8849 = dma.done.wait [#allocation33], 32  }
 0x196   :  { %8850 = vsyncadd [#allocation33], 4294967264  ;;  %s10106_s24 = sld [smem:[#allocation54_spill]]  ;;  %v7726_v6 = vld [vmem:[#allocation10 + $0x4] ss:$8 sps:$4 sm:$0xff]   ;;  %v371_v33 = vlaneseq  ;;  %s10107_s23 = sld [smem:[#allocation50_spill]] }
 0x197   :  { %v7728_v7 = vld [vmem:[#allocation10] ss:$8 sps:$4 sm:$0xff]   ;;  %656 = vmatprep.subr.bf16.mxu0 %v7726_v6  ;;  %v7732_v9 = vld [vmem:[#allocation10 + $0x14] ss:$8 sps:$4 sm:$0xff]   ;;  %v7734_v10 = vld [vmem:[#allocation10 + $0x10] ss:$8 sps:$4 sm:$0xff]  }
 0x198   :  { %657 = vmatpush1.bf16.msra.mxu0 %v7728_v7  ;;  %v7738_v13 = vld [vmem:[#allocation10 + $0x24] ss:$8 sps:$4 sm:$0xff]   ;;  %v7740_v15 = vld [vmem:[#allocation10 + $0x20] ss:$8 sps:$4 sm:$0xff]   ;;  %v7744_v16 = vld [vmem:[#allocation10 + $0x34] ss:$8 sps:$4 sm:$0xff]  }
 0x199   :  { %658 = vmatprep.subr.bf16.mxu0 %v7732_v9  ;;  %v7746_v19 = vld [vmem:[#allocation10 + $0x30] ss:$8 sps:$4 sm:$0xff]   ;;  %v7750_v20 = vld [vmem:[#allocation10 + $0x44] ss:$8 sps:$4 sm:$0xff]   ;;  %v7752_v23 = vld [vmem:[#allocation10 + $0x40] ss:$8 sps:$4 sm:$0xff]  }
 0x19a   :  { %v7756_v24 = vld [vmem:[#allocation10 + $0x54] ss:$8 sps:$4 sm:$0xff]   ;;  %v7758_v27 = vld [vmem:[#allocation10 + $0x50] ss:$8 sps:$4 sm:$0xff]   ;;  %v7762_v28 = vld [vmem:[#allocation10 + $0x64] ss:$8 sps:$4 sm:$0xff]  }
 0x19b   :  { %v7764_v31 = vld [vmem:[#allocation10 + $0x60] ss:$8 sps:$4 sm:$0xff]   ;;  %v7768_v32 = vld [vmem:[#allocation10 + $0x74] ss:$8 sps:$4 sm:$0xff]   ;;  %v7770_v36 = vld [vmem:[#allocation10 + $0x70] ss:$8 sps:$4 sm:$0xff]  }
 0x19c   :  { %v7717_v1 = vld [vmem:[%s10106_s24 + $0x4] ss:$16 sps:$4 sm:$0xff]   ;;  %v7719_v2 = vld [vmem:[%s10106_s24] ss:$16 sps:$4 sm:$0xff]   ;;  %659 = vmatpush1.bf16.msra.mxu0 %v7734_v10  ;;  %v9180_v38 = vshrl.u32 %v371_v33, 7  ;;  %v374_v44 = vstv %s10107_s23  ;;  %s10112_s22 = sld [smem:[#allocation53_spill]] }
 0x19d   :  { %1105 = vmatprep.subr.bf16.mxu1 %v7717_v1  ;;  %v7720_v3 = vld [vmem:[%s10106_s24 + $0x24] ss:$16 sps:$4 sm:$0xff]   ;;  %v7722_v4 = vld [vmem:[%s10106_s24 + $0x20] ss:$16 sps:$4 sm:$0xff]   ;;  %660 = vmatprep.subr.bf16.mxu0 %v7738_v13  ;;  %vm425_vm2 = vcmask 1042432   ;;  %vm8910_vm3 = vmmov 0  }
 0x19e   :  { %1106 = vmatpush1.bf16.msra.mxu1 %v7719_v2  ;;  %v7723_v5 = vld [vmem:[%s10106_s24 + $0x44] ss:$16 sps:$4 sm:$0xff]   ;;  %v7725_v8 = vld [vmem:[%s10106_s24 + $0x40] ss:$16 sps:$4 sm:$0xff]   ;;  %v373_v43 = vadd.s32 8, %v9180_v38  ;;  %vm9189_vm0 = vcmp.eq.s32.totalorder %v9180_v38, %v374_v44  ;;  %vm1230_vm4 = vcmask 261120  }
 0x19f   :  { %1107 = vmatprep.subr.bf16.mxu1 %v7720_v3  ;;  %v7729_v11 = vld [vmem:[%s10106_s24 + $0x64] ss:$16 sps:$4 sm:$0xff]   ;;  %v7731_v12 = vld [vmem:[%s10106_s24 + $0x60] ss:$16 sps:$4 sm:$0xff]   ;;  %s10113_s21 = sld [smem:[#allocation51_spill]]  ;;  %vm1345_vm10 = vcmask 130048  }
 0x1a0   :  { %v7735_v14 = vld [vmem:[%s10106_s24 + $0x84] ss:$16 sps:$4 sm:$0xff]   ;;  %v7737_v17 = vld [vmem:[%s10106_s24 + $0x80] ss:$16 sps:$4 sm:$0xff]   ;;  %661 = vmatpush1.bf16.msra.mxu0 %v7740_v15  ;;  %vm9193_vm1 = vcmp.eq.s32.totalorder %v373_v43, %v374_v44  ;;  %s8912_s6 = smov 96   ;;  %s8913_s26 = smov 64  }
 0x1a1   :  { %v7741_v18 = vld [vmem:[%s10106_s24 + $0xa4] ss:$16 sps:$4 sm:$0xff]   ;;  %662 = vmatprep.subr.bf16.mxu0 %v7744_v16  ;;  %v7743_v21 = vld [vmem:[%s10106_s24 + $0xa0] ss:$16 sps:$4 sm:$0xff]   ;;  %vm3045_vm12 = vcmask 523264   ;;  %vm3048_vm13 = vcmask 785408  }
 0x1a2   :  { %1108 = vmatpush1.bf16.msra.mxu1 %v7722_v4  ;;  %v7747_v22 = vld [vmem:[%s10106_s24 + $0xc4] ss:$16 sps:$4 sm:$0xff]   ;;  %v7749_v25 = vld [vmem:[%s10106_s24 + $0xc0] ss:$16 sps:$4 sm:$0xff]   ;;  %s10118_s13 = sld [smem:[#allocation59_spill]]  ;;  %s10119_s12 = sld [smem:[#allocation60_spill]] }
 0x1a3   :  { %1109 = vmatprep.subr.bf16.mxu1 %v7723_v5  ;;  %v7753_v26 = vld [vmem:[%s10106_s24 + $0xe4] ss:$16 sps:$4 sm:$0xff]   ;;  %v7755_v29 = vld [vmem:[%s10106_s24 + $0xe0] ss:$16 sps:$4 sm:$0xff]   ;;  %s8914_s9 = smov [#allocation35]  }
 0x1a4   :  { %663 = vmatpush1.bf16.msra.mxu0 %v7746_v19  ;;  %v7759_v30 = vld [vmem:[%s10106_s24 + $0x104] ss:$16 sps:$4 sm:$0xff]   ;;  %v7761_v34 = vld [vmem:[%s10106_s24 + $0x100] ss:$16 sps:$4 sm:$0xff]   ;;  %s6670_s1 = sshll.u32 %s8914_s9, 4  ;;  %s6671_s1 = int_to_ptr.vmem [resolvable:$true] %s6670_s1 }
 0x1a5   :  { %664 = vmatprep.subr.bf16.mxu0 %v7750_v20  ;;  %v7765_v35 = vld [vmem:[%s10106_s24 + $0x124] ss:$16 sps:$4 sm:$0xff]   ;;  %v7767_v39 = vld [vmem:[%s10106_s24 + $0x120] ss:$16 sps:$4 sm:$0xff]   ;;  %s8787_s28 = scalar_lea.vmem %s6671_s1, 512  ;;  %p8792_p13 = scmp.lt.s32.totalorder %s6671_s1, %s6671_s1 }
 0x1a6   :  { %1110 = vmatpush1.bf16.msra.mxu1 %v7725_v8  ;;  %v7774_v37 = vld [vmem:[#allocation10 + $0x84] ss:$8 sps:$4 sm:$0xff]   ;;  %v7776_v41 = vld [vmem:[#allocation10 + $0x80] ss:$8 sps:$4 sm:$0xff]   ;;  %v7780_v42 = vld [vmem:[#allocation10 + $0x94] ss:$8 sps:$4 sm:$0xff]   ;;  %p8788_p12 = scmp.ne.s32.totalorder %s6671_s1, %s8787_s28  ;;  %p8793_p0 = scmp.lt.s32.totalorder %s8787_s28, %s8787_s28 }
 0x1a7   :  { %1111 = vmatprep.subr.bf16.mxu1 %v7729_v11  ;;  %v7771_v40 = vld [vmem:[%s10106_s24 + $0x144] ss:$16 sps:$4 sm:$0xff]   ;;  %v7773_v45 = vld [vmem:[%s10106_s24 + $0x140] ss:$16 sps:$4 sm:$0xff]  }
 0x1a8   :  { %665 = vmatpush1.bf16.msra.mxu0 %v7752_v23  ;;  %v7777_v46 = vld [vmem:[%s10106_s24 + $0x164] ss:$16 sps:$4 sm:$0xff]   ;;  %v360_v49 = vld [vmem:[#allocation5 + $0x8] sm:$0xff]  ;;  %v362_v50 = vld [vmem:[#allocation5 + $0x18] sm:$0xff]  ;;  %p8794_p1 = por %p8793_p0, %p8792_p13 }
 0x1a9   :  { %666 = vmatprep.subr.bf16.mxu0 %v7756_v24  ;;  %v7782_v47 = vld [vmem:[#allocation10 + $0x90] ss:$8 sps:$4 sm:$0xff]   ;;  %v7786_v48 = vld [vmem:[#allocation10 + $0xa4] ss:$8 sps:$4 sm:$0xff]   ;;  %v9199_v54 = vpack.c.bf16 %v362_v50, %v360_v49  ;;  %v382_v55 = vsel %vm9189_vm0, %v360_v49, 0.0  ;;  %v384_v56 = vsel %vm9193_vm1, %v362_v50, 0.0 }
 0x1aa   :  { %1112 = vmatpush1.bf16.msra.mxu1 %v7731_v12  ;;  %v9197_v53 = vld [vmem:[#allocation5] sm:$0xff]  ;;  %v9205_v57 = vld [vmem:[#allocation5 + $0x10] sm:$0xff]  ;;  %v396_v61 = vadd.f32 %v384_v56, %v382_v55  ;;  %v9215_v3 = vld [vmem:[#allocation5 + $0x28] sm:$0xff]  ;;  %p8795_p2 = pnand %p8794_p1, %p8788_p12 }
 0x1ab   :  { %1113 = vmatprep.subr.bf16.mxu1 %v7735_v14  ;;  %v381_v58 = vsel %vm9189_vm0, %v9197_v53, 0.0  ;;  %v7779_v59 = vld [vmem:[%s10106_s24 + $0x160] ss:$16 sps:$4 sm:$0xff]   ;;  %v7783_v60 = vld [vmem:[%s10106_s24 + $0x184] ss:$16 sps:$4 sm:$0xff]   ;;  %v383_v62 = vsel %vm9193_vm1, %v9205_v57, 0.0  ;;  %1137 = vmatprep.mubr.bf16.mxu1 %v9199_v54 }
 0x1ac   :  { %667 = vmatpush1.bf16.msra.mxu0 %v7758_v27  ;;  %v7788_v63 = vld [vmem:[#allocation10 + $0xa0] ss:$8 sps:$4 sm:$0xff]   ;;  %v7792_v0 = vld [vmem:[#allocation10 + $0xb4] ss:$8 sps:$4 sm:$0xff]   ;;  %v389_v1 = vadd.f32 %v383_v62, %v381_v58  ;;  %v397_v2 = vrot.slane %v396_v61, 4  ;;  %v386_v9 = vsel %vm9189_vm0, %v9215_v3, 0.0 }
 0x1ad   :  { %668 = vmatprep.subr.bf16.mxu0 %v7762_v28  ;;  %v9217_v4 = vld [vmem:[#allocation5 + $0x38] sm:$0xff]  ;;  %v9219_v5 = vld [vmem:[#allocation5 + $0x20] sm:$0xff]  ;;  %v9229_v11 = vld [vmem:[#allocation5 + $0x30] sm:$0xff] }
 0x1ae   :  { %1114 = vmatpush1.bf16.msra.mxu1 %v7737_v17  ;;  %v7785_v6 = vld [vmem:[%s10106_s24 + $0x180] ss:$16 sps:$4 sm:$0xff]   ;;  %v390_v8 = vrot.slane %v389_v1, 4  ;;  %v388_v10 = vsel %vm9193_vm1, %v9217_v4, 0.0  ;;  %v418_v12 = vld [vmem:[%s10112_s22 + $0x8] sm:$0xff]  ;;  %v398_v14 = vadd.f32 %v397_v2, %v396_v61  ;;  %v385_v16 = vsel %vm9189_vm0, %v9219_v5, 0.0 }
 0x1af   :  { %1115 = vmatprep.subr.bf16.mxu1 %v7741_v18  ;;  %v7794_v7 = vld [vmem:[#allocation10 + $0xb0] ss:$8 sps:$4 sm:$0xff]   ;;  %v410_v15 = vadd.f32 %v388_v10, %v386_v9  ;;  %v419_v17 = vld [vmem:[%s10112_s22 + $0x10] sm:$0x7]  ;;  %v420_v18 = vld [vmem:[%s10112_s22 + $0x18] sm:$0x7] }
 0x1b0   :  { %669 = vmatpush1.bf16.msra.mxu0 %v7764_v31  ;;  %v7789_v13 = vld [vmem:[%s10106_s24 + $0x1a4] ss:$16 sps:$4 sm:$0xff]   ;;  %v422_v23 = vsel %vm9189_vm0, %v418_v12, 0.0  ;;  %v423_v24 = vsel %vm9193_vm1, %v419_v17, 0.0  ;;  %v424_v27 = vsel %vm9193_vm1, %v420_v18, 0.0  ;;  %v9263_v17 = vpack.c.bf16 %v9217_v4, %v9215_v3 }
 0x1b1   :  { %670 = vmatprep.subr.bf16.mxu0 %v7768_v32  ;;  %v417_v19 = vld [vmem:[%s10112_s22] sm:$0xff]  ;;  %v434_v31 = vsel %vm425_vm2, %v424_v27, 0.0  ;;  %v7809_v62 = vld [vmem:[#allocation10 + $0xe0] ss:$8 sps:$4 sm:$0xff]  }
 0x1b2   :  { %1116 = vmatpush1.bf16.msra.mxu1 %v7743_v21  ;;  %v7798_v20 = vld [vmem:[#allocation10 + $0xc4] ss:$8 sps:$4 sm:$0xff]   ;;  %v391_v21 = vadd.f32 %v390_v8, %v389_v1  ;;  %v421_v32 = vsel %vm9189_vm0, %v417_v19, 0.0 }
 0x1b3   :  { %1117 = vmatprep.subr.bf16.mxu1 %v7747_v22  ;;  %v387_v22 = vsel %vm9193_vm1, %v9229_v11, 0.0  ;;  %v7791_v28 = vld [vmem:[%s10106_s24 + $0x1a0] ss:$16 sps:$4 sm:$0xff]   ;;  %v7795_v33 = vld [vmem:[%s10106_s24 + $0x1c4] ss:$16 sps:$4 sm:$0xff]  }
 0x1b4   :  { %671 = vmatpush1.bf16.msra.mxu0 %v7770_v36  ;;  %v399_v36 = vrot.slane %v398_v14, 2  ;;  %v7807_v49 = vld [vmem:[#allocation10 + $0xe4] ss:$8 sps:$4 sm:$0xff]  }
 0x1b5   :  { %672 = vmatprep.subr.bf16.mxu0 %v7774_v37  ;;  %v7803_v61 = vld [vmem:[%s10106_s24 + $0x1e0] ss:$16 sps:$4 sm:$0xff]  }
 0x1b6   :  { %1118 = vmatpush1.bf16.msra.mxu1 %v7749_v25  ;;  %v411_v25 = vrot.slane %v410_v15, 4  ;;  %v400_v51 = vadd.f32 %v399_v36, %v398_v14  ;;  %v9259_v14 = vpack.c.bf16 %v9205_v57, %v9197_v53 }
 0x1b7   :  { %1119 = vmatprep.subr.bf16.mxu1 %v7753_v26  ;;  %v403_v26 = vadd.f32 %v387_v22, %v385_v16 }
 0x1b8   :  { %673 = vmatpush1.bf16.msra.mxu0 %v7776_v41  ;;  %v412_v37 = vadd.f32 %v411_v25, %v410_v15  ;;  %v401_v1 = vrot.slane %v400_v51, 1  ;;  %v7812_v15 = vld [vmem:[#allocation10 + $0xf0] ss:$8 sps:$4 sm:$0xff]  }
 0x1b9   :  { %674 = vmatprep.subr.bf16.mxu0 %v7780_v42 }
 0x1ba   :  { %1120 = vmatpush1.bf16.msra.mxu1 %v7755_v29  ;;  %v7800_v29 = vld [vmem:[#allocation10 + $0xc0] ss:$8 sps:$4 sm:$0xff]   ;;  %v413_v43 = vrot.slane %v412_v37, 2  ;;  %v402_v18 = vadd.f32 %v401_v1, %v400_v51 }
 0x1bb   :  { %1121 = vmatprep.subr.bf16.mxu1 %v7759_v30  ;;  %v426_v30 = vsel %vm425_vm2, %v423_v24, 0.0 }
 0x1bc   :  { %675 = vmatpush1.bf16.msra.mxu0 %v7782_v47  ;;  %v427_v41 = vadd.f32 %v426_v30, %v421_v32  ;;  %v414_v52 = vadd.f32 %v413_v43, %v412_v37  ;;  %v9277_v30 = vsub.s32 0, %v9180_v38 }
 0x1bd   :  { %676 = vmatprep.subr.bf16.mxu0 %v7786_v48  ;;  %v7801_v48 = vld [vmem:[%s10106_s24 + $0x1e4] ss:$16 sps:$4 sm:$0xff]  }
 0x1be   :  { %1122 = vmatpush1.bf16.msra.mxu1 %v7761_v34  ;;  %v7804_v34 = vld [vmem:[#allocation10 + $0xd4] ss:$8 sps:$4 sm:$0xff]   ;;  %v428_v47 = vrot.slane %v427_v41, 4  ;;  %v415_v2 = vrot.slane %v414_v52, 1 }
 0x1bf   :  { %1123 = vmatprep.subr.bf16.mxu1 %v7765_v35  ;;  %v404_v35 = vrot.slane %v403_v26, 4 }
 0x1c0   :  { %677 = vmatpush1.bf16.msra.mxu0 %v7788_v63  ;;  %v429_v58 = vadd.f32 %v428_v47, %v427_v41  ;;  %v416_v19 = vadd.f32 %v415_v2, %v414_v52 }
 0x1c1   :  { %678 = vmatprep.subr.bf16.mxu0 %v7792_v0  ;;  %v405_v42 = vadd.f32 %v404_v35, %v403_v26  ;;  %v7810_v0 = vld [vmem:[#allocation10 + $0xf4] ss:$8 sps:$4 sm:$0xff]  }
 0x1c2   :  { %1124 = vmatpush1.bf16.msra.mxu1 %v7767_v39  ;;  %v435_v39 = vadd.f32 %v434_v31, %v422_v23  ;;  %v430_v63 = vrot.slane %v429_v58, 2  ;;  %v9279_v31 = vld [vmem:[#allocation13] sm:$0xf] }
 0x1c3   :  { %1125 = vmatprep.subr.bf16.mxu1 %v7771_v40  ;;  %v392_v40 = vrot.slane %v391_v21, 2  ;;  %v406_v50 = vrot.slane %v405_v42, 2 }
 0x1c4   :  { %679 = vmatpush1.bf16.msra.mxu0 %v7794_v7  ;;  %v436_v44 = vrot.slane %v435_v39, 4  ;;  %v443_v7 = vld [vmem:[#allocation8 + $0x8] sm:$0xff]  ;;  %v431_v10 = vadd.f32 %v430_v63, %v429_v58 }
 0x1c5   :  { %680 = vmatprep.subr.bf16.mxu0 %v7798_v20  ;;  %v393_v56 = vadd.f32 %v392_v40, %v391_v21 }
 0x1c6   :  { %1126 = vmatpush1.bf16.msra.mxu1 %v7773_v45  ;;  %v7797_v45 = vld [vmem:[%s10106_s24 + $0x1c0] ss:$16 sps:$4 sm:$0xff]   ;;  %v437_v55 = vadd.f32 %v436_v44, %v435_v39  ;;  %v432_v16 = vrot.slane %v431_v10, 1 }
 0x1c7   :  { %1127 = vmatprep.subr.bf16.mxu1 %v7777_v46  ;;  %v7806_v46 = vld [vmem:[#allocation10 + $0xd0] ss:$8 sps:$4 sm:$0xff]   ;;  %v394_v8 = vrot.slane %v393_v56, 1 }
 0x1c8   :  { %681 = vmatpush1.bf16.msra.mxu0 %v7800_v29  ;;  %v433_v23 = vadd.f32 %v432_v16, %v431_v10  ;;  %v8909_v29 = vmov 0.0   ;;  %v7813_v10 = vld [vmem:[%s10106_s24 + $0x8] ss:$16 sps:$4 sm:$0xff]   ;;  %v7821_v16 = vld [vmem:[%s10106_s24 + $0x4c] ss:$16 sps:$4 sm:$0xff]  }
 0x1c9   :  { %682 = vmatprep.subr.bf16.mxu0 %v7804_v34  ;;  %v395_v21 = vadd.f32 %v394_v8, %v393_v56 }
 0x1ca   :  { %1128 = vmatpush1.bf16.msra.mxu1 %v7779_v59  ;;  %v438_v59 = vrot.slane %v437_v55, 2 }
 0x1cb   :  { %1129 = vmatprep.subr.bf16.mxu1 %v7783_v60  ;;  %v407_v60 = vadd.f32 %v406_v50, %v405_v42 }
 0x1cc   :  { %683 = vmatpush1.bf16.msra.mxu0 %v7806_v46 }
 0x1cd   :  { %v408_v9 = vrot.slane %v407_v60, 1  ;;  %684 = vmatprep.subr.bf16.mxu0 %v7807_v49 }
 0x1ce   :  { %1130 = vmatpush1.bf16.msra.mxu1 %v7785_v6  ;;  %v439_v6 = vadd.f32 %v438_v59, %v437_v55 }
 0x1cf   :  { %1131 = vmatprep.subr.bf16.mxu1 %v7789_v13  ;;  %v442_v13 = vld [vmem:[#allocation8] sm:$0xff]  ;;  %v409_v22 = vadd.f32 %v408_v9, %v407_v60 }
 0x1d0   :  { %v440_v12 = vrot.slane %v439_v6, 1  ;;  %685 = vmatpush1.bf16.msra.mxu0 %v7809_v62  ;;  %v444_v25 = vadd.f32 %v442_v13, %v433_v23  ;;  %v7818_v13 = vld [vmem:[%s10106_s24 + $0x2c] ss:$16 sps:$4 sm:$0xff]  }
 0x1d1   :  { %686 = vmatprep.subr.bf16.mxu0 %v7810_v0  ;;  %v7830_v23 = vld [vmem:[%s10106_s24 + $0xac] ss:$16 sps:$4 sm:$0xff]  }
 0x1d2   :  { %1132 = vmatpush1.bf16.msra.mxu1 %v7791_v28  ;;  %v441_v20 = vadd.f32 %v440_v12, %v439_v6  ;;  %v446_v3 = vadd.f32 %v444_v25, %v395_v21  ;;  %v448_v4 = vadd.f32 %v444_v25, %v409_v22  ;;  %v9269_v28 = vpack.c.bf16 %v9229_v11, %v9219_v5  ;;  %v7815_v12 = vld [vmem:[%s10106_s24 + $0xc] ss:$16 sps:$4 sm:$0xff]   ;;  %v7825_v22 = vld [vmem:[%s10106_s24 + $0x88] ss:$16 sps:$4 sm:$0xff]  }
 0x1d3   :  { %1133 = vmatprep.subr.bf16.mxu1 %v7795_v33  ;;  %v9282_v5 = vsub.s32 1, %v9180_v38  ;;  %v484_v33 = vld [vmem:[#allocation11] sm:$0x3]  ;;  %v7827_v21 = vld [vmem:[%s10106_s24 + $0x8c] ss:$16 sps:$4 sm:$0xff]  }
 0x1d4   :  { %v445_v24 = vadd.f32 %v443_v7, %v441_v20  ;;  %687 = vmatpush1.bf16.msra.mxu0 %v7812_v15  ;;  %v450_v27 = vpack.c.bf16 %v448_v4, %v446_v3  ;;  %v489_v40 = vrot.slane %v484_v33, %v9277_v30  ;;  %v7816_v15 = vld [vmem:[%s10106_s24 + $0x28] ss:$16 sps:$4 sm:$0xff]   ;;  %v7833_v25 = vld [vmem:[%s10106_s24 + $0xcc] ss:$16 sps:$4 sm:$0xff]  }
 0x1d5   :  { %v772_v32 = vrot.slane %v9279_v31, %v9282_v5  ;;  %v493_v41 = vrot.slane %v484_v33, %v9282_v5  ;;  %1158 = vmatprep.subr.bf16.mxu0 %v7815_v12  ;;  %v7822_v20 = vld [vmem:[%s10106_s24 + $0x68] ss:$16 sps:$4 sm:$0xff]   ;;  %v7839_v4 = vld [vmem:[%s10106_s24 + $0x10c] ss:$16 sps:$4 sm:$0xff]  }
 0x1d6   :  { %1134 = vmatpush1.bf16.msra.mxu1 %v7797_v45  ;;  %v447_v53 = vadd.f32 %v445_v24, %v402_v18  ;;  %v449_v57 = vadd.f32 %v445_v24, %v416_v19  ;;  %v7819_v18 = vld [vmem:[%s10106_s24 + $0x48] ss:$16 sps:$4 sm:$0xff]   ;;  %v7824_v19 = vld [vmem:[%s10106_s24 + $0x6c] ss:$16 sps:$4 sm:$0xff]  }
 0x1d7   :  { %1135 = vmatprep.subr.bf16.mxu1 %v7801_v48  ;;  %v7828_v24 = vld [vmem:[%s10106_s24 + $0xa8] ss:$16 sps:$4 sm:$0xff]   ;;  %v7848_v33 = vld [vmem:[%s10106_s24 + $0x16c] ss:$16 sps:$4 sm:$0xff]  }
 0x1d8   :  { %v451_v26 = vpack.c.bf16 %v449_v57, %v447_v53  ;;  %v7831_v53 = vld [vmem:[%s10106_s24 + $0xc8] ss:$16 sps:$4 sm:$0xff]   ;;  %v7836_v57 = vld [vmem:[%s10106_s24 + $0xec] ss:$16 sps:$4 sm:$0xff]  }
 0x1d9   :  { %v7834_v3 = vld [vmem:[%s10106_s24 + $0xe8] ss:$16 sps:$4 sm:$0xff]  }
 0x1da   :  { %1136 = vmatpush1.bf16.msra.mxu1 %v7803_v61  ;;  %688 = vmatprep.mubr.bf16.mxu0 %v451_v26  ;;  %v7837_v26 = vld [vmem:[%s10106_s24 + $0x108] ss:$16 sps:$4 sm:$0xff]  }
 0x1db   :  { %689 = vmatmul.mubr.bf16.vlgmr.msra.gmra.mrb[0].mxu0 %v450_v27  ;;  %7418 = vmatprep.subr.bf16.mxu1 %v8909_v29  ;;  %v7842_v27 = vld [vmem:[%s10106_s24 + $0x12c] ss:$16 sps:$4 sm:$0xff]  }
 0x1dc   :  { %1190 = vmatprep.mubr.bf16.mxu0 %v9199_v54  ;;  %v768_v54 = vrot.slane %v9279_v31, %v9277_v30  ;;  %1159 = vmatpush1.bf16.msra.mxu0 %v7813_v10 }
 0x1dd   :  { %1138 = vmatmul.mubr.bf16.vlgmr.msra.gmra.mrb[0].mxu1 %v9259_v14  ;;  %1160 = vmatprep.subr.bf16.mxu0 %v7818_v13 }
 0x1de   :  { %1147 = vmatprep.mubr.bf16.mxu1 %v9263_v17 }
 0x1e0   :  { %1161 = vmatpush1.bf16.msra.mxu0 %v7816_v15 }
 0x1e1   :  { %1162 = vmatprep.subr.bf16.mxu0 %v7821_v16 }
 0x1e4   :  { %1163 = vmatpush1.bf16.msra.mxu0 %v7819_v18 }
 0x1e5   :  { %1148 = vmatmul.mubr.bf16.gmra.mrb[4].mxu1 %v9269_v28  ;;  %1164 = vmatprep.subr.bf16.mxu0 %v7824_v19 }
 0x1e6   :  { %7420 = vmatprep.mubr.msk.bf16.mxu1 %vm8910_vm3, %v8909_v29 }
 0x1e8   :  { %1165 = vmatpush1.bf16.msra.mxu0 %v7822_v20 }
 0x1e9   :  { %1166 = vmatprep.subr.bf16.mxu0 %v7827_v21 }
 0x1ec   :  { %1167 = vmatpush1.bf16.msra.mxu0 %v7825_v22 }
 0x1ed   :  { %1168 = vmatprep.subr.bf16.mxu0 %v7830_v23 }
 0x1f0   :  { %1169 = vmatpush1.bf16.msra.mxu0 %v7828_v24 }
 0x1f1   :  { %1170 = vmatprep.subr.bf16.mxu0 %v7833_v25 }
 0x1f4   :  { %1171 = vmatpush1.bf16.msra.mxu0 %v7831_v53 }
 0x1f5   :  { %1172 = vmatprep.subr.bf16.mxu0 %v7836_v57 }
 0x1f8   :  { %1173 = vmatpush1.bf16.msra.mxu0 %v7834_v3 }
 0x1f9   :  { %1174 = vmatprep.subr.bf16.mxu0 %v7839_v4 }
 0x1fc   :  { %1175 = vmatpush1.bf16.msra.mxu0 %v7837_v26 }
 0x1fd   :  { %1176 = vmatprep.subr.bf16.mxu0 %v7842_v27  ;;  %v9381_v27 = vsub.s32 2, %v9180_v38 }
 0x2ae   :  { %v690_v45 = vpop.f32.mrb[0].mxu0 }
 0x2af   :  { %v692_v47 = vpop.f32.mrb[1].mxu0  ;;  %v691_v49 = vadd.f32 %v690_v45, %v489_v40  ;;  %v1221_v45 = vld [vmem:[%s10113_s21] sm:$0x1] }
 0x2b0   :  { %v1139_v11 = vpop.f32.mrb[0].mxu1  ;;  %v9296_v50 = vadd.f32 %v692_v47, %v493_v41  ;;  %v694_v51 = vpop.f32.mrb[2].mxu0  ;;  %vm1223_vm5 = vnez %v1221_v45  ;;  %v8911_v47 = vmov 0  }
 0x2b1   :  { %v1141_v34 = vpop.f32.mrb[1].mxu1  ;;  %v1140_v36 = vadd.f32 %v1139_v11, %v768_v54  ;;  %v696_v55 = vpop.f32.mrb[3].mxu0  ;;  %v9301_v61 = vpack.c.bf16 %v691_v49, %v691_v49  ;;  %v695_v8 = vadd.f32 %v694_v51, %v489_v40  ;;  %v7845_v11 = vld [vmem:[%s10106_s24 + $0x14c] ss:$16 sps:$4 sm:$0xff]   ;;  %v1222_v49 = vld [vmem:[%s10113_s21 + $0x1] sm:$0x1] }
 0x2b2   :  { %v1143_v35 = vpop.f32.mrb[2].mxu1  ;;  %v1142_v42 = vadd.f32 %v1141_v34, %v772_v32  ;;  %v9298_v58 = vadd.f32 %v696_v55, %v493_v41  ;;  %v7846_v34 = vld [vmem:[%s10106_s24 + $0x168] ss:$16 sps:$4 sm:$0xff]   ;;  %v7857_v40 = vld [vmem:[%s10106_s24 + $0x1cc] ss:$16 sps:$4 sm:$0xff]   ;;  %vm1224_vm6 = vnez %v1222_v49 }
 0x2b3   :  { %v1144_v37 = vadd.f32 %v1143_v35, %v768_v54  ;;  %v1145_v39 = vpop.f32.mrb[3].mxu1  ;;  %v9314_v9 = vpack.c.bf16 %v695_v8, %v695_v8  ;;  %v7851_v35 = vld [vmem:[%s10106_s24 + $0x18c] ss:$16 sps:$4 sm:$0xff]   ;;  %v7855_v41 = vld [vmem:[%s10106_s24 + $0x1c8] ss:$16 sps:$4 sm:$0xff]  }
 0x2b4   :  { %v1146_v43 = vadd.f32 %v1145_v39, %v772_v32  ;;  %v7852_v39 = vld [vmem:[%s10106_s24 + $0x1a8] ss:$16 sps:$4 sm:$0xff]  }
 0x2b5   :  { %v9290_v44 = vpack.c.bf16 %v1144_v37, %v1140_v36  ;;  %v7849_v36 = vld [vmem:[%s10106_s24 + $0x188] ss:$16 sps:$4 sm:$0xff]   ;;  %v7854_v37 = vld [vmem:[%s10106_s24 + $0x1ac] ss:$16 sps:$4 sm:$0xff]  }
 0x2b6   :  { %v9292_v46 = vpack.c.bf16 %v1146_v43, %v1142_v42  ;;  %v7860_v42 = vld [vmem:[%s10106_s24 + $0x1ec] ss:$16 sps:$4 sm:$0xff]   ;;  %v7858_v43 = vld [vmem:[%s10106_s24 + $0x1e8] ss:$16 sps:$4 sm:$0xff]  }
 0x2b7   :  { %v1235_v48 = vsel %vm1230_vm4, %v9290_v44, 0 }
 0x2b8   :  { %v1149_v52 = vpop.f32.mrb[4].mxu1  ;;  %7419 = vmatpush3.bf16.xpose.msra.mxu1 %v1235_v48  ;;  %v1325_v48 = vsel %vm1223_vm5, 16843009, %v8911_v47 }
 0x2b9   :  { %v1151_v56 = vpop.f32.mrb[5].mxu1  ;;  %7424 = vmatprep.subr.bf16.mxu1 %v8909_v29  ;;  %v1150_v60 = vadd.f32 %v1149_v52, %v768_v54  ;;  %v1327_v51 = vunpack.c.0.s8 %v1325_v48  ;;  %v1326_v52 = vsel %vm1224_vm6, 16843009, %v8911_v47 }
 0x2ba   :  { %v1153_v59 = vpop.f32.mrb[6].mxu1  ;;  %v1152_v0 = vadd.f32 %v1151_v56, %v772_v32  ;;  %v1328_v56 = vunpack.c.0.s8 %v1326_v52 }
 0x2bb   :  { %v1154_v62 = vadd.f32 %v1153_v59, %v768_v54  ;;  %v1155_v63 = vpop.f32.mrb[7].mxu1  ;;  %v7840_v54 = vld [vmem:[%s10106_s24 + $0x128] ss:$16 sps:$4 sm:$0xff]   ;;  %vm1329_vm7 = vcmp.ne.s32.totalorder %v1327_v51, 0 }
 0x2bc   :  { %v1156_v1 = vadd.f32 %v1155_v63, %v772_v32  ;;  %1177 = vmatpush1.bf16.msra.mxu0 %v7840_v54  ;;  %v7843_v32 = vld [vmem:[%s10106_s24 + $0x148] ss:$16 sps:$4 sm:$0xff]   ;;  %v1331_v55 = vsel %vm1329_vm7, 1, %v8911_v47  ;;  %vm1330_vm8 = vcmp.ne.s32.totalorder %v1328_v56, 0 }
 0x2bd   :  { %v9303_v2 = vpack.c.bf16 %v1154_v62, %v1150_v60  ;;  %1178 = vmatprep.subr.bf16.mxu0 %v7845_v11  ;;  %v1332_v62 = vsel %vm1330_vm8, 1, %v8911_v47  ;;  %v9384_v11 = vsub.s32 3, %v9180_v38 }
 0x2be   :  { %v9305_v6 = vpack.c.bf16 %v1156_v1, %v1152_v0  ;;  %v1340_v8 = vrot.slane %v1332_v62, %v9277_v30 }
 0x2bf   :  { %7421 = vmatmul.mubr.msk.bf16.vlgmr.msra.gmra.mrb[8].mxu1 %vm1230_vm4, %v9301_v61  ;;  %v1281_v7 = vsel %vm1230_vm4, %v9303_v2, 0 }
 0x2c0   :  { %7425 = vmatpush3.bf16.xpose.msra.mxu1 %v1281_v7  ;;  %7426 = vmatprep.mubr.msk.bf16.mxu1 %vm8910_vm3, %v8909_v29  ;;  %vm9369_vm11 = vcmp.eq.s32.totalorder %v1340_v8, 1 }
 0x2c1   :  { %7430 = vmatprep.subr.bf16.mxu1 %v8909_v29  ;;  %1179 = vmatpush1.bf16.msra.mxu0 %v7843_v32 }
 0x2c2   :  { %1180 = vmatprep.subr.bf16.mxu0 %v7848_v33  ;;  %v776_v33 = vrot.slane %v9279_v31, %v9381_v27 }
 0x2c5   :  { %1181 = vmatpush1.bf16.msra.mxu0 %v7846_v34  ;;  %v780_v34 = vrot.slane %v9279_v31, %v9384_v11 }
 0x2c6   :  { %1182 = vmatprep.subr.bf16.mxu0 %v7851_v35 }
 0x2c7   :  { %7427 = vmatmul.mubr.msk.bf16.vlgmr.msra.gmra.mrb[12].mxu1 %vm1230_vm4, %v9314_v9 }
 0x2c8   :  { %7432 = vmatprep.mubr.msk.bf16.mxu1 %vm8910_vm3, %v8909_v29 }
 0x2c9   :  { %1183 = vmatpush1.bf16.msra.mxu0 %v7849_v36 }
 0x2ca   :  { %1184 = vmatprep.subr.bf16.mxu0 %v7854_v37 }
 0x2cd   :  { %1185 = vmatpush1.bf16.msra.mxu0 %v7852_v39 }
 0x2ce   :  { %1186 = vmatprep.subr.bf16.mxu0 %v7857_v40 }
 0x2d1   :  { %1187 = vmatpush1.bf16.msra.mxu0 %v7855_v41 }
 0x2d2   :  { %1188 = vmatprep.subr.bf16.mxu0 %v7860_v42 }
 0x2d5   :  { %1189 = vmatpush1.bf16.msra.mxu0 %v7858_v43 }
 0x2d6   :  { %7490 = vmatprep.subr.bf16.mxu0 %v8909_v29 }
 0x2d8   :  { %1191 = vmatmul.mubr.bf16.vlgmr.msra.gmra.mrb[4].mxu0 %v9259_v14  ;;  %v1336_v14 = vrot.slane %v1331_v55, %v9277_v30 }
 0x2d9   :  { %1200 = vmatprep.mubr.bf16.mxu0 %v9263_v17 }
 0x2da   :  { %vm9361_vm9 = vcmp.eq.s32.totalorder %v1336_v14, 1 }
 0x2e0   :  { %1201 = vmatmul.mubr.bf16.gmra.mrb[8].mxu0 %v9269_v28 }
 0x2e1   :  { %7492 = vmatprep.mubr.msk.bf16.mxu0 %vm8910_vm3, %v8909_v29 }
 0x392   :  { %v1271_v17 = vpop.f32.mrb[8].mxu1 }
 0x393   :  { %v1323_v59 = vmul.f32 0.17677669, %v1271_v17  ;;  %v7422_v60 = vpop.f32.mrb[9].mxu1 }
 0x394   :  { %v1274_v63 = vpop.f32.mrb[10].mxu1 }
 0x395   :  { %v1343_v0 = vsel %vm9361_vm9, -1e+30, %v1323_v59  ;;  %v7423_v1 = vpop.f32.mrb[11].mxu1 }
 0x396   :  { %v1346_v7 = vsel %vm1345_vm10, %v1343_v0, -inf }
 0x397   :  { %1347 = vmax.xlane.f32.xlu0 %v1346_v7 }
 0x39a   :  { %v1317_v10 = vpop.f32.mrb[12].mxu1 }
 0x39b   :  { %v1324_v13 = vmul.f32 0.17677669, %v1317_v10  ;;  %v7428_v15 = vpop.f32.mrb[13].mxu1 }
 0x39c   :  { %v1320_v16 = vpop.f32.mrb[14].mxu1 }
 0x39d   :  { %v7429_v18 = vpop.f32.mrb[15].mxu1  ;;  %v1344_v19 = vsel %vm9369_vm11, -1e+30, %v1324_v13 }
 0x39e   :  { %v1349_v20 = vsel %vm1345_vm10, %v1344_v19, -inf }
 0x39f   :  { %1350 = vmax.xlane.f32.xlu0 %v1349_v20 }
 0x3ab   :  { %v1192_v54 = vpop.f32.mrb[4].mxu0 }
 0x3ac   :  { %v1194_v32 = vpop.f32.mrb[5].mxu0  ;;  %v1193_v37 = vadd.f32 %v1192_v54, %v776_v33 }
 0x3ad   :  { %v1196_v35 = vpop.f32.mrb[6].mxu0  ;;  %v1195_v39 = vadd.f32 %v1194_v32, %v780_v34 }
 0x3ae   :  { %v1198_v36 = vpop.f32.mrb[7].mxu0  ;;  %v1197_v40 = vadd.f32 %v1196_v35, %v776_v33 }
 0x3af   :  { %v1199_v41 = vadd.f32 %v1198_v36, %v780_v34 }
 0x3b0   :  { %v9390_v42 = vpack.c.bf16 %v1197_v40, %v1193_v37 }
 0x3b1   :  { %v9392_v43 = vpack.c.bf16 %v1199_v41, %v1195_v39 }
 0x3b2   :  { %7431 = vmatpush3.bf16.msra.mxu1 %v9390_v42 }
 0x3b3   :  { %v1202_v45 = vpop.f32.mrb[8].mxu0  ;;  %7436 = vmatprep.subr.bf16.mxu1 %v8909_v29 }
 0x3b4   :  { %v1204_v47 = vpop.f32.mrb[9].mxu0  ;;  %v1203_v51 = vadd.f32 %v1202_v45, %v776_v33 }
 0x3b5   :  { %1459 = vrot.lane.b32.xlu0 %v9290_v44, %s8912_s6  ;;  %v1206_v48 = vpop.f32.mrb[10].mxu0  ;;  %v1205_v31 = vadd.f32 %v1204_v47, %v780_v34 }
 0x3b6   :  { %v1208_v49 = vpop.f32.mrb[11].mxu0  ;;  %v1207_v52 = vadd.f32 %v1206_v48, %v776_v33 }
 0x3b7   :  { %v1209_v55 = vadd.f32 %v1208_v49, %v780_v34 }
 0x3b8   :  { %v9398_v56 = vpack.c.bf16 %v1207_v52, %v1203_v51 }
 0x3b9   :  { %v9400_v14 = vpack.c.bf16 %v1209_v55, %v1205_v31 }
 0x424   :  { %v1348_v21 = vpop.xlane.xlu0 %1347 }
 0x425   :  { %v1352_v22 = vsub.f32 %v1343_v0, %v1348_v21 }
 0x427   :  { %v1354_v23 = vmul.f32 1.442695, %v1352_v22 }
 0x429   :  { %8245 = vpow2.f32 %v1354_v23 }
 0x42c   :  { %v1351_v24 = vpop.xlane.xlu0 %1350 }
 0x42d   :  { %v1353_v25 = vsub.f32 %v1344_v19, %v1351_v24 }
 0x42f   :  { %v1356_v53 = vmul.f32 1.442695, %v1353_v25 }
 0x430   :  { %v1460_v7 = vpop.permute.xlu0 %1459 }
 0x431   :  { %8247 = vpow2.f32 %v1356_v53  ;;  %v1465_v13 = vsel %vm1230_vm4, %v1460_v7, 0 }
 0x433   :  { %v8246_v57 = vpop.eup %8245 }
 0x434   :  { %v1358_v3 = vsel %vm1345_vm10, %v8246_v57, 0.0 }
 0x435   :  { %1359 = vadd.xlane.f32.xlu1 %v1358_v3 }
 0x43b   :  { %v8248_v4 = vpop.eup %8247 }
 0x43c   :  { %v1361_v26 = vsel %vm1345_vm10, %v8248_v4, 0.0 }
 0x43d   :  { %1362 = vadd.xlane.f32.xlu1 %v1361_v26 }
 0x44e   :  { %1456 = vrot.lane.b32.xlu1 %v9301_v61, %s8912_s6 }
 0x452   :  { %1510 = vrot.lane.b32.xlu1 %v9303_v2, %s8912_s6 }
 0x456   :  { %1507 = vrot.lane.b32.xlu1 %v9314_v9, %s8912_s6 }
 0x4c2   :  { %v1360_v17 = vpop.xlane.xlu1 %1359 }
 0x4c3   :  { %8249 = vrcp.f32 %v1360_v17 }
 0x4ca   :  { %v1363_v59 = vpop.xlane.xlu1 %1362 }
 0x4cb   :  { %8251 = vrcp.f32 %v1363_v59 }
 0x4cd   :  { %v8250_v60 = vpop.eup %8249 }
 0x4ce   :  { %v1366_v62 = vmul.f32 %v8250_v60, %v8246_v57  ;;  %v1457_v10 = vpop.permute.xlu1 %1456 }
 0x4d0   :  { %v1368_v63 = vpack.c.bf16 %v1366_v62, %v1366_v62 }
 0x4d2   :  { %7433 = vmatmul.mubr.msk.bf16.vlgmr.msra.gmra.mrb[16].mxu1 %vm1345_vm10, %v1368_v63  ;;  %v1511_v15 = vpop.permute.xlu1 %1510 }
 0x4d3   :  { %7437 = vmatpush3.bf16.msra.mxu1 %v9398_v56  ;;  %7438 = vmatprep.mubr.msk.bf16.mxu1 %vm8910_vm3, %v8909_v29  ;;  %v1516_v16 = vsel %vm1230_vm4, %v1511_v15, 0 }
 0x4d4   :  { %7442 = vmatprep.subr.bf16.mxu1 %v8909_v29 }
 0x4d5   :  { %v8252_v0 = vpop.eup %8251 }
 0x4d6   :  { %v1367_v1 = vmul.f32 %v8252_v0, %v8248_v4  ;;  %v1508_v18 = vpop.permute.xlu1 %1507 }
 0x4d8   :  { %v1369_v8 = vpack.c.bf16 %v1367_v1, %v1367_v1 }
 0x4da   :  { %7439 = vmatmul.mubr.msk.bf16.vlgmr.msra.gmra.mrb[20].mxu1 %vm1345_vm10, %v1369_v8 }
 0x4db   :  { %7444 = vmatprep.mubr.msk.bf16.mxu1 %vm8910_vm3, %v8909_v29 }
 0x4dc   :  { %7443 = vmatpush3.bf16.xpose.msra.mxu1 %v1465_v13 }
 0x4dd   :  { %7448 = vmatprep.subr.bf16.mxu1 %v8909_v29 }
 0x4e3   :  { %7445 = vmatmul.mubr.msk.bf16.vlgmr.msra.gmra.mrb[24].mxu1 %vm1230_vm4, %v1457_v10 }
 0x4e4   :  { %7449 = vmatpush3.bf16.xpose.msra.mxu1 %v1516_v16  ;;  %7450 = vmatprep.mubr.msk.bf16.mxu1 %vm8910_vm3, %v8909_v29 }
 0x4e5   :  { %7454 = vmatprep.subr.bf16.mxu1 %v8909_v29 }
 0x4eb   :  { %7451 = vmatmul.mubr.msk.bf16.vlgmr.msra.gmra.mrb[28].mxu1 %vm1230_vm4, %v1508_v18 }
 0x4ec   :  { %7456 = vmatprep.mubr.msk.bf16.mxu1 %vm8910_vm3, %v8909_v29 }
 0x5a5   :  { %v9424_v19 = vpop.f32.mrb[16].mxu1 }
 0x5a6   :  { %v7434_v20 = vpop.f32.mrb[17].mxu1 }
 0x5a7   :  { %v1410_v21 = vpop.f32.mrb[18].mxu1 }
 0x5a8   :  { %v7435_v22 = vpop.f32.mrb[19].mxu1 }
 0x5ad   :  { %v9426_v23 = vpop.f32.mrb[20].mxu1 }
 0x5ae   :  { %v7440_v24 = vpop.f32.mrb[21].mxu1 }
 0x5af   :  { %v1453_v25 = vpop.f32.mrb[22].mxu1 }
 0x5b0   :  { %v7441_v53 = vpop.f32.mrb[23].mxu1 }
 0x5b6   :  { %v1501_v57 = vpop.f32.mrb[24].mxu1 }
 0x5b7   :  { %v1558_v3 = vmul.f32 0.17677669, %v1501_v57  ;;  %v7446_v4 = vpop.f32.mrb[25].mxu1 }
 0x5b8   :  { %v1504_v26 = vpop.f32.mrb[26].mxu1 }
 0x5b9   :  { %v7447_v54 = vpop.f32.mrb[27].mxu1  ;;  %v1560_v32 = vsel %vm9361_vm9, -1e+30, %v1558_v3 }
 0x5ba   :  { %v1562_v33 = vsel %vm1345_vm10, %v1560_v32, -inf }
 0x5bb   :  { %1563 = vmax.xlane.f32.xlu0 %v1562_v33 }
 0x5be   :  { %v1552_v34 = vpop.f32.mrb[28].mxu1 }
 0x5bf   :  { %v1559_v35 = vmul.f32 0.17677669, %v1552_v34  ;;  %v7452_v36 = vpop.f32.mrb[29].mxu1 }
 0x5c0   :  { %v1555_v37 = vpop.f32.mrb[30].mxu1 }
 0x5c1   :  { %v7453_v39 = vpop.f32.mrb[31].mxu1  ;;  %v1561_v40 = vsel %vm9369_vm11, -1e+30, %v1559_v35 }
 0x5c2   :  { %v1565_v41 = vsel %vm1345_vm10, %v1561_v40, -inf }
 0x5c3   :  { %1566 = vmax.xlane.f32.xlu1 %v1565_v41 }
 0x5d4   :  { %1634 = vrot.lane.b32.xlu1 %v9398_v56, %s8912_s6 }
 0x5d8   :  { %1682 = vrot.lane.b32.xlu1 %v9290_v44, %s8913_s26 }
 0x5dc   :  { %1680 = vrot.lane.b32.xlu1 %v9301_v61, %s8913_s26 }
 0x5e0   :  { %1730 = vrot.lane.b32.xlu1 %v9314_v9, %s8913_s26 }
 0x648   :  { %v1564_v45 = vpop.xlane.xlu0 %1563 }
 0x649   :  { %v1568_v47 = vsub.f32 %v1560_v32, %v1564_v45 }
 0x64b   :  { %v1570_v48 = vmul.f32 1.442695, %v1568_v47 }
 0x64d   :  { %8253 = vpow2.f32 %v1570_v48 }
 0x650   :  { %v1567_v49 = vpop.xlane.xlu1 %1566 }
 0x651   :  { %v1569_v51 = vsub.f32 %v1561_v40, %v1567_v49 }
 0x653   :  { %v1572_v31 = vmul.f32 1.442695, %v1569_v51 }
 0x654   :  { %v1635_v8 = vpop.permute.xlu1 %1634 }
 0x655   :  { %8255 = vpow2.f32 %v1572_v31 }
 0x657   :  { %v8254_v52 = vpop.eup %8253 }
 0x658   :  { %v1574_v55 = vsel %vm1345_vm10, %v8254_v52, 0.0  ;;  %v1683_v15 = vpop.permute.xlu1 %1682 }
 0x659   :  { %1575 = vadd.xlane.f32.xlu0 %v1574_v55  ;;  %v1688_v18 = vsel %vm1230_vm4, %v1683_v15, 0 }
 0x65c   :  { %v1681_v21 = vpop.permute.xlu1 %1680 }
 0x65f   :  { %v8256_v17 = vpop.eup %8255 }
 0x660   :  { %v1577_v59 = vsel %vm1345_vm10, %v8256_v17, 0.0  ;;  %v1731_v24 = vpop.permute.xlu1 %1730 }
 0x661   :  { %1578 = vadd.xlane.f32.xlu0 %v1577_v59 }
 0x677   :  { %1587 = vrot.lane.b32.xlu0 %v9390_v42, %s8912_s6 }
 0x67b   :  { %1732 = vrot.lane.b32.xlu0 %v9303_v2, %s8913_s26 }
 0x6e6   :  { %v1576_v60 = vpop.xlane.xlu0 %1575 }
 0x6e7   :  { %8257 = vrcp.f32 %v1576_v60 }
 0x6ee   :  { %v1579_v62 = vpop.xlane.xlu0 %1578 }
 0x6ef   :  { %8259 = vrcp.f32 %v1579_v62 }
 0x6f1   :  { %v8258_v63 = vpop.eup %8257 }
 0x6f2   :  { %v1582_v0 = vmul.f32 %v8258_v63, %v8254_v52  ;;  %v1588_v1 = vpop.permute.xlu0 %1587 }
 0x6f3   :  { %7455 = vmatpush3.bf16.msra.mxu1 %v1588_v1 }
 0x6f4   :  { %v1584_v7 = vpack.c.bf16 %v1582_v0, %v1582_v0  ;;  %7460 = vmatprep.subr.bf16.mxu1 %v8909_v29 }
 0x6f6   :  { %7457 = vmatmul.mubr.msk.bf16.vlgmr.msra.gmra.mrb[32].mxu1 %vm1345_vm10, %v1584_v7  ;;  %v1733_v20 = vpop.permute.xlu0 %1732 }
 0x6f7   :  { %7461 = vmatpush3.bf16.msra.mxu1 %v1635_v8  ;;  %7462 = vmatprep.mubr.msk.bf16.mxu1 %vm8910_vm3, %v8909_v29  ;;  %v1738_v22 = vsel %vm1230_vm4, %v1733_v20, 0 }
 0x6f8   :  { %7466 = vmatprep.subr.bf16.mxu1 %v8909_v29 }
 0x6f9   :  { %v8260_v10 = vpop.eup %8259 }
 0x6fa   :  { %v1583_v13 = vmul.f32 %v8260_v10, %v8256_v17 }
 0x6fc   :  { %v1585_v16 = vpack.c.bf16 %v1583_v13, %v1583_v13 }
 0x6fe   :  { %7463 = vmatmul.mubr.msk.bf16.vlgmr.msra.gmra.mrb[36].mxu1 %vm1345_vm10, %v1585_v16 }
 0x6ff   :  { %7468 = vmatprep.mubr.msk.bf16.mxu1 %vm8910_vm3, %v8909_v29 }
 0x700   :  { %7467 = vmatpush3.bf16.xpose.msra.mxu1 %v1688_v18 }
 0x701   :  { %7472 = vmatprep.subr.bf16.mxu1 %v8909_v29 }
 0x707   :  { %7469 = vmatmul.mubr.msk.bf16.vlgmr.msra.gmra.mrb[40].mxu1 %vm1230_vm4, %v1681_v21 }
 0x708   :  { %7473 = vmatpush3.bf16.xpose.msra.mxu1 %v1738_v22  ;;  %7474 = vmatprep.mubr.msk.bf16.mxu1 %vm8910_vm3, %v8909_v29 }
 0x709   :  { %7478 = vmatprep.subr.bf16.mxu1 %v8909_v29 }
 0x70f   :  { %7475 = vmatmul.mubr.msk.bf16.vlgmr.msra.gmra.mrb[44].mxu1 %vm1230_vm4, %v1731_v24 }
 0x710   :  { %7480 = vmatprep.mubr.msk.bf16.mxu1 %vm8910_vm3, %v8909_v29 }
 0x7c9   :  { %v9466_v25 = vpop.f32.mrb[32].mxu1 }
 0x7ca   :  { %v7458_v53 = vpop.f32.mrb[33].mxu1 }
 0x7cb   :  { %v1630_v57 = vpop.f32.mrb[34].mxu1 }
 0x7cc   :  { %v7459_v3 = vpop.f32.mrb[35].mxu1 }
 0x7d1   :  { %v9468_v4 = vpop.f32.mrb[36].mxu1 }
 0x7d2   :  { %v7692_v26 = vpack.i.bf16 %v9468_v4, %v9466_v25  ;;  %v7464_v54 = vpop.f32.mrb[37].mxu1 }
 0x7d3   :  { %v1677_v32 = vpop.f32.mrb[38].mxu1 }
 0x7d4   :  { %v7465_v33 = vpop.f32.mrb[39].mxu1 }
 0x7da   :  { %v1724_v34 = vpop.f32.mrb[40].mxu1 }
 0x7db   :  { %v1780_v35 = vmul.f32 0.17677669, %v1724_v34  ;;  %v7470_v36 = vpop.f32.mrb[41].mxu1 }
 0x7dc   :  { %v1727_v37 = vpop.f32.mrb[42].mxu1 }
 0x7dd   :  { %v7471_v39 = vpop.f32.mrb[43].mxu1  ;;  %v1782_v40 = vsel %vm9361_vm9, -1e+30, %v1780_v35 }
 0x7de   :  { %v1784_v41 = vsel %vm1345_vm10, %v1782_v40, -inf }
 0x7df   :  { %1785 = vmax.xlane.f32.xlu0 %v1784_v41 }
 0x7e2   :  { %v1774_v45 = vpop.f32.mrb[44].mxu1 }
 0x7e3   :  { %v1781_v47 = vmul.f32 0.17677669, %v1774_v45  ;;  %v7476_v48 = vpop.f32.mrb[45].mxu1 }
 0x7e4   :  { %v1777_v49 = vpop.f32.mrb[46].mxu1 }
 0x7e5   :  { %v7477_v51 = vpop.f32.mrb[47].mxu1  ;;  %v1783_v31 = vsel %vm9369_vm11, -1e+30, %v1781_v47 }
 0x7e6   :  { %v1787_v52 = vsel %vm1345_vm10, %v1783_v31, -inf }
 0x7e7   :  { %1788 = vmax.xlane.f32.xlu1 %v1787_v52 }
 0x7f8   :  { %1854 = vrot.lane.b32.xlu1 %v9398_v56, %s8913_s26 }
 0x7fc   :  { %1902 = vrot.lane.b32.xlu1 %v9290_v44, %s8892_s30 }
 0x800   :  { %1952 = vrot.lane.b32.xlu1 %v9303_v2, %s8892_s30 }
 0x804   :  { %1950 = vrot.lane.b32.xlu1 %v9314_v9, %s8892_s30 }
 0x86c   :  { %v1786_v55 = vpop.xlane.xlu0 %1785 }
 0x86d   :  { %v1790_v17 = vsub.f32 %v1782_v40, %v1786_v55 }
 0x86f   :  { %v1792_v59 = vmul.f32 1.442695, %v1790_v17 }
 0x871   :  { %8261 = vpow2.f32 %v1792_v59 }
 0x874   :  { %v1789_v60 = vpop.xlane.xlu1 %1788 }
 0x875   :  { %v1791_v62 = vsub.f32 %v1783_v31, %v1789_v60 }
 0x877   :  { %v1794_v63 = vmul.f32 1.442695, %v1791_v62 }
 0x878   :  { %v1855_v0 = vpop.permute.xlu1 %1854 }
 0x879   :  { %8263 = vpow2.f32 %v1794_v63 }
 0x87b   :  { %v8262_v1 = vpop.eup %8261 }
 0x87c   :  { %v1903_v7 = vpop.permute.xlu1 %1902  ;;  %v1796_v8 = vsel %vm1345_vm10, %v8262_v1, 0.0 }
 0x87d   :  { %v1908_v44 = vsel %vm1230_vm4, %v1903_v7, 0  ;;  %1797 = vadd.xlane.f32.xlu0 %v1796_v8 }
 0x87e   :  { %7491 = vmatpush3.bf16.xpose.msra.mxu0 %v1908_v44 }
 0x87f   :  { %7502 = vmatprep.subr.bf16.mxu0 %v8909_v29 }
 0x880   :  { %v1953_v24 = vpop.permute.xlu1 %1952 }
 0x881   :  { %v1958_v57 = vsel %vm1230_vm4, %v1953_v24, 0 }
 0x883   :  { %v8264_v2 = vpop.eup %8263 }
 0x884   :  { %v1799_v9 = vsel %vm1345_vm10, %v8264_v2, 0.0  ;;  %v1951_v3 = vpop.permute.xlu1 %1950 }
 0x885   :  { %1800 = vadd.xlane.f32.xlu0 %v1799_v9 }
 0x89b   :  { %1808 = vrot.lane.b32.xlu0 %v9390_v42, %s8913_s26 }
 0x89f   :  { %1900 = vrot.lane.b32.xlu0 %v9301_v61, %s8892_s30 }
 0x90a   :  { %v1798_v10 = vpop.xlane.xlu0 %1797 }
 0x90b   :  { %8265 = vrcp.f32 %v1798_v10 }
 0x912   :  { %v1801_v13 = vpop.xlane.xlu0 %1800 }
 0x913   :  { %8267 = vrcp.f32 %v1801_v13 }
 0x915   :  { %v8266_v15 = vpop.eup %8265 }
 0x916   :  { %v1804_v16 = vmul.f32 %v8266_v15, %v8262_v1  ;;  %v1809_v18 = vpop.permute.xlu0 %1808 }
 0x917   :  { %7479 = vmatpush3.bf16.msra.mxu1 %v1809_v18 }
 0x918   :  { %v1806_v20 = vpack.c.bf16 %v1804_v16, %v1804_v16  ;;  %7484 = vmatprep.subr.bf16.mxu1 %v8909_v29 }
 0x91a   :  { %7481 = vmatmul.mubr.msk.bf16.vlgmr.msra.gmra.mrb[48].mxu1 %vm1345_vm10, %v1806_v20  ;;  %v1901_v21 = vpop.permute.xlu0 %1900 }
 0x91b   :  { %7485 = vmatpush3.bf16.msra.mxu1 %v1855_v0  ;;  %7493 = vmatmul.mubr.msk.bf16.vlgmr.msra.gmra.mrb[12].mxu0 %vm1230_vm4, %v1901_v21 }
 0x91c   :  { %7486 = vmatprep.mubr.msk.bf16.mxu1 %vm8910_vm3, %v8909_v29  ;;  %7496 = vmatprep.subr.bf16.mxu1 %v8909_v29 }
 0x91d   :  { %v8268_v61 = vpop.eup %8267  ;;  %7504 = vmatprep.mubr.msk.bf16.mxu0 %vm8910_vm3, %v8909_v29 }
 0x91e   :  { %v1805_v22 = vmul.f32 %v8268_v61, %v8264_v2 }
 0x920   :  { %v1807_v53 = vpack.c.bf16 %v1805_v22, %v1805_v22 }
 0x922   :  { %7487 = vmatmul.mubr.msk.bf16.vlgmr.msra.gmra.mrb[52].mxu1 %vm1345_vm10, %v1807_v53 }
 0x923   :  { %7498 = vmatprep.mubr.msk.bf16.mxu1 %vm8910_vm3, %v8909_v29 }
 0x924   :  { %7497 = vmatpush3.bf16.xpose.msra.mxu1 %v1958_v57 }
 0x925   :  { %7508 = vmatprep.subr.bf16.mxu1 %v8909_v29 }
 0x92b   :  { %7499 = vmatmul.mubr.msk.bf16.vlgmr.msra.gmra.mrb[56].mxu1 %vm1230_vm4, %v1951_v3  ;;  %v2175_v3 = vsel %vm1230_vm4, %v9305_v6, 0 }
 0x92c   :  { %7510 = vmatprep.mubr.msk.bf16.mxu1 %vm8910_vm3, %v8909_v29 }
 0x9ed   :  { %v9510_v54 = vpop.f32.mrb[48].mxu1 }
 0x9ee   :  { %v7482_v32 = vpop.f32.mrb[49].mxu1  ;;  %v1944_v33 = vpop.f32.mrb[12].mxu0 }
 0x9ef   :  { %v2000_v34 = vmul.f32 0.17677669, %v1944_v33  ;;  %v1851_v35 = vpop.f32.mrb[50].mxu1  ;;  %v7494_v36 = vpop.f32.mrb[13].mxu0  ;;  %v9544_v32 = vpack.c.bf16 %v9296_v50, %v9296_v50  ;;  %v9550_v33 = vpack.c.bf16 %v9298_v58, %v9298_v58 }
 0x9f0   :  { %v7483_v37 = vpop.f32.mrb[51].mxu1  ;;  %v1947_v39 = vpop.f32.mrb[14].mxu0 }
 0x9f1   :  { %v7495_v40 = vpop.f32.mrb[15].mxu0  ;;  %v2002_v41 = vsel %vm9361_vm9, -1e+30, %v2000_v34 }
 0x9f2   :  { %v2004_v45 = vsel %vm1345_vm10, %v2002_v41, -inf }
 0x9f3   :  { %2005 = vmax.xlane.f32.xlu0 %v2004_v45 }
 0x9f5   :  { %v9515_v47 = vpop.f32.mrb[52].mxu1 }
 0x9f6   :  { %v7702_v48 = vpack.i.bf16 %v9515_v47, %v9510_v54  ;;  %v7488_v49 = vpop.f32.mrb[53].mxu1 }
 0x9f7   :  { %v1897_v51 = vpop.f32.mrb[54].mxu1 }
 0x9f8   :  { %v7489_v31 = vpop.f32.mrb[55].mxu1 }
 0x9fe   :  { %v1994_v52 = vpop.f32.mrb[56].mxu1 }
 0x9ff   :  { %v2001_v55 = vmul.f32 0.17677669, %v1994_v52  ;;  %v7500_v17 = vpop.f32.mrb[57].mxu1 }
 0xa00   :  { %v1997_v59 = vpop.f32.mrb[58].mxu1 }
 0xa01   :  { %v7501_v60 = vpop.f32.mrb[59].mxu1  ;;  %v2003_v62 = vsel %vm9369_vm11, -1e+30, %v2001_v55 }
 0xa02   :  { %v2007_v63 = vsel %vm1345_vm10, %v2003_v62, -inf }
 0xa03   :  { %2008 = vmax.xlane.f32.xlu1 %v2007_v63 }
 0xa14   :  { %2074 = vrot.lane.b32.xlu1 %v9398_v56, %s8892_s30 }
 0xa80   :  { %v2006_v0 = vpop.xlane.xlu0 %2005 }
 0xa81   :  { %v2010_v1 = vsub.f32 %v2002_v41, %v2006_v0 }
 0xa83   :  { %v2012_v7 = vmul.f32 1.442695, %v2010_v1 }
 0xa85   :  { %8269 = vpow2.f32 %v2012_v7 }
 0xa8f   :  { %v8270_v8 = vpop.eup %8269 }
 0xa90   :  { %v2009_v44 = vpop.xlane.xlu1 %2008  ;;  %v2016_v2 = vsel %vm1345_vm10, %v8270_v8, 0.0 }
 0xa91   :  { %v2011_v9 = vsub.f32 %v2003_v62, %v2009_v44  ;;  %2017 = vadd.xlane.f32.xlu0 %v2016_v2 }
 0xa93   :  { %v2014_v10 = vmul.f32 1.442695, %v2011_v9 }
 0xa94   :  { %v2075_v13 = vpop.permute.xlu1 %2074 }
 0xa95   :  { %8271 = vpow2.f32 %v2014_v10  ;;  %7509 = vmatpush3.bf16.msra.mxu1 %v2075_v13 }
 0xa96   :  { %7520 = vmatprep.subr.bf16.mxu1 %v8909_v29 }
 0xa9f   :  { %v8272_v15 = vpop.eup %8271 }
 0xaa0   :  { %v2019_v16 = vsel %vm1345_vm10, %v8272_v15, 0.0 }
 0xaa1   :  { %2020 = vadd.xlane.f32.xlu0 %v2019_v16 }
 0xab7   :  { %2028 = vrot.lane.b32.xlu0 %v9390_v42, %s8892_s30  ;;  %v2129_v42 = vsel %vm1230_vm4, %v9292_v46, 0 }
 0xb1e   :  { %v2018_v56 = vpop.xlane.xlu0 %2017 }
 0xb1f   :  { %8273 = vrcp.f32 %v2018_v56 }
 0xb29   :  { %v8274_v18 = vpop.eup %8273 }
 0xb2a   :  { %v2024_v21 = vmul.f32 %v8274_v18, %v8270_v8 }
 0xb2c   :  { %v2026_v22 = vpack.c.bf16 %v2024_v21, %v2024_v21 }
 0xb2e   :  { %v2021_v20 = vpop.xlane.xlu0 %2020 }
 0xb2f   :  { %8275 = vrcp.f32 %v2021_v20 }
 0xb32   :  { %v2029_v61 = vpop.permute.xlu0 %2028 }
 0xb33   :  { %7503 = vmatpush3.bf16.msra.mxu0 %v2029_v61 }
 0xb34   :  { %7514 = vmatprep.subr.bf16.mxu0 %v8909_v29 }
 0xb36   :  { %7505 = vmatmul.mubr.msk.bf16.vlgmr.msra.gmra.mrb[16].mxu0 %vm1345_vm10, %v2026_v22 }
 0xb37   :  { %7516 = vmatprep.mubr.msk.bf16.mxu0 %vm8910_vm3, %v8909_v29 }
 0xb39   :  { %v8276_v24 = vpop.eup %8275 }
 0xb3a   :  { %v2025_v53 = vmul.f32 %v8276_v24, %v8272_v15 }
 0xb3c   :  { %7515 = vmatpush3.bf16.xpose.msra.mxu0 %v2129_v42  ;;  %v2027_v57 = vpack.c.bf16 %v2025_v53, %v2025_v53 }
 0xb3d   :  { %7526 = vmatprep.subr.bf16.mxu0 %v8909_v29 }
 0xb3e   :  { %7511 = vmatmul.mubr.msk.bf16.vlgmr.msra.gmra.mrb[60].mxu1 %vm1345_vm10, %v2027_v57 }
 0xb3f   :  { %7521 = vmatpush3.bf16.xpose.msra.mxu1 %v2175_v3  ;;  %7522 = vmatprep.mubr.msk.bf16.mxu1 %vm8910_vm3, %v8909_v29 }
 0xb40   :  { %7532 = vmatprep.subr.bf16.mxu1 %v8909_v29 }
 0xb43   :  { %7517 = vmatmul.mubr.msk.bf16.vlgmr.msra.gmra.mrb[20].mxu0 %vm1230_vm4, %v9544_v32 }
 0xb44   :  { %7527 = vmatpush3.bf16.msra.mxu0 %v9392_v43  ;;  %7528 = vmatprep.mubr.msk.bf16.mxu0 %vm8910_vm3, %v8909_v29 }
 0xb45   :  { %7538 = vmatprep.subr.bf16.mxu0 %v8909_v29 }
 0xb46   :  { %7523 = vmatmul.mubr.msk.bf16.vlgmr.msra.gmra.mrb[64].mxu1 %vm1230_vm4, %v9550_v33 }
 0xb47   :  { %7533 = vmatpush3.bf16.msra.mxu1 %v9400_v14  ;;  %7534 = vmatprep.mubr.msk.bf16.mxu1 %vm8910_vm3, %v8909_v29 }
 0xb48   :  { %7544 = vmatprep.subr.bf16.mxu1 %v8909_v29 }
 0xc09   :  { %v9562_v50 = vpop.f32.mrb[16].mxu0 }
 0xc0a   :  { %v7506_v58 = vpop.f32.mrb[17].mxu0 }
 0xc0b   :  { %v2071_v34 = vpop.f32.mrb[18].mxu0 }
 0xc0c   :  { %v7507_v35 = vpop.f32.mrb[19].mxu0 }
 0xc11   :  { %v9564_v36 = vpop.f32.mrb[60].mxu1 }
 0xc12   :  { %v7712_v37 = vpack.i.bf16 %v9564_v36, %v9562_v50  ;;  %v7512_v39 = vpop.f32.mrb[61].mxu1 }
 0xc13   :  { %v2117_v40 = vpop.f32.mrb[62].mxu1 }
 0xc14   :  { %v7513_v41 = vpop.f32.mrb[63].mxu1 }
 0xc16   :  { %v2165_v45 = vpop.f32.mrb[20].mxu0 }
 0xc17   :  { %v2217_v49 = vmul.f32 0.17677669, %v2165_v45  ;;  %v7518_v51 = vpop.f32.mrb[21].mxu0 }
 0xc18   :  { %v2168_v31 = vpop.f32.mrb[22].mxu0 }
 0xc19   :  { %v7519_v52 = vpop.f32.mrb[23].mxu0  ;;  %v2211_v55 = vpop.f32.mrb[64].mxu1  ;;  %v2219_v17 = vsel %vm9361_vm9, -1e+30, %v2217_v49 }
 0xc1a   :  { %v2218_v59 = vmul.f32 0.17677669, %v2211_v55  ;;  %v7524_v60 = vpop.f32.mrb[65].mxu1  ;;  %v2221_v62 = vsel %vm1345_vm10, %v2219_v17, -inf }
 0xc1b   :  { %2222 = vmax.xlane.f32.xlu1 %v2221_v62  ;;  %v2214_v63 = vpop.f32.mrb[66].mxu1 }
 0xc1c   :  { %v7525_v0 = vpop.f32.mrb[67].mxu1  ;;  %v2220_v1 = vsel %vm9369_vm11, -1e+30, %v2218_v59 }
 0xc1d   :  { %v2224_v7 = vsel %vm1345_vm10, %v2220_v1, -inf }
 0xc1e   :  { %2225 = vmax.xlane.f32.xlu0 %v2224_v7 }
 0xc2c   :  { %2385 = vrot.lane.b32.xlu1 %v9305_v6, %s8912_s6 }
 0xca8   :  { %v2223_v8 = vpop.xlane.xlu1 %2222 }
 0xca9   :  { %v2227_v44 = vsub.f32 %v2219_v17, %v2223_v8 }
 0xcab   :  { %v2229_v2 = vmul.f32 1.442695, %v2227_v44  ;;  %v2226_v9 = vpop.xlane.xlu0 %2225 }
 0xcac   :  { %v2228_v10 = vsub.f32 %v2220_v1, %v2226_v9  ;;  %v2386_v20 = vpop.permute.xlu1 %2385 }
 0xcad   :  { %8277 = vpow2.f32 %v2229_v2  ;;  %v2391_v35 = vsel %vm1230_vm4, %v2386_v20, 0 }
 0xcae   :  { %v2231_v13 = vmul.f32 1.442695, %v2228_v10 }
 0xcb0   :  { %8279 = vpow2.f32 %v2231_v13 }
 0xcb7   :  { %v8278_v15 = vpop.eup %8277 }
 0xcb8   :  { %v2233_v16 = vsel %vm1345_vm10, %v8278_v15, 0.0 }
 0xcb9   :  { %2234 = vadd.xlane.f32.xlu0 %v2233_v16 }
 0xcba   :  { %v8280_v56 = vpop.eup %8279 }
 0xcbb   :  { %v2236_v18 = vsel %vm1345_vm10, %v8280_v56, 0.0 }
 0xcbc   :  { %2237 = vadd.xlane.f32.xlu1 %v2236_v18 }
 0xccd   :  { %2331 = vrot.lane.b32.xlu1 %v9544_v32, %s8912_s6 }
 0xccf   :  { %2334 = vrot.lane.b32.xlu0 %v9292_v46, %s8912_s6 }
 0xcd1   :  { %2382 = vrot.lane.b32.xlu1 %v9550_v33, %s8912_s6 }
 0xd46   :  { %v2235_v21 = vpop.xlane.xlu0 %2234 }
 0xd47   :  { %8281 = vrcp.f32 %v2235_v21 }
 0xd49   :  { %v2238_v61 = vpop.xlane.xlu1 %2237 }
 0xd4a   :  { %8283 = vrcp.f32 %v2238_v61  ;;  %v2335_v53 = vpop.permute.xlu0 %2334 }
 0xd4b   :  { %v2340_v58 = vsel %vm1230_vm4, %v2335_v53, 0 }
 0xd4d   :  { %v2332_v39 = vpop.permute.xlu1 %2331 }
 0xd51   :  { %v8282_v22 = vpop.eup %8281  ;;  %v2383_v40 = vpop.permute.xlu1 %2382 }
 0xd52   :  { %v2241_v24 = vmul.f32 %v8282_v22, %v8278_v15 }
 0xd54   :  { %v8284_v42 = vpop.eup %8283  ;;  %v2243_v57 = vpack.c.bf16 %v2241_v24, %v2241_v24 }
 0xd55   :  { %v2242_v3 = vmul.f32 %v8284_v42, %v8280_v56 }
 0xd56   :  { %7529 = vmatmul.mubr.msk.bf16.vlgmr.msra.gmra.mrb[24].mxu0 %vm1345_vm10, %v2243_v57 }
 0xd57   :  { %7539 = vmatpush3.bf16.xpose.msra.mxu0 %v2340_v58  ;;  %v2244_v34 = vpack.c.bf16 %v2242_v3, %v2242_v3  ;;  %7540 = vmatprep.mubr.msk.bf16.mxu0 %vm8910_vm3, %v8909_v29 }
 0xd58   :  { %7550 = vmatprep.subr.bf16.mxu0 %v8909_v29 }
 0xd59   :  { %7535 = vmatmul.mubr.msk.bf16.vlgmr.msra.gmra.mrb[68].mxu1 %vm1345_vm10, %v2244_v34 }
 0xd5a   :  { %7545 = vmatpush3.bf16.xpose.msra.mxu1 %v2391_v35  ;;  %7546 = vmatprep.mubr.msk.bf16.mxu1 %vm8910_vm3, %v8909_v29 }
 0xd5b   :  { %7556 = vmatprep.subr.bf16.mxu1 %v8909_v29 }
 0xd5e   :  { %7541 = vmatmul.mubr.msk.bf16.vlgmr.msra.gmra.mrb[28].mxu0 %vm1230_vm4, %v2332_v39 }
 0xd5f   :  { %7552 = vmatprep.mubr.msk.bf16.mxu0 %vm8910_vm3, %v8909_v29 }
 0xd61   :  { %7547 = vmatmul.mubr.msk.bf16.vlgmr.msra.gmra.mrb[72].mxu1 %vm1230_vm4, %v2383_v40 }
 0xd62   :  { %7558 = vmatprep.mubr.msk.bf16.mxu1 %vm8910_vm3, %v8909_v29 }
 0xe29   :  { %v9600_v41 = vpop.f32.mrb[24].mxu0 }
 0xe2a   :  { %v7530_v45 = vpop.f32.mrb[25].mxu0 }
 0xe2b   :  { %v2285_v49 = vpop.f32.mrb[26].mxu0 }
 0xe2c   :  { %v7531_v51 = vpop.f32.mrb[27].mxu0  ;;  %v9602_v31 = vpop.f32.mrb[68].mxu1 }
 0xe2d   :  { %v7536_v52 = vpop.f32.mrb[69].mxu1 }
 0xe2e   :  { %v2328_v55 = vpop.f32.mrb[70].mxu1 }
 0xe2f   :  { %v7537_v17 = vpop.f32.mrb[71].mxu1 }
 0xe31   :  { %v2376_v59 = vpop.f32.mrb[28].mxu0 }
 0xe32   :  { %v2433_v60 = vmul.f32 0.17677669, %v2376_v59  ;;  %v7542_v62 = vpop.f32.mrb[29].mxu0 }
 0xe33   :  { %v2379_v63 = vpop.f32.mrb[30].mxu0 }
 0xe34   :  { %v7543_v0 = vpop.f32.mrb[31].mxu0  ;;  %v2427_v1 = vpop.f32.mrb[72].mxu1  ;;  %v2435_v7 = vsel %vm9361_vm9, -1e+30, %v2433_v60 }
 0xe35   :  { %v2434_v8 = vmul.f32 0.17677669, %v2427_v1  ;;  %v7548_v44 = vpop.f32.mrb[73].mxu1  ;;  %v2437_v2 = vsel %vm1345_vm10, %v2435_v7, -inf }
 0xe36   :  { %2438 = vmax.xlane.f32.xlu0 %v2437_v2  ;;  %v2430_v9 = vpop.f32.mrb[74].mxu1 }
 0xe37   :  { %v7549_v10 = vpop.f32.mrb[75].mxu1  ;;  %v2436_v13 = vsel %vm9369_vm11, -1e+30, %v2434_v8 }
 0xe38   :  { %v2440_v15 = vsel %vm1345_vm10, %v2436_v13, -inf }
 0xe39   :  { %2441 = vmax.xlane.f32.xlu1 %v2440_v15 }
 0xe4a   :  { %2509 = vrot.lane.b32.xlu1 %v9400_v14, %s8912_s6 }
 0xe4e   :  { %2557 = vrot.lane.b32.xlu1 %v9292_v46, %s8913_s26 }
 0xe52   :  { %2607 = vrot.lane.b32.xlu1 %v9305_v6, %s8913_s26 }
 0xe56   :  { %2605 = vrot.lane.b32.xlu1 %v9550_v33, %s8913_s26 }
 0xec3   :  { %v2439_v16 = vpop.xlane.xlu0 %2438 }
 0xec4   :  { %v2443_v56 = vsub.f32 %v2435_v7, %v2439_v16 }
 0xec6   :  { %v2445_v18 = vmul.f32 1.442695, %v2443_v56  ;;  %v2442_v20 = vpop.xlane.xlu1 %2441 }
 0xec7   :  { %v2444_v21 = vsub.f32 %v2436_v13, %v2442_v20 }
 0xec8   :  { %8285 = vpow2.f32 %v2445_v18 }
 0xec9   :  { %v2447_v61 = vmul.f32 1.442695, %v2444_v21 }
 0xeca   :  { %v2510_v22 = vpop.permute.xlu1 %2509 }
 0xecb   :  { %8287 = vpow2.f32 %v2447_v61  ;;  %7557 = vmatpush3.bf16.msra.mxu1 %v2510_v22 }
 0xecc   :  { %7568 = vmatprep.subr.bf16.mxu1 %v8909_v29 }
 0xece   :  { %v2558_v39 = vpop.permute.xlu1 %2557 }
 0xecf   :  { %v2563_v52 = vsel %vm1230_vm4, %v2558_v39, 0 }
 0xed2   :  { %v8286_v24 = vpop.eup %8285  ;;  %v2608_v55 = vpop.permute.xlu1 %2607 }
 0xed3   :  { %v2449_v53 = vsel %vm1345_vm10, %v8286_v24, 0.0  ;;  %v2613_v59 = vsel %vm1230_vm4, %v2608_v55, 0 }
 0xed4   :  { %2450 = vadd.xlane.f32.xlu0 %v2449_v53 }
 0xed5   :  { %v8288_v42 = vpop.eup %8287 }
 0xed6   :  { %v2452_v57 = vsel %vm1345_vm10, %v8288_v42, 0.0  ;;  %v2606_v62 = vpop.permute.xlu1 %2605 }
 0xed8   :  { %2453 = vadd.xlane.f32.xlu0 %v2452_v57 }
 0xeee   :  { %2462 = vrot.lane.b32.xlu0 %v9392_v43, %s8912_s6 }
 0xef2   :  { %2555 = vrot.lane.b32.xlu0 %v9544_v32, %s8913_s26 }
 0xf61   :  { %v2451_v3 = vpop.xlane.xlu0 %2450 }
 0xf62   :  { %8289 = vrcp.f32 %v2451_v3 }
 0xf65   :  { %v2454_v58 = vpop.xlane.xlu0 %2453 }
 0xf66   :  { %8291 = vrcp.f32 %v2454_v58 }
 0xf69   :  { %v2463_v34 = vpop.permute.xlu0 %2462 }
 0xf6a   :  { %7551 = vmatpush3.bf16.msra.mxu0 %v2463_v34 }
 0xf6b   :  { %7562 = vmatprep.subr.bf16.mxu0 %v8909_v29 }
 0xf6c   :  { %v8290_v35 = vpop.eup %8289 }
 0xf6d   :  { %v2457_v40 = vmul.f32 %v8290_v35, %v8286_v24  ;;  %v2556_v60 = vpop.permute.xlu0 %2555 }
 0xf6f   :  { %v2459_v45 = vpack.c.bf16 %v2457_v40, %v2457_v40 }
 0xf70   :  { %v8292_v49 = vpop.eup %8291 }
 0xf71   :  { %v2458_v51 = vmul.f32 %v8292_v49, %v8288_v42  ;;  %7553 = vmatmul.mubr.msk.bf16.vlgmr.msra.gmra.mrb[32].mxu0 %vm1345_vm10, %v2459_v45 }
 0xf72   :  { %7564 = vmatprep.mubr.msk.bf16.mxu0 %vm8910_vm3, %v8909_v29 }
 0xf73   :  { %7563 = vmatpush3.bf16.xpose.msra.mxu0 %v2563_v52  ;;  %v2460_v17 = vpack.c.bf16 %v2458_v51, %v2458_v51 }
 0xf74   :  { %7574 = vmatprep.subr.bf16.mxu0 %v8909_v29 }
 0xf75   :  { %7559 = vmatmul.mubr.msk.bf16.vlgmr.msra.gmra.mrb[76].mxu1 %vm1345_vm10, %v2460_v17 }
 0xf76   :  { %7569 = vmatpush3.bf16.xpose.msra.mxu1 %v2613_v59  ;;  %7570 = vmatprep.mubr.msk.bf16.mxu1 %vm8910_vm3, %v8909_v29 }
 0xf77   :  { %7580 = vmatprep.subr.bf16.mxu1 %v8909_v29 }
 0xf7a   :  { %7565 = vmatmul.mubr.msk.bf16.vlgmr.msra.gmra.mrb[36].mxu0 %vm1230_vm4, %v2556_v60 }
 0xf7b   :  { %7576 = vmatprep.mubr.msk.bf16.mxu0 %vm8910_vm3, %v8909_v29 }
 0xf7d   :  { %7571 = vmatmul.mubr.msk.bf16.vlgmr.msra.gmra.mrb[80].mxu1 %vm1230_vm4, %v2606_v62 }
 0xf7e   :  { %7582 = vmatprep.mubr.msk.bf16.mxu1 %vm8910_vm3, %v8909_v29 }
0x1044   :  { %v9642_v63 = vpop.f32.mrb[32].mxu0 }
0x1045   :  { %v7554_v0 = vpop.f32.mrb[33].mxu0 }
0x1046   :  { %v2505_v1 = vpop.f32.mrb[34].mxu0 }
0x1047   :  { %v7555_v7 = vpop.f32.mrb[35].mxu0 }
0x1048   :  { %v9644_v8 = vpop.f32.mrb[76].mxu1 }
0x1049   :  { %v7687_v44 = vpack.i.bf16 %v9644_v8, %v9642_v63  ;;  %v7560_v2 = vpop.f32.mrb[77].mxu1 }
0x104a   :  { %v2552_v9 = vpop.f32.mrb[78].mxu1 }
0x104b   :  { %v7561_v10 = vpop.f32.mrb[79].mxu1 }
0x104d   :  { %v2599_v13 = vpop.f32.mrb[36].mxu0 }
0x104e   :  { %v2655_v15 = vmul.f32 0.17677669, %v2599_v13  ;;  %v7566_v16 = vpop.f32.mrb[37].mxu0 }
0x104f   :  { %v2602_v56 = vpop.f32.mrb[38].mxu0 }
0x1050   :  { %v7567_v18 = vpop.f32.mrb[39].mxu0  ;;  %v2649_v20 = vpop.f32.mrb[80].mxu1  ;;  %v2657_v21 = vsel %vm9361_vm9, -1e+30, %v2655_v15 }
0x1051   :  { %v2656_v61 = vmul.f32 0.17677669, %v2649_v20  ;;  %v7572_v22 = vpop.f32.mrb[81].mxu1  ;;  %v2659_v24 = vsel %vm1345_vm10, %v2657_v21, -inf }
0x1052   :  { %2660 = vmax.xlane.f32.xlu0 %v2659_v24  ;;  %v2652_v53 = vpop.f32.mrb[82].mxu1 }
0x1053   :  { %v7573_v42 = vpop.f32.mrb[83].mxu1  ;;  %v2658_v57 = vsel %vm9369_vm11, -1e+30, %v2656_v61 }
0x1054   :  { %v2662_v3 = vsel %vm1345_vm10, %v2658_v57, -inf }
0x1055   :  { %2663 = vmax.xlane.f32.xlu1 %v2662_v3 }
0x1066   :  { %2729 = vrot.lane.b32.xlu1 %v9400_v14, %s8913_s26 }
0x106a   :  { %2777 = vrot.lane.b32.xlu1 %v9292_v46, %s8892_s30 }
0x106e   :  { %2827 = vrot.lane.b32.xlu1 %v9305_v6, %s8892_s30 }
0x1072   :  { %2825 = vrot.lane.b32.xlu1 %v9550_v33, %s8892_s30 }
0x10df   :  { %v2661_v58 = vpop.xlane.xlu0 %2660 }
0x10e0   :  { %v2665_v34 = vsub.f32 %v2657_v21, %v2661_v58 }
0x10e2   :  { %v2667_v35 = vmul.f32 1.442695, %v2665_v34  ;;  %v2664_v39 = vpop.xlane.xlu1 %2663 }
0x10e3   :  { %v2666_v40 = vsub.f32 %v2658_v57, %v2664_v39 }
0x10e4   :  { %8293 = vpow2.f32 %v2667_v35 }
0x10e5   :  { %v2669_v45 = vmul.f32 1.442695, %v2666_v40 }
0x10e6   :  { %v2730_v49 = vpop.permute.xlu1 %2729 }
0x10e7   :  { %8295 = vpow2.f32 %v2669_v45  ;;  %7581 = vmatpush3.bf16.msra.mxu1 %v2730_v49 }
0x10e8   :  { %7592 = vmatprep.subr.bf16.mxu1 %v8909_v29 }
0x10ea   :  { %v2778_v60 = vpop.permute.xlu1 %2777 }
0x10eb   :  { %v2783_v2 = vsel %vm1230_vm4, %v2778_v60, 0 }
0x10ee   :  { %v8294_v51 = vpop.eup %8293  ;;  %v2828_v9 = vpop.permute.xlu1 %2827 }
0x10ef   :  { %v2671_v46 = vsel %vm1345_vm10, %v8294_v51, 0.0  ;;  %v2833_v10 = vsel %vm1230_vm4, %v2828_v9, 0 }
0x10f0   :  { %2672 = vadd.xlane.f32.xlu0 %v2671_v46 }
0x10f1   :  { %v8296_v6 = vpop.eup %8295 }
0x10f2   :  { %v2674_v52 = vsel %vm1345_vm10, %v8296_v6, 0.0  ;;  %v2826_v15 = vpop.permute.xlu1 %2825 }
0x10f4   :  { %2675 = vadd.xlane.f32.xlu0 %v2674_v52 }
0x110a   :  { %2683 = vrot.lane.b32.xlu0 %v9392_v43, %s8913_s26 }
0x110e   :  { %2775 = vrot.lane.b32.xlu0 %v9544_v32, %s8892_s30 }
0x117d   :  { %v2673_v33 = vpop.xlane.xlu0 %2672 }
0x117e   :  { %8297 = vrcp.f32 %v2673_v33 }
0x1181   :  { %v2676_v55 = vpop.xlane.xlu0 %2675 }
0x1182   :  { %8299 = vrcp.f32 %v2676_v55 }
0x1185   :  { %v2684_v17 = vpop.permute.xlu0 %2683 }
0x1186   :  { %7575 = vmatpush3.bf16.msra.mxu0 %v2684_v17 }
0x1187   :  { %7586 = vmatprep.subr.bf16.mxu0 %v8909_v29 }
0x1188   :  { %v8298_v59 = vpop.eup %8297 }
0x1189   :  { %v2679_v62 = vmul.f32 %v8298_v59, %v8294_v51  ;;  %v2776_v13 = vpop.permute.xlu0 %2775 }
0x118b   :  { %v2681_v0 = vpack.c.bf16 %v2679_v62, %v2679_v62 }
0x118c   :  { %v8300_v1 = vpop.eup %8299 }
0x118d   :  { %v2680_v7 = vmul.f32 %v8300_v1, %v8296_v6  ;;  %7577 = vmatmul.mubr.msk.bf16.vlgmr.msra.gmra.mrb[40].mxu0 %vm1345_vm10, %v2681_v0 }
0x118e   :  { %7588 = vmatprep.mubr.msk.bf16.mxu0 %vm8910_vm3, %v8909_v29 }
0x118f   :  { %7587 = vmatpush3.bf16.xpose.msra.mxu0 %v2783_v2  ;;  %v2682_v32 = vpack.c.bf16 %v2680_v7, %v2680_v7 }
0x1190   :  { %7598 = vmatprep.subr.bf16.mxu0 %v8909_v29 }
0x1191   :  { %7583 = vmatmul.mubr.msk.bf16.vlgmr.msra.gmra.mrb[84].mxu1 %vm1345_vm10, %v2682_v32 }
0x1192   :  { %7593 = vmatpush3.bf16.xpose.msra.mxu1 %v2833_v10  ;;  %7594 = vmatprep.mubr.msk.bf16.mxu1 %vm8910_vm3, %v8909_v29 }
0x1193   :  { %7604 = vmatprep.subr.bf16.mxu1 %v8909_v29 }
0x1196   :  { %7589 = vmatmul.mubr.msk.bf16.vlgmr.msra.gmra.mrb[44].mxu0 %vm1230_vm4, %v2776_v13 }
0x1197   :  { %7600 = vmatprep.mubr.msk.bf16.mxu0 %vm8910_vm3, %v8909_v29 }
0x1199   :  { %7595 = vmatmul.mubr.msk.bf16.vlgmr.msra.gmra.mrb[88].mxu1 %vm1230_vm4, %v2826_v15 }
0x119a   :  { %7606 = vmatprep.mubr.msk.bf16.mxu1 %vm8910_vm3, %v8909_v29 }
0x1260   :  { %v9686_v16 = vpop.f32.mrb[40].mxu0 }
0x1261   :  { %v7578_v56 = vpop.f32.mrb[41].mxu0 }
0x1262   :  { %v2726_v18 = vpop.f32.mrb[42].mxu0 }
0x1263   :  { %v7579_v20 = vpop.f32.mrb[43].mxu0 }
0x1264   :  { %v2769_v21 = vpop.f32.mrb[84].mxu1 }
0x1265   :  { %v7697_v61 = vpack.i.bf16 %v2769_v21, %v9686_v16  ;;  %v7584_v22 = vpop.f32.mrb[85].mxu1  ;;  %v7861_v21 = vld [vmem:[#allocation14] ss:$8 sps:$4 sm:$0xff]  }
0x1266   :  { %v2772_v24 = vpop.f32.mrb[86].mxu1  ;;  %v7866_v22 = vld [vmem:[#allocation14 + $0x14] ss:$8 sps:$4 sm:$0xff]  }
0x1267   :  { %v7585_v53 = vpop.f32.mrb[87].mxu1  ;;  %v7869_v24 = vld [vmem:[#allocation14 + $0x24] ss:$8 sps:$4 sm:$0xff]  }
0x1268   :  { %v7867_v53 = vld [vmem:[#allocation14 + $0x20] ss:$8 sps:$4 sm:$0xff]  }
0x1269   :  { %v2819_v42 = vpop.f32.mrb[44].mxu0 }
0x126a   :  { %v2875_v57 = vmul.f32 0.17677669, %v2819_v42  ;;  %v7590_v3 = vpop.f32.mrb[45].mxu0  ;;  %v7872_v42 = vld [vmem:[#allocation14 + $0x34] ss:$8 sps:$4 sm:$0xff]  }
0x126b   :  { %v2822_v58 = vpop.f32.mrb[46].mxu0  ;;  %v7875_v3 = vld [vmem:[#allocation14 + $0x44] ss:$8 sps:$4 sm:$0xff]  }
0x126c   :  { %v7591_v34 = vpop.f32.mrb[47].mxu0  ;;  %v2869_v35 = vpop.f32.mrb[88].mxu1  ;;  %v2877_v29 = vsel %vm9361_vm9, -1e+30, %v2875_v57  ;;  %v7870_v57 = vld [vmem:[#allocation14 + $0x30] ss:$8 sps:$4 sm:$0xff]  }
0x126d   :  { %v2876_v39 = vmul.f32 0.17677669, %v2869_v35  ;;  %v7596_v40 = vpop.f32.mrb[89].mxu1  ;;  %v2879_v45 = vsel %vm1345_vm10, %v2877_v29, -inf  ;;  %v7873_v58 = vld [vmem:[#allocation14 + $0x40] ss:$8 sps:$4 sm:$0xff]  }
0x126e   :  { %2880 = vmax.xlane.f32.xlu0 %v2879_v45  ;;  %v2872_v49 = vpop.f32.mrb[90].mxu1  ;;  %v7878_v34 = vld [vmem:[#allocation14 + $0x54] ss:$8 sps:$4 sm:$0xff]   ;;  %v7876_v35 = vld [vmem:[#allocation14 + $0x50] ss:$8 sps:$4 sm:$0xff]  }
0x126f   :  { %v7597_v51 = vpop.f32.mrb[91].mxu1  ;;  %v2878_v46 = vsel %vm9369_vm11, -1e+30, %v2876_v39  ;;  %v7879_v39 = vld [vmem:[#allocation14 + $0x60] ss:$8 sps:$4 sm:$0xff]  }
0x1270   :  { %v2882_v6 = vsel %vm1345_vm10, %v2878_v46, -inf  ;;  %v7884_v40 = vld [vmem:[#allocation14 + $0x74] ss:$8 sps:$4 sm:$0xff]   ;;  %v7882_v45 = vld [vmem:[#allocation14 + $0x70] ss:$8 sps:$4 sm:$0xff]  }
0x1271   :  { %2883 = vmax.xlane.f32.xlu1 %v2882_v6  ;;  %v7887_v49 = vld [vmem:[#allocation14 + $0x84] ss:$8 sps:$4 sm:$0xff]   ;;  %v7885_v51 = vld [vmem:[#allocation14 + $0x80] ss:$8 sps:$4 sm:$0xff]   ;;  %v7888_v6 = vld [vmem:[#allocation14 + $0x90] ss:$8 sps:$4 sm:$0xff]  }
0x1282   :  { %2949 = vrot.lane.b32.xlu1 %v9400_v14, %s8892_s30 }
0x1286   :  { %7688 = vrot.lane.b32.xlu1 %v7687_v44, %s8892_s30 }
0x128a   :  { %7693 = vrot.lane.b32.xlu1 %v7692_v26, %s8892_s30 }
0x128e   :  { %7703 = vrot.lane.b32.xlu1 %v7702_v48, %s8913_s26 }
0x1292   :  { %7713 = vrot.lane.b32.xlu1 %v7712_v37, %s8912_s6 }
0x12fb   :  { %v2881_v28 = vpop.xlane.xlu0 %2880 }
0x12fc   :  { %v2885_v12 = vsub.f32 %v2877_v29, %v2881_v28  ;;  %v7881_v29 = vld [vmem:[#allocation14 + $0x64] ss:$8 sps:$4 sm:$0xff]  }
0x12fd   :  { %v7893_v28 = vld [vmem:[#allocation14 + $0xa4] ss:$8 sps:$4 sm:$0xff]  }
0x12fe   :  { %v2887_v14 = vmul.f32 1.442695, %v2885_v12  ;;  %v2884_v63 = vpop.xlane.xlu1 %2883  ;;  %v7891_v12 = vld [vmem:[#allocation14 + $0xa0] ss:$8 sps:$4 sm:$0xff]  }
0x12ff   :  { %v2886_v8 = vsub.f32 %v2878_v46, %v2884_v63  ;;  %v7890_v46 = vld [vmem:[#allocation14 + $0x94] ss:$8 sps:$4 sm:$0xff]   ;;  %v7894_v63 = vld [vmem:[#allocation14 + $0xb0] ss:$8 sps:$4 sm:$0xff]  }
0x1300   :  { %8301 = vpow2.f32 %v2887_v14  ;;  %v7896_v14 = vld [vmem:[#allocation14 + $0xb4] ss:$8 sps:$4 sm:$0xff]  }
0x1301   :  { %v2889_v44 = vmul.f32 1.442695, %v2886_v8  ;;  %v7899_v8 = vld [vmem:[#allocation14 + $0xc4] ss:$8 sps:$4 sm:$0xff]  }
0x1302   :  { %v2950_v52 = vpop.permute.xlu1 %2949 }
0x1303   :  { %8303 = vpow2.f32 %v2889_v44  ;;  %7605 = vmatpush3.bf16.msra.mxu1 %v2950_v52  ;;  %v7897_v44 = vld [vmem:[#allocation14 + $0xc0] ss:$8 sps:$4 sm:$0xff]   ;;  %v7902_v52 = vld [vmem:[#allocation14 + $0xd4] ss:$8 sps:$4 sm:$0xff]  }
0x1306   :  { %v9713_v25 = vpop.permute.xlu1 %7688 }
0x130a   :  { %v8302_v4 = vpop.eup %8301  ;;  %v7694_v26 = vpop.permute.xlu1 %7693 }
0x130b   :  { %v2891_v54 = vsel %vm1345_vm10, %v8302_v4, 0.0  ;;  %v7696_v36 = vunpack.i.h.bf16 %v7694_v26  ;;  %v7695_v37 = vunpack.i.l.bf16 %v7694_v26  ;;  %v7905_v26 = vld [vmem:[#allocation14 + $0xe4] ss:$8 sps:$4 sm:$0xff]  }
0x130c   :  { %2892 = vadd.xlane.f32.xlu0 %v2891_v54  ;;  %v7903_v54 = vld [vmem:[#allocation14 + $0xe0] ss:$8 sps:$4 sm:$0xff]  }
0x130d   :  { %v8304_v47 = vpop.eup %8303  ;;  %v3044_v59 = vsel %vm1230_vm4, %v9426_v23, %v7696_v36  ;;  %v3043_v60 = vsel %vm1230_vm4, %v9424_v19, %v7695_v37 }
0x130e   :  { %v7704_v48 = vpop.permute.xlu1 %7703  ;;  %v2894_v50 = vsel %vm1345_vm10, %v8304_v47, 0.0 }
0x130f   :  { %v7706_v33 = vunpack.i.h.bf16 %v7704_v48  ;;  %v7705_v55 = vunpack.i.l.bf16 %v7704_v48  ;;  %v7908_v48 = vld [vmem:[#allocation14 + $0xf4] ss:$8 sps:$4 sm:$0xff]  }
0x1310   :  { %2895 = vadd.xlane.f32.xlu0 %v2894_v50 }
0x1311   :  { %v3046_v1 = vsel %vm3045_vm12, %v3043_v60, %v7705_v55  ;;  %v3047_v7 = vsel %vm3045_vm12, %v3044_v59, %v7706_v33 }
0x1312   :  { %v7714_v17 = vpop.permute.xlu1 %7713 }
0x1313   :  { %v7716_v62 = vunpack.i.h.bf16 %v7714_v17  ;;  %v7715_v0 = vunpack.i.l.bf16 %v7714_v17 }
0x1315   :  { %v9724_v2 = vsel %vm3048_vm13, %v3046_v1, %v7715_v0  ;;  %v9727_v9 = vsel %vm3048_vm13, %v3047_v7, %v7716_v62  ;;  %v7691_v1 = vunpack.i.h.bf16 %v9713_v25  ;;  %v7690_v7 = vunpack.i.l.bf16 %v9713_v25 }
0x1316   :  { %v3057_v32 = vpack.c.bf16 %v9727_v9, %v9724_v2 }
0x1326   :  { %2903 = vrot.lane.b32.xlu0 %v9392_v43, %s8892_s30  ;;  %v7863_v43 = vld [vmem:[#allocation14 + $0x4] ss:$8 sps:$4 sm:$0xff]  }
0x132a   :  { %7698 = vrot.lane.b32.xlu0 %v7697_v61, %s8913_s26  ;;  %v7864_v61 = vld [vmem:[#allocation14 + $0x10] ss:$8 sps:$4 sm:$0xff]  }
0x1399   :  { %v2893_v19 = vpop.xlane.xlu0 %2892 }
0x139a   :  { %8305 = vrcp.f32 %v2893_v19 }
0x139d   :  { %v2896_v23 = vpop.xlane.xlu0 %2895 }
0x139e   :  { %8307 = vrcp.f32 %v2896_v23 }
0x13a1   :  { %v2904_v10 = vpop.permute.xlu0 %2903 }
0x13a2   :  { %7599 = vmatpush3.bf16.msra.mxu0 %v2904_v10 }
0x13a3   :  { %3263 = vmatprep.subr.bf16.mxu0 %v7863_v43 }
0x13a4   :  { %v8306_v13 = vpop.eup %8305 }
0x13a5   :  { %v2899_v15 = vmul.f32 %v8306_v13, %v8302_v4  ;;  %v7900_v4 = vld [vmem:[#allocation14 + $0xd0] ss:$8 sps:$4 sm:$0xff]   ;;  %v7699_v0 = vpop.permute.xlu0 %7698  ;;  %v3052_v13 = vsel %vm1230_vm4, %v9602_v31, %v7691_v1  ;;  %v3091_v31 = vld [vmem:[#allocation16] sm:$0x3] }
0x13a6   :  { %v7701_v19 = vunpack.i.h.bf16 %v7699_v0  ;;  %v7700_v23 = vunpack.i.l.bf16 %v7699_v0  ;;  %v3409_v0 = vld [vmem:[#allocation20 + $0x120] sm:$0xff]  ;;  %v3406_v1 = vld [vmem:[#allocation20 + $0x108] sm:$0xff] }
0x13a7   :  { %v2901_v16 = vpack.c.bf16 %v2899_v15, %v2899_v15  ;;  %v3051_v15 = vsel %vm1230_vm4, %v9600_v41, %v7690_v7  ;;  %v3100_v41 = vrot.slane %v3091_v31, %v9282_v5  ;;  %v3410_v7 = vld [vmem:[#allocation20 + $0x128] sm:$0xff] }
0x13a8   :  { %v8308_v56 = vpop.eup %8307 }
0x13a9   :  { %v2900_v18 = vmul.f32 %v8308_v56, %v8304_v47  ;;  %7601 = vmatmul.mubr.msk.bf16.vlgmr.msra.gmra.mrb[48].mxu0 %vm1345_vm10, %v2901_v16  ;;  %v7906_v47 = vld [vmem:[#allocation14 + $0xf0] ss:$8 sps:$4 sm:$0xff]  }
0x13aa   :  { %3264 = vmatpush1.bf16.msra.mxu0 %v7861_v21 }
0x13ab   :  { %v2902_v20 = vpack.c.bf16 %v2900_v18, %v2900_v18  ;;  %3265 = vmatprep.subr.bf16.mxu0 %v7866_v22  ;;  %v3053_v18 = vsel %vm3045_vm12, %v3051_v15, %v7700_v23  ;;  %v3096_v22 = vrot.slane %v3091_v31, %v9277_v30  ;;  %v3413_v15 = vld [vmem:[#allocation20 + $0x140] sm:$0xff] }
0x13ac   :  { %v3421_v31 = vld [vmem:[#allocation20 + $0x180] sm:$0xff] }
0x13ad   :  { %7607 = vmatmul.mubr.msk.bf16.vlgmr.msra.gmra.mrb[92].mxu1 %vm1345_vm10, %v2902_v20  ;;  %v3054_v20 = vsel %vm3045_vm12, %v3052_v13, %v7701_v19  ;;  %v6935_v13 = vcombine.high %v3406_v1, %v3410_v7 }
0x13ae   :  { %3266 = vmatpush1.bf16.msra.mxu0 %v7864_v61 }
0x13af   :  { %3267 = vmatprep.subr.bf16.mxu0 %v7869_v24 }
0x13b2   :  { %3268 = vmatpush1.bf16.msra.mxu0 %v7867_v53 }
0x13b3   :  { %3269 = vmatprep.subr.bf16.mxu0 %v7872_v42 }
0x13b6   :  { %3270 = vmatpush1.bf16.msra.mxu0 %v7870_v57 }
0x13b7   :  { %3271 = vmatprep.subr.bf16.mxu0 %v7875_v3 }
0x13ba   :  { %3272 = vmatpush1.bf16.msra.mxu0 %v7873_v58 }
0x13bb   :  { %3273 = vmatprep.subr.bf16.mxu0 %v7878_v34 }
0x13be   :  { %3274 = vmatpush1.bf16.msra.mxu0 %v7876_v35  ;;  %v3377_v35 = vld [vmem:[#allocation20 + $0x20] sm:$0xff] }
0x13bf   :  { %3275 = vmatprep.subr.bf16.mxu0 %v7881_v29  ;;  %v3374_v29 = vld [vmem:[#allocation20 + $0x8] sm:$0xff] }
0x13c2   :  { %3276 = vmatpush1.bf16.msra.mxu0 %v7879_v39 }
0x13c3   :  { %3277 = vmatprep.subr.bf16.mxu0 %v7884_v40 }
0x13c6   :  { %3278 = vmatpush1.bf16.msra.mxu0 %v7882_v45  ;;  %v3378_v45 = vld [vmem:[#allocation20 + $0x28] sm:$0xff] }
0x13c7   :  { %3279 = vmatprep.subr.bf16.mxu0 %v7887_v49  ;;  %v3381_v49 = vld [vmem:[#allocation20 + $0x40] sm:$0xff] }
0x13ca   :  { %3280 = vmatpush1.bf16.msra.mxu0 %v7885_v51  ;;  %v3385_v51 = vld [vmem:[#allocation20 + $0x60] sm:$0xff] }
0x13cb   :  { %3281 = vmatprep.subr.bf16.mxu0 %v7890_v46  ;;  %v6902_v46 = vcombine.low %v3374_v29, %v3378_v45 }
0x13ce   :  { %3282 = vmatpush1.bf16.msra.mxu0 %v7888_v6  ;;  %v6903_v6 = vcombine.high %v3374_v29, %v3378_v45  ;;  %v3434_v29 = vld [vmem:[#allocation20 + $0x1e8] sm:$0xff] }
0x13cf   :  { %3283 = vmatprep.subr.bf16.mxu0 %v7893_v28  ;;  %v6909_v28 = vcombine.high %v3381_v49, %v3385_v51 }
0x13d2   :  { %3284 = vmatpush1.bf16.msra.mxu0 %v7891_v12  ;;  %v3382_v12 = vld [vmem:[#allocation20 + $0x48] sm:$0xff] }
0x13d3   :  { %3285 = vmatprep.subr.bf16.mxu0 %v7896_v14  ;;  %v3386_v14 = vld [vmem:[#allocation20 + $0x68] sm:$0xff] }
0x13d6   :  { %3286 = vmatpush1.bf16.msra.mxu0 %v7894_v63  ;;  %v3389_v63 = vld [vmem:[#allocation20 + $0x80] sm:$0xff] }
0x13d7   :  { %3287 = vmatprep.subr.bf16.mxu0 %v7899_v8  ;;  %v6911_v8 = vcombine.high %v3382_v12, %v3386_v14 }
0x13da   :  { %3288 = vmatpush1.bf16.msra.mxu0 %v7897_v44  ;;  %v3393_v44 = vld [vmem:[#allocation20 + $0xa0] sm:$0xff] }
0x13db   :  { %3289 = vmatprep.subr.bf16.mxu0 %v7902_v52  ;;  %v3390_v52 = vld [vmem:[#allocation20 + $0x88] sm:$0xff] }
0x13de   :  { %3290 = vmatpush1.bf16.msra.mxu0 %v7900_v4  ;;  %v3394_v4 = vld [vmem:[#allocation20 + $0xa8] sm:$0xff] }
0x13df   :  { %3291 = vmatprep.subr.bf16.mxu0 %v7905_v26  ;;  %v6908_v26 = vcombine.low %v3381_v49, %v3385_v51  ;;  %v3437_v51 = vld [vmem:[#allocation20 + $0x200] sm:$0xff] }
0x13e2   :  { %3292 = vmatpush1.bf16.msra.mxu0 %v7903_v54  ;;  %v6910_v54 = vcombine.low %v3382_v12, %v3386_v14 }
0x13e3   :  { %3293 = vmatprep.subr.bf16.mxu0 %v7908_v48  ;;  %v6919_v48 = vcombine.high %v3390_v52, %v3394_v4 }
0x13e6   :  { %3294 = vmatpush1.bf16.msra.mxu0 %v7906_v47  ;;  %v6917_v47 = vcombine.high %v3389_v63, %v3393_v44 }
0x13e7   :  { %4226 = vmatprep.subr.bf16.mxu0 %v6903_v6  ;;  %v3438_v6 = vld [vmem:[#allocation20 + $0x208] sm:$0xff] }
0x147c   :  { %v2943_v50 = vpop.f32.mrb[48].mxu0 }
0x147d   :  { %v7602_v36 = vpop.f32.mrb[49].mxu0 }
0x147e   :  { %v2946_v37 = vpop.f32.mrb[50].mxu0  ;;  %v3401_v36 = vld [vmem:[#allocation20 + $0xe0] sm:$0xff] }
0x147f   :  { %v7603_v33 = vpop.f32.mrb[51].mxu0  ;;  %v3398_v37 = vld [vmem:[#allocation20 + $0xc8] sm:$0xff] }
0x1480   :  { %v2989_v55 = vpop.f32.mrb[92].mxu1  ;;  %v3402_v33 = vld [vmem:[#allocation20 + $0xe8] sm:$0xff] }
0x1481   :  { %v7707_v17 = vpack.i.bf16 %v2989_v55, %v2943_v50  ;;  %v7608_v59 = vpop.f32.mrb[93].mxu1  ;;  %v3397_v50 = vld [vmem:[#allocation20 + $0xc0] sm:$0xff]  ;;  %v6916_v55 = vcombine.low %v3389_v63, %v3393_v44  ;;  %v6926_v23 = vcombine.low %v3398_v37, %v3402_v33 }
0x1482   :  { %v2992_v60 = vpop.f32.mrb[94].mxu1  ;;  %v6925_v59 = vcombine.high %v3397_v50, %v3401_v36  ;;  %v6924_v19 = vcombine.low %v3397_v50, %v3401_v36  ;;  %v3445_v44 = vld [vmem:[#allocation20 + $0x240] sm:$0xff] }
0x1483   :  { %7708 = vrot.lane.b32.xlu0 %v7707_v17, %s8912_s6  ;;  %v7609_v62 = vpop.f32.mrb[95].mxu1  ;;  %v6918_v17 = vcombine.low %v3390_v52, %v3394_v4  ;;  %v6927_v60 = vcombine.high %v3398_v37, %v3402_v33  ;;  %v3449_v52 = vld [vmem:[#allocation20 + $0x260] sm:$0xff]  ;;  %v3446_v4 = vld [vmem:[#allocation20 + $0x248] sm:$0xff] }
0x1484   :  { %v3405_v62 = vld [vmem:[#allocation20 + $0x100] sm:$0xff]  ;;  %v6972_v36 = vcombine.low %v3445_v44, %v3449_v52 }
0x14f5   :  { %v7709_v10 = vpop.permute.xlu0 %7708 }
0x14f6   :  { %v7711_v16 = vunpack.i.h.bf16 %v7709_v10  ;;  %v7710_v56 = vunpack.i.l.bf16 %v7709_v10  ;;  %v6933_v10 = vcombine.high %v3405_v62, %v3409_v0 }
0x14f8   :  { %v3055_v21 = vsel %vm3048_vm13, %v3053_v18, %v7710_v56  ;;  %v3056_v43 = vsel %vm3048_vm13, %v3054_v20, %v7711_v16  ;;  %v3417_v16 = vld [vmem:[#allocation20 + $0x160] sm:$0xff]  ;;  %v3414_v56 = vld [vmem:[#allocation20 + $0x148] sm:$0xff]  ;;  %v6932_v20 = vcombine.low %v3405_v62, %v3409_v0 }
0x14f9   :  { %v3058_v25 = vpack.c.bf16 %v3056_v43, %v3055_v21  ;;  %v3418_v18 = vld [vmem:[#allocation20 + $0x168] sm:$0xff]  ;;  %v6934_v21 = vcombine.low %v3406_v1, %v3410_v7  ;;  %v6941_v43 = vcombine.high %v3413_v15, %v3417_v16 }
0x14fb   :  { %3295 = vmatprep.mubr.bf16.mxu0 %v3058_v25  ;;  %v6943_v25 = vcombine.high %v3414_v56, %v3418_v18 }
0x14fc   :  { %3296 = vmatmul.mubr.bf16.vlgmr.msra.gmra.mrb[52].mxu0 %v3057_v32  ;;  %v3373_v32 = vld [vmem:[#allocation20] sm:$0xff] }
0x14fd   :  { %v6900_v39 = vcombine.low %v3373_v32, %v3377_v35  ;;  %v6901_v40 = vcombine.high %v3373_v32, %v3377_v35  ;;  %4227 = vmatpush1.bf16.msra.mxu0 %v6902_v46  ;;  %v3433_v32 = vld [vmem:[#allocation20 + $0x1e0] sm:$0xff]  ;;  %v3430_v35 = vld [vmem:[#allocation20 + $0x1c8] sm:$0xff] }
0x14fe   :  { %4228 = vmatprep.subr.bf16.mxu0 %v6911_v8  ;;  %v6959_v49 = vcombine.high %v3430_v35, %v3434_v29  ;;  %v3441_v46 = vld [vmem:[#allocation20 + $0x220] sm:$0xff]  ;;  %v6958_v14 = vcombine.low %v3430_v35, %v3434_v29 }
0x14ff   :  { %4183 = vmatprep.subr.bf16.mxu1 %v6901_v40  ;;  %v6965_v63 = vcombine.high %v3437_v51, %v3441_v46 }
0x1500   :  { %4184 = vmatpush1.bf16.msra.mxu1 %v6900_v39 }
0x1501   :  { %4185 = vmatprep.subr.bf16.mxu1 %v6909_v28  ;;  %4229 = vmatpush1.bf16.msra.mxu0 %v6910_v54  ;;  %v3442_v28 = vld [vmem:[#allocation20 + $0x228] sm:$0xff]  ;;  %v6964_v54 = vcombine.low %v3437_v51, %v3441_v46 }
0x1502   :  { %4230 = vmatprep.subr.bf16.mxu0 %v6919_v48  ;;  %v6967_v8 = vcombine.high %v3438_v6, %v3442_v28  ;;  %v6973_v48 = vcombine.high %v3445_v44, %v3449_v52  ;;  %v3482_v46 = vld [vmem:[#allocation20 + $0x368] sm:$0xff] }
0x1503   :  { %v3490_v52 = vld [vmem:[#allocation20 + $0x3a8] sm:$0xff] }
0x1504   :  { %4186 = vmatpush1.bf16.msra.mxu1 %v6908_v26  ;;  %v3450_v26 = vld [vmem:[#allocation20 + $0x268] sm:$0xff] }
0x1505   :  { %4187 = vmatprep.subr.bf16.mxu1 %v6917_v47  ;;  %4231 = vmatpush1.bf16.msra.mxu0 %v6918_v17  ;;  %v6966_v47 = vcombine.low %v3438_v6, %v3442_v28  ;;  %v6975_v50 = vcombine.high %v3446_v4, %v3450_v26  ;;  %v6974_v37 = vcombine.low %v3446_v4, %v3450_v26 }
0x1506   :  { %4232 = vmatprep.subr.bf16.mxu0 %v6927_v60 }
0x1508   :  { %4188 = vmatpush1.bf16.msra.mxu1 %v6916_v55 }
0x1509   :  { %4189 = vmatprep.subr.bf16.mxu1 %v6925_v59  ;;  %4233 = vmatpush1.bf16.msra.mxu0 %v6926_v23 }
0x150a   :  { %4234 = vmatprep.subr.bf16.mxu0 %v6935_v13  ;;  %v3457_v13 = vld [vmem:[#allocation20 + $0x2a0] sm:$0xff] }
0x150c   :  { %4190 = vmatpush1.bf16.msra.mxu1 %v6924_v19 }
0x150d   :  { %4191 = vmatprep.subr.bf16.mxu1 %v6933_v10  ;;  %4235 = vmatpush1.bf16.msra.mxu0 %v6934_v21  ;;  %v3461_v21 = vld [vmem:[#allocation20 + $0x2c0] sm:$0xff] }
0x150e   :  { %4236 = vmatprep.subr.bf16.mxu0 %v6943_v25  ;;  %v3462_v25 = vld [vmem:[#allocation20 + $0x2c8] sm:$0xff] }
0x1510   :  { %4192 = vmatpush1.bf16.msra.mxu1 %v6932_v20 }
0x1511   :  { %4193 = vmatprep.subr.bf16.mxu1 %v6941_v43  ;;  %v3465_v43 = vld [vmem:[#allocation20 + $0x2e0] sm:$0xff] }
0x15cf   :  { %v3297_v61 = vpop.f32.mrb[52].mxu0 }
0x15d0   :  { %v9752_v24 = vadd.f32 %v3297_v61, %v3096_v22  ;;  %v3299_v53 = vpop.f32.mrb[53].mxu0  ;;  %v3426_v61 = vld [vmem:[#allocation20 + $0x1a8] sm:$0xff] }
0x15d1   :  { %v9754_v42 = vadd.f32 %v3299_v53, %v3100_v41  ;;  %v3301_v57 = vpop.f32.mrb[54].mxu0  ;;  %v6940_v53 = vcombine.low %v3413_v15, %v3417_v16  ;;  %v3458_v16 = vld [vmem:[#allocation20 + $0x2a8] sm:$0xff] }
0x15d2   :  { %v9756_v3 = vadd.f32 %v3301_v57, %v3096_v22  ;;  %v3303_v58 = vpop.f32.mrb[55].mxu0  ;;  %v3425_v22 = vld [vmem:[#allocation20 + $0x1a0] sm:$0xff]  ;;  %v6942_v57 = vcombine.low %v3414_v56, %v3418_v18 }
0x15d3   :  { %v9758_v34 = vadd.f32 %v3303_v58, %v3100_v41  ;;  %v3308_v2 = vadd.f32 %v9754_v42, %v9752_v24  ;;  %v3422_v41 = vld [vmem:[#allocation20 + $0x188] sm:$0xff]  ;;  %v6949_v58 = vcombine.high %v3421_v31, %v3425_v22  ;;  %4194 = vmatpush1.bf16.msra.mxu1 %v6940_v53  ;;  %v6948_v39 = vcombine.low %v3421_v31, %v3425_v22 }
0x15d4   :  { %4237 = vmatpush1.bf16.msra.mxu0 %v6942_v57  ;;  %v6950_v40 = vcombine.low %v3422_v41, %v3426_v61  ;;  %v6989_v31 = vcombine.high %v3461_v21, %v3465_v43  ;;  %v3466_v22 = vld [vmem:[#allocation20 + $0x2e8] sm:$0xff]  ;;  %v3469_v57 = vld [vmem:[#allocation20 + $0x300] sm:$0xff] }
0x15d5   :  { %3309 = vadd.xlane.f32.xlu0 %v3308_v2  ;;  %v3311_v9 = vadd.f32 %v9758_v34, %v9756_v3  ;;  %v6951_v2 = vcombine.high %v3422_v41, %v3426_v61  ;;  %4195 = vmatprep.subr.bf16.mxu1 %v6949_v58  ;;  %v6988_v41 = vcombine.low %v3461_v21, %v3465_v43  ;;  %v3473_v58 = vld [vmem:[#allocation20 + $0x320] sm:$0xff] }
0x15d6   :  { %v6990_v61 = vcombine.low %v3462_v25, %v3466_v22  ;;  %v6991_v53 = vcombine.high %v3462_v25, %v3466_v22  ;;  %v6996_v35 = vcombine.low %v3469_v57, %v3473_v58 }
0x15d7   :  { %3312 = vadd.xlane.f32.xlu1 %v3311_v9  ;;  %v3429_v9 = vld [vmem:[#allocation20 + $0x1c0] sm:$0xff]  ;;  %4238 = vmatprep.subr.bf16.mxu0 %v6951_v2  ;;  %v3470_v2 = vld [vmem:[#allocation20 + $0x308] sm:$0xff] }
0x15d8   :  { %v6957_v45 = vcombine.high %v3429_v9, %v3433_v32  ;;  %4196 = vmatpush1.bf16.msra.mxu1 %v6948_v39  ;;  %v6956_v12 = vcombine.low %v3429_v9, %v3433_v32  ;;  %4239 = vmatpush1.bf16.msra.mxu0 %v6950_v40  ;;  %v6997_v9 = vcombine.high %v3469_v57, %v3473_v58  ;;  %v3474_v32 = vld [vmem:[#allocation20 + $0x328] sm:$0xff]  ;;  %v3477_v40 = vld [vmem:[#allocation20 + $0x340] sm:$0xff] }
0x15d9   :  { %4240 = vmatprep.subr.bf16.mxu0 %v6959_v49  ;;  %v6998_v29 = vcombine.low %v3470_v2, %v3474_v32  ;;  %v6999_v39 = vcombine.high %v3470_v2, %v3474_v32  ;;  %v3478_v49 = vld [vmem:[#allocation20 + $0x348] sm:$0xff] }
0x15da   :  { %4197 = vmatprep.subr.bf16.mxu1 %v6957_v45  ;;  %v3481_v45 = vld [vmem:[#allocation20 + $0x360] sm:$0xff]  ;;  %v7006_v28 = vcombine.low %v3478_v49, %v3482_v46 }
0x15db   :  { %v7005_v51 = vcombine.high %v3477_v40, %v3481_v45  ;;  %v7004_v6 = vcombine.low %v3477_v40, %v3481_v45  ;;  %v3383_v45 = vld [vmem:[#allocation20 + $0x50] sm:$0xff] }
0x15dc   :  { %4198 = vmatpush1.bf16.msra.mxu1 %v6956_v12  ;;  %4241 = vmatpush1.bf16.msra.mxu0 %v6958_v14  ;;  %v7007_v12 = vcombine.high %v3478_v49, %v3482_v46  ;;  %v3485_v14 = vld [vmem:[#allocation20 + $0x380] sm:$0xff]  ;;  %v3387_v49 = vld [vmem:[#allocation20 + $0x70] sm:$0xff]  ;;  %v3388_v46 = vld [vmem:[#allocation20 + $0x78] sm:$0xff] }
0x15dd   :  { %4199 = vmatprep.subr.bf16.mxu1 %v6965_v63  ;;  %4242 = vmatprep.subr.bf16.mxu0 %v6967_v8  ;;  %v3489_v63 = vld [vmem:[#allocation20 + $0x3a0] sm:$0xff]  ;;  %v3486_v8 = vld [vmem:[#allocation20 + $0x388] sm:$0xff] }
0x15de   :  { %v7013_v44 = vcombine.high %v3485_v14, %v3489_v63  ;;  %v7012_v4 = vcombine.low %v3485_v14, %v3489_v63  ;;  %v7014_v26 = vcombine.low %v3486_v8, %v3490_v52  ;;  %v3395_v14 = vld [vmem:[#allocation20 + $0xb0] sm:$0xff]  ;;  %v3392_v63 = vld [vmem:[#allocation20 + $0x98] sm:$0xff] }
0x15e0   :  { %4200 = vmatpush1.bf16.msra.mxu1 %v6964_v54  ;;  %4243 = vmatpush1.bf16.msra.mxu0 %v6966_v47  ;;  %v7015_v54 = vcombine.high %v3486_v8, %v3490_v52  ;;  %v3493_v47 = vld [vmem:[#allocation20 + $0x3c0] sm:$0xff]  ;;  %v3396_v8 = vld [vmem:[#allocation20 + $0xb8] sm:$0xff] }
0x15e1   :  { %4201 = vmatprep.subr.bf16.mxu1 %v6973_v48  ;;  %4244 = vmatprep.subr.bf16.mxu0 %v6975_v50  ;;  %v3497_v48 = vld [vmem:[#allocation20 + $0x3e0] sm:$0xff]  ;;  %v3494_v50 = vld [vmem:[#allocation20 + $0x3c8] sm:$0xff] }
0x15e4   :  { %4202 = vmatpush1.bf16.msra.mxu1 %v6972_v36  ;;  %4245 = vmatpush1.bf16.msra.mxu0 %v6974_v37  ;;  %v7021_v36 = vcombine.high %v3493_v47, %v3497_v48  ;;  %v3498_v37 = vld [vmem:[#allocation20 + $0x3e8] sm:$0xff] }
0x1662   :  { %v3310_v33 = vpop.xlane.xlu0 %3309 }
0x1663   :  { %v3315_v55 = vmul.f32 0.00390625, %v3310_v33  ;;  %v7020_v33 = vcombine.low %v3493_v47, %v3497_v48  ;;  %v3403_v47 = vld [vmem:[#allocation20 + $0xf0] sm:$0xff]  ;;  %v3400_v48 = vld [vmem:[#allocation20 + $0xd8] sm:$0xff] }
0x1664   :  { %v3313_v17 = vpop.xlane.xlu1 %3312 }
0x1665   :  { %v9765_v59 = vsub.f32 %v9752_v24, %v3315_v55  ;;  %v9768_v60 = vsub.f32 %v9754_v42, %v3315_v55  ;;  %v3316_v62 = vmul.f32 0.00390625, %v3313_v17  ;;  %v7023_v55 = vcombine.high %v3494_v50, %v3498_v37 }
0x1666   :  { %v7022_v17 = vcombine.low %v3494_v50, %v3498_v37  ;;  %v3404_v50 = vld [vmem:[#allocation20 + $0xf8] sm:$0xff]  ;;  %v6922_v37 = vcombine.low %v3392_v63, %v3396_v8 }
0x1667   :  { %v9771_v0 = vsub.f32 %v9756_v3, %v3316_v62  ;;  %v9774_v1 = vsub.f32 %v9758_v34, %v3316_v62  ;;  %v3321_v7 = vmul.f32 %v9765_v59, %v9765_v59  ;;  %v3322_v19 = vmul.f32 %v9768_v60, %v9768_v60  ;;  %v3453_v3 = vld [vmem:[#allocation20 + $0x280] sm:$0xff]  ;;  %v3454_v34 = vld [vmem:[#allocation20 + $0x288] sm:$0xff]  ;;  %v3375_v62 = vld [vmem:[#allocation20 + $0x10] sm:$0xff] }
0x1668   :  { %v6981_v15 = vcombine.high %v3453_v3, %v3457_v13  ;;  %v6980_v56 = vcombine.low %v3453_v3, %v3457_v13  ;;  %v6982_v18 = vcombine.low %v3454_v34, %v3458_v16  ;;  %v6983_v20 = vcombine.high %v3454_v34, %v3458_v16 }
0x1669   :  { %v3325_v23 = vadd.f32 %v3322_v19, %v3321_v7  ;;  %v3323_v24 = vmul.f32 %v9771_v0, %v9771_v0  ;;  %v3324_v42 = vmul.f32 %v9774_v1, %v9774_v1  ;;  %v3379_v7 = vld [vmem:[#allocation20 + $0x30] sm:$0xff]  ;;  %v3376_v19 = vld [vmem:[#allocation20 + $0x18] sm:$0xff] }
0x166a   :  { %4203 = vmatprep.subr.bf16.mxu1 %v6981_v15  ;;  %4246 = vmatprep.subr.bf16.mxu0 %v6983_v20  ;;  %v3306_v20 = vld [vmem:[#allocation17] sm:$0x3] }
0x166b   :  { %3326 = vadd.xlane.f32.xlu0 %v3325_v23  ;;  %v3328_v10 = vadd.f32 %v3324_v42, %v3323_v24  ;;  %4204 = vmatpush1.bf16.msra.mxu1 %v6980_v56  ;;  %v6905_v23 = vcombine.high %v3375_v62, %v3379_v7  ;;  %v3380_v24 = vld [vmem:[#allocation20 + $0x38] sm:$0xff]  ;;  %v6904_v42 = vcombine.low %v3375_v62, %v3379_v7  ;;  %v3411_v62 = vld [vmem:[#allocation20 + $0x130] sm:$0xff] }
0x166c   :  { %4247 = vmatpush1.bf16.msra.mxu0 %v6982_v18  ;;  %4205 = vmatprep.subr.bf16.mxu1 %v6989_v31  ;;  %v6907_v3 = vcombine.high %v3376_v19, %v3380_v24  ;;  %v3307_v31 = vld [vmem:[#allocation19] sm:$0x3]  ;;  %v3349_v22 = vrot.slane %v3306_v20, %v9282_v5 }
0x166d   :  { %4248 = vmatprep.subr.bf16.mxu0 %v6991_v53  ;;  %v3364_v53 = vrot.slane %v3307_v31, %v9282_v5  ;;  %v3360_v57 = vrot.slane %v3307_v31, %v9277_v30  ;;  %v3408_v7 = vld [vmem:[#allocation20 + $0x118] sm:$0xff] }
0x166e   :  { %v3428_v31 = vld [vmem:[#allocation20 + $0x1b8] sm:$0xff] }
0x166f   :  { %3329 = vadd.xlane.f32.xlu0 %v3328_v10  ;;  %4206 = vmatpush1.bf16.msra.mxu1 %v6988_v41  ;;  %v6906_v10 = vcombine.low %v3376_v19, %v3380_v24  ;;  %v3345_v41 = vrot.slane %v3306_v20, %v9277_v30  ;;  %v3412_v19 = vld [vmem:[#allocation20 + $0x138] sm:$0xff]  ;;  %v6930_v24 = vcombine.low %v3400_v48, %v3404_v50 }
0x1670   :  { %4249 = vmatpush1.bf16.msra.mxu0 %v6990_v61  ;;  %4207 = vmatprep.subr.bf16.mxu1 %v6997_v9 }
0x1671   :  { %4250 = vmatprep.subr.bf16.mxu0 %v6999_v39 }
0x1673   :  { %4208 = vmatpush1.bf16.msra.mxu1 %v6996_v35 }
0x1674   :  { %4251 = vmatpush1.bf16.msra.mxu0 %v6998_v29  ;;  %4209 = vmatprep.subr.bf16.mxu1 %v7005_v51  ;;  %v3384_v51 = vld [vmem:[#allocation20 + $0x58] sm:$0xff] }
0x1675   :  { %4252 = vmatprep.subr.bf16.mxu0 %v7007_v12  ;;  %v6915_v12 = vcombine.high %v3384_v51, %v3388_v46  ;;  %v6914_v52 = vcombine.low %v3384_v51, %v3388_v46  ;;  %v3443_v51 = vld [vmem:[#allocation20 + $0x230] sm:$0xff]  ;;  %v3440_v46 = vld [vmem:[#allocation20 + $0x218] sm:$0xff] }
0x1677   :  { %4210 = vmatpush1.bf16.msra.mxu1 %v7004_v6  ;;  %v3391_v6 = vld [vmem:[#allocation20 + $0x90] sm:$0xff] }
0x1678   :  { %4253 = vmatpush1.bf16.msra.mxu0 %v7006_v28  ;;  %4211 = vmatprep.subr.bf16.mxu1 %v7013_v44  ;;  %v6913_v28 = vcombine.high %v3383_v45, %v3387_v49  ;;  %v6912_v44 = vcombine.low %v3383_v45, %v3387_v49  ;;  %v3439_v49 = vld [vmem:[#allocation20 + $0x210] sm:$0xff] }
0x1679   :  { %4254 = vmatprep.subr.bf16.mxu0 %v7015_v54  ;;  %v3399_v54 = vld [vmem:[#allocation20 + $0xd0] sm:$0xff] }
0x167b   :  { %4212 = vmatpush1.bf16.msra.mxu1 %v7012_v4  ;;  %v6921_v4 = vcombine.high %v3391_v6, %v3395_v14 }
0x167c   :  { %4255 = vmatpush1.bf16.msra.mxu0 %v7014_v26  ;;  %4213 = vmatprep.subr.bf16.mxu1 %v7021_v36  ;;  %v6923_v26 = vcombine.high %v3392_v63, %v3396_v8  ;;  %v6920_v36 = vcombine.low %v3391_v6, %v3395_v14  ;;  %v3447_v63 = vld [vmem:[#allocation20 + $0x250] sm:$0xff] }
0x167d   :  { %4256 = vmatprep.subr.bf16.mxu0 %v7023_v55  ;;  %v6931_v55 = vcombine.high %v3400_v48, %v3404_v50  ;;  %v3451_v8 = vld [vmem:[#allocation20 + $0x270] sm:$0xff] }
0x167e   :  { %v3455_v48 = vld [vmem:[#allocation20 + $0x290] sm:$0xff] }
0x167f   :  { %4214 = vmatpush1.bf16.msra.mxu1 %v7020_v33  ;;  %v6929_v33 = vcombine.high %v3399_v54, %v3403_v47  ;;  %v3459_v50 = vld [vmem:[#allocation20 + $0x2b0] sm:$0xff] }
0x1680   :  { %4257 = vmatpush1.bf16.msra.mxu0 %v7022_v17  ;;  %4269 = vmatprep.subr.bf16.mxu1 %v6905_v23  ;;  %v3407_v17 = vld [vmem:[#allocation20 + $0x110] sm:$0xff]  ;;  %v6928_v23 = vcombine.low %v3399_v54, %v3403_v47  ;;  %v6977_v54 = vcombine.high %v3447_v63, %v3451_v8 }
0x1681   :  { %4312 = vmatprep.subr.bf16.mxu0 %v6907_v3  ;;  %v3415_v3 = vld [vmem:[#allocation20 + $0x150] sm:$0xff] }
0x16f8   :  { %v3327_v13 = vpop.xlane.xlu0 %3326 }
0x16f9   :  { %v3331_v34 = vmul.f32 0.00390625, %v3327_v13  ;;  %v3419_v13 = vld [vmem:[#allocation20 + $0x170] sm:$0xff] }
0x16fb   :  { %v3333_v15 = vadd.f32 1e-05, %v3331_v34  ;;  %v3416_v34 = vld [vmem:[#allocation20 + $0x158] sm:$0xff] }
0x16fc   :  { %v3330_v16 = vpop.xlane.xlu0 %3329 }
0x16fd   :  { %8309 = vrsqrt.f32 %v3333_v15  ;;  %v3332_v56 = vmul.f32 0.00390625, %v3330_v16  ;;  %v3420_v15 = vld [vmem:[#allocation20 + $0x178] sm:$0xff]  ;;  %v6936_v16 = vcombine.low %v3407_v17, %v3411_v62 }
0x16fe   :  { %v6947_v20 = vcombine.high %v3416_v34, %v3420_v15 }
0x16ff   :  { %v3334_v18 = vadd.f32 1e-05, %v3332_v56  ;;  %v6938_v56 = vcombine.low %v3408_v7, %v3412_v19 }
0x1701   :  { %8311 = vrsqrt.f32 %v3334_v18  ;;  %v6945_v18 = vcombine.high %v3415_v3, %v3419_v13 }
0x1707   :  { %v8310_v21 = vpop.eup %8309 }
0x1708   :  { %v3337_v43 = vmul.f32 %v8310_v21, %v9765_v59  ;;  %v3338_v25 = vmul.f32 %v8310_v21, %v9768_v60  ;;  %v3423_v21 = vld [vmem:[#allocation20 + $0x190] sm:$0xff] }
0x170a   :  { %v3353_v9 = vmul.f32 %v3349_v22, %v3338_v25  ;;  %v3352_v32 = vmul.f32 %v3345_v41, %v3337_v43  ;;  %v3427_v43 = vld [vmem:[#allocation20 + $0x1b0] sm:$0xff]  ;;  %v3424_v25 = vld [vmem:[#allocation20 + $0x198] sm:$0xff] }
0x170b   :  { %v8312_v61 = vpop.eup %8311 }
0x170c   :  { %v3339_v58 = vmul.f32 %v8312_v61, %v9771_v0  ;;  %v3340_v2 = vmul.f32 %v8312_v61, %v9774_v1  ;;  %v9792_v29 = vadd.f32 %v3364_v53, %v3353_v9  ;;  %v9796_v39 = vadd.f32 %v3360_v57, %v3352_v32  ;;  %v3436_v9 = vld [vmem:[#allocation20 + $0x1f8] sm:$0xff] }
0x170d   :  { %v6953_v61 = vcombine.high %v3423_v21, %v3427_v43  ;;  %v6952_v32 = vcombine.low %v3423_v21, %v3427_v43 }
0x170e   :  { %v3355_v35 = vmul.f32 %v3349_v22, %v3340_v2  ;;  %v3354_v59 = vmul.f32 %v3345_v41, %v3339_v58  ;;  %v6944_v22 = vcombine.low %v3415_v3, %v3419_v13  ;;  %v6946_v41 = vcombine.low %v3416_v34, %v3420_v15  ;;  %v3435_v58 = vld [vmem:[#allocation20 + $0x1f0] sm:$0xff]  ;;  %v3432_v2 = vld [vmem:[#allocation20 + $0x1d8] sm:$0xff] }
0x170f   :  { %v6963_v45 = vcombine.high %v3432_v2, %v3436_v9  ;;  %v3471_v34 = vld [vmem:[#allocation20 + $0x310] sm:$0xff] }
0x1710   :  { %v9794_v60 = vadd.f32 %v3364_v53, %v3355_v35  ;;  %v9798_v40 = vadd.f32 %v3360_v57, %v3354_v59  ;;  %v6955_v53 = vcombine.high %v3424_v25, %v3428_v31  ;;  %v3431_v57 = vld [vmem:[#allocation20 + $0x1d0] sm:$0xff]  ;;  %v6954_v35 = vcombine.low %v3424_v25, %v3428_v31 }
0x1711   :  { %v6961_v59 = vcombine.high %v3431_v57, %v3435_v58  ;;  %v6960_v6 = vcombine.low %v3431_v57, %v3435_v58  ;;  %v3475_v15 = vld [vmem:[#allocation20 + $0x330] sm:$0xff] }
0x1712   :  { %v3372_v0 = vpack.c.bf16 %v9794_v60, %v9792_v29  ;;  %v9804_v1 = vpack.c.bf16 %v9798_v40, %v9796_v39  ;;  %v7001_v21 = vcombine.high %v3471_v34, %v3475_v15  ;;  %v3479_v25 = vld [vmem:[#allocation20 + $0x350] sm:$0xff] }
0x1713   :  { %v3483_v31 = vld [vmem:[#allocation20 + $0x370] sm:$0xff] }
0x1714   :  { %4215 = vmatprep.mubr.bf16.mxu1 %v3372_v0  ;;  %4258 = vmatprep.mubr.bf16.mxu0 %v3372_v0  ;;  %v7009_v57 = vcombine.high %v3479_v25, %v3483_v31 }
0x1715   :  { %4216 = vmatmul.mubr.bf16.vlgmr.msra.gmra.mrb[96].mxu1 %v9804_v1  ;;  %4259 = vmatmul.mubr.bf16.vlgmr.msra.gmra.mrb[56].mxu0 %v9804_v1 }
0x1716   :  { %4270 = vmatpush1.bf16.msra.mxu1 %v6904_v42  ;;  %4313 = vmatpush1.bf16.msra.mxu0 %v6906_v10  ;;  %v6937_v42 = vcombine.high %v3407_v17, %v3411_v62  ;;  %v6939_v10 = vcombine.high %v3408_v7, %v3412_v19  ;;  %v6985_v17 = vcombine.high %v3455_v48, %v3459_v50  ;;  %v3463_v7 = vld [vmem:[#allocation20 + $0x2d0] sm:$0xff] }
0x1717   :  { %4301 = vmatprep.mubr.bf16.mxu1 %v3372_v0  ;;  %4344 = vmatprep.mubr.bf16.mxu0 %v3372_v0  ;;  %v3444_v0 = vld [vmem:[#allocation20 + $0x238] sm:$0xff]  ;;  %v3467_v19 = vld [vmem:[#allocation20 + $0x2f0] sm:$0xff] }
0x1718   :  { %4271 = vmatprep.subr.bf16.mxu1 %v6913_v28  ;;  %4314 = vmatprep.subr.bf16.mxu0 %v6915_v12  ;;  %v6962_v28 = vcombine.low %v3432_v2, %v3436_v9  ;;  %v6969_v12 = vcombine.high %v3439_v49, %v3443_v51  ;;  %v6971_v14 = vcombine.high %v3440_v46, %v3444_v0  ;;  %v3487_v2 = vld [vmem:[#allocation20 + $0x390] sm:$0xff] }
0x1719   :  { %v6993_v3 = vcombine.high %v3463_v7, %v3467_v19  ;;  %v3491_v9 = vld [vmem:[#allocation20 + $0x3b0] sm:$0xff] }
0x171a   :  { %4272 = vmatpush1.bf16.msra.mxu1 %v6912_v44  ;;  %4315 = vmatpush1.bf16.msra.mxu0 %v6914_v52  ;;  %v3448_v44 = vld [vmem:[#allocation20 + $0x258] sm:$0xff] }
0x171b   :  { %4273 = vmatprep.subr.bf16.mxu1 %v6921_v4  ;;  %4316 = vmatprep.subr.bf16.mxu0 %v6923_v26  ;;  %v3452_v52 = vld [vmem:[#allocation20 + $0x278] sm:$0xff]  ;;  %v6968_v4 = vcombine.low %v3439_v49, %v3443_v51  ;;  %v6970_v26 = vcombine.low %v3440_v46, %v3444_v0  ;;  %v7017_v49 = vcombine.high %v3487_v2, %v3491_v9  ;;  %v3495_v46 = vld [vmem:[#allocation20 + $0x3d0] sm:$0xff] }
0x171c   :  { %v6979_v47 = vcombine.high %v3448_v44, %v3452_v52  ;;  %v3499_v0 = vld [vmem:[#allocation20 + $0x3f0] sm:$0xff] }
0x171e   :  { %4274 = vmatpush1.bf16.msra.mxu1 %v6920_v36  ;;  %4317 = vmatpush1.bf16.msra.mxu0 %v6922_v37  ;;  %v3456_v36 = vld [vmem:[#allocation20 + $0x298] sm:$0xff] }
0x171f   :  { %4275 = vmatprep.subr.bf16.mxu1 %v6929_v33  ;;  %4318 = vmatprep.subr.bf16.mxu0 %v6931_v55  ;;  %v3460_v37 = vld [vmem:[#allocation20 + $0x2b8] sm:$0xff]  ;;  %v6976_v33 = vcombine.low %v3447_v63, %v3451_v8  ;;  %v6978_v55 = vcombine.low %v3448_v44, %v3452_v52  ;;  %v7025_v63 = vcombine.high %v3495_v46, %v3499_v0 }
0x1720   :  { %v6987_v62 = vcombine.high %v3456_v36, %v3460_v37  ;;  %v7024_v44 = vcombine.low %v3495_v46, %v3499_v0 }
0x1722   :  { %4276 = vmatpush1.bf16.msra.mxu1 %v6928_v23  ;;  %4319 = vmatpush1.bf16.msra.mxu0 %v6930_v24  ;;  %v3464_v23 = vld [vmem:[#allocation20 + $0x2d8] sm:$0xff] }
0x1723   :  { %4277 = vmatprep.subr.bf16.mxu1 %v6937_v42  ;;  %4320 = vmatprep.subr.bf16.mxu0 %v6939_v10  ;;  %v3468_v24 = vld [vmem:[#allocation20 + $0x2f8] sm:$0xff]  ;;  %v6984_v42 = vcombine.low %v3455_v48, %v3459_v50  ;;  %v6986_v10 = vcombine.low %v3456_v36, %v3460_v37  ;;  %v7917_v48 = vld [vmem:[#allocation23 + $0x24] ss:$8 sps:$4 sm:$0xff]   ;;  %v7915_v50 = vld [vmem:[#allocation23 + $0x20] ss:$8 sps:$4 sm:$0xff]  }
0x1724   :  { %v6995_v13 = vcombine.high %v3464_v23, %v3468_v24  ;;  %v7920_v36 = vld [vmem:[#allocation23 + $0x34] ss:$8 sps:$4 sm:$0xff]   ;;  %v7918_v37 = vld [vmem:[#allocation23 + $0x30] ss:$8 sps:$4 sm:$0xff]  }
0x1726   :  { %4278 = vmatpush1.bf16.msra.mxu1 %v6936_v16  ;;  %4321 = vmatpush1.bf16.msra.mxu0 %v6938_v56  ;;  %v3472_v16 = vld [vmem:[#allocation20 + $0x318] sm:$0xff] }
0x1727   :  { %4279 = vmatprep.subr.bf16.mxu1 %v6945_v18  ;;  %4322 = vmatprep.subr.bf16.mxu0 %v6947_v20  ;;  %v3476_v56 = vld [vmem:[#allocation20 + $0x338] sm:$0xff]  ;;  %v6992_v18 = vcombine.low %v3463_v7, %v3467_v19  ;;  %v6994_v20 = vcombine.low %v3464_v23, %v3468_v24  ;;  %v7927_v7 = vld [vmem:[#allocation23 + $0x60] ss:$8 sps:$4 sm:$0xff]   ;;  %v7935_v24 = vld [vmem:[#allocation23 + $0x84] ss:$8 sps:$4 sm:$0xff]  }
0x1728   :  { %v7003_v43 = vcombine.high %v3472_v16, %v3476_v56  ;;  %v7932_v19 = vld [vmem:[#allocation23 + $0x74] ss:$8 sps:$4 sm:$0xff]   ;;  %v7930_v23 = vld [vmem:[#allocation23 + $0x70] ss:$8 sps:$4 sm:$0xff]  }
0x172a   :  { %4280 = vmatpush1.bf16.msra.mxu1 %v6944_v22  ;;  %4323 = vmatpush1.bf16.msra.mxu0 %v6946_v41  ;;  %v3480_v22 = vld [vmem:[#allocation20 + $0x358] sm:$0xff] }
0x172b   :  { %4281 = vmatprep.subr.bf16.mxu1 %v6953_v61  ;;  %4324 = vmatprep.subr.bf16.mxu0 %v6955_v53  ;;  %v3484_v41 = vld [vmem:[#allocation20 + $0x378] sm:$0xff]  ;;  %v7000_v61 = vcombine.low %v3471_v34, %v3475_v15  ;;  %v7002_v53 = vcombine.low %v3472_v16, %v3476_v56  ;;  %v7939_v34 = vld [vmem:[#allocation23 + $0xa0] ss:$8 sps:$4 sm:$0xff]   ;;  %v7947_v56 = vld [vmem:[#allocation23 + $0xc4] ss:$8 sps:$4 sm:$0xff]  }
0x172c   :  { %v7011_v58 = vcombine.high %v3480_v22, %v3484_v41  ;;  %v7944_v15 = vld [vmem:[#allocation23 + $0xb4] ss:$8 sps:$4 sm:$0xff]   ;;  %v7942_v16 = vld [vmem:[#allocation23 + $0xb0] ss:$8 sps:$4 sm:$0xff]  }
0x172e   :  { %4282 = vmatpush1.bf16.msra.mxu1 %v6952_v32  ;;  %4325 = vmatpush1.bf16.msra.mxu0 %v6954_v35  ;;  %v3488_v32 = vld [vmem:[#allocation20 + $0x398] sm:$0xff] }
0x172f   :  { %4283 = vmatprep.subr.bf16.mxu1 %v6961_v59  ;;  %4326 = vmatprep.subr.bf16.mxu0 %v6963_v45  ;;  %v3492_v35 = vld [vmem:[#allocation20 + $0x3b8] sm:$0xff]  ;;  %v7008_v59 = vcombine.low %v3479_v25, %v3483_v31  ;;  %v7010_v45 = vcombine.low %v3480_v22, %v3484_v41  ;;  %v7951_v25 = vld [vmem:[#allocation23 + $0xe0] ss:$8 sps:$4 sm:$0xff]   ;;  %v7959_v41 = vld [vmem:[#allocation23 + $0x104] ss:$8 sps:$4 sm:$0xff]  }
0x1730   :  { %v7019_v51 = vcombine.high %v3488_v32, %v3492_v35  ;;  %v7956_v31 = vld [vmem:[#allocation23 + $0xf4] ss:$8 sps:$4 sm:$0xff]   ;;  %v7954_v22 = vld [vmem:[#allocation23 + $0xf0] ss:$8 sps:$4 sm:$0xff]  }
0x1732   :  { %4284 = vmatpush1.bf16.msra.mxu1 %v6960_v6  ;;  %4327 = vmatpush1.bf16.msra.mxu0 %v6962_v28  ;;  %v3496_v6 = vld [vmem:[#allocation20 + $0x3d8] sm:$0xff] }
0x1733   :  { %4285 = vmatprep.subr.bf16.mxu1 %v6969_v12  ;;  %4328 = vmatprep.subr.bf16.mxu0 %v6971_v14  ;;  %v3500_v28 = vld [vmem:[#allocation20 + $0x3f8] sm:$0xff]  ;;  %v7016_v12 = vcombine.low %v3487_v2, %v3491_v9  ;;  %v7018_v14 = vcombine.low %v3488_v32, %v3492_v35 }
0x1734   :  { %v7027_v8 = vcombine.high %v3496_v6, %v3500_v28  ;;  %v7026_v52 = vcombine.low %v3496_v6, %v3500_v28 }
0x1736   :  { %4286 = vmatpush1.bf16.msra.mxu1 %v6968_v4  ;;  %4329 = vmatpush1.bf16.msra.mxu0 %v6970_v26  ;;  %v7911_v4 = vld [vmem:[#allocation23 + $0x4] ss:$8 sps:$4 sm:$0xff]   ;;  %v7909_v26 = vld [vmem:[#allocation23] ss:$8 sps:$4 sm:$0xff]  }
0x1737   :  { %4287 = vmatprep.subr.bf16.mxu1 %v6977_v54  ;;  %4330 = vmatprep.subr.bf16.mxu0 %v6979_v47  ;;  %v7914_v54 = vld [vmem:[#allocation23 + $0x14] ss:$8 sps:$4 sm:$0xff]   ;;  %v7912_v47 = vld [vmem:[#allocation23 + $0x10] ss:$8 sps:$4 sm:$0xff]  }
0x173a   :  { %4288 = vmatpush1.bf16.msra.mxu1 %v6976_v33  ;;  %4331 = vmatpush1.bf16.msra.mxu0 %v6978_v55  ;;  %v7923_v33 = vld [vmem:[#allocation23 + $0x44] ss:$8 sps:$4 sm:$0xff]   ;;  %v7921_v55 = vld [vmem:[#allocation23 + $0x40] ss:$8 sps:$4 sm:$0xff]  }
0x173b   :  { %4289 = vmatprep.subr.bf16.mxu1 %v6985_v17  ;;  %4332 = vmatprep.subr.bf16.mxu0 %v6987_v62  ;;  %v7926_v17 = vld [vmem:[#allocation23 + $0x54] ss:$8 sps:$4 sm:$0xff]   ;;  %v7924_v62 = vld [vmem:[#allocation23 + $0x50] ss:$8 sps:$4 sm:$0xff]  }
0x173e   :  { %4290 = vmatpush1.bf16.msra.mxu1 %v6984_v42  ;;  %4333 = vmatpush1.bf16.msra.mxu0 %v6986_v10  ;;  %v7933_v42 = vld [vmem:[#allocation23 + $0x80] ss:$8 sps:$4 sm:$0xff]   ;;  %v7938_v10 = vld [vmem:[#allocation23 + $0x94] ss:$8 sps:$4 sm:$0xff]  }
0x173f   :  { %4291 = vmatprep.subr.bf16.mxu1 %v6993_v3  ;;  %4334 = vmatprep.subr.bf16.mxu0 %v6995_v13  ;;  %v7936_v3 = vld [vmem:[#allocation23 + $0x90] ss:$8 sps:$4 sm:$0xff]   ;;  %v7941_v13 = vld [vmem:[#allocation23 + $0xa4] ss:$8 sps:$4 sm:$0xff]  }
0x1742   :  { %4292 = vmatpush1.bf16.msra.mxu1 %v6992_v18  ;;  %4335 = vmatpush1.bf16.msra.mxu0 %v6994_v20  ;;  %v7945_v18 = vld [vmem:[#allocation23 + $0xc0] ss:$8 sps:$4 sm:$0xff]   ;;  %v7950_v20 = vld [vmem:[#allocation23 + $0xd4] ss:$8 sps:$4 sm:$0xff]  }
0x1743   :  { %4293 = vmatprep.subr.bf16.mxu1 %v7001_v21  ;;  %4336 = vmatprep.subr.bf16.mxu0 %v7003_v43  ;;  %v7948_v21 = vld [vmem:[#allocation23 + $0xd0] ss:$8 sps:$4 sm:$0xff]   ;;  %v7953_v43 = vld [vmem:[#allocation23 + $0xe4] ss:$8 sps:$4 sm:$0xff]  }
0x1746   :  { %4294 = vmatpush1.bf16.msra.mxu1 %v7000_v61  ;;  %4337 = vmatpush1.bf16.msra.mxu0 %v7002_v53  ;;  %v9810_v61 = vld [vmem:[#allocation22] sm:$0xff] }
0x1747   :  { %4295 = vmatprep.subr.bf16.mxu1 %v7009_v57  ;;  %4338 = vmatprep.subr.bf16.mxu0 %v7011_v58  ;;  %v3506_v53 = vrot.slane %v9810_v61, %v9277_v30  ;;  %v3514_v57 = vrot.slane %v9810_v61, %v9381_v27  ;;  %v3510_v58 = vrot.slane %v9810_v61, %v9282_v5 }
0x1748   :  { %v3518_v2 = vrot.slane %v9810_v61, %v9384_v11 }
0x174a   :  { %4296 = vmatpush1.bf16.msra.mxu1 %v7008_v59  ;;  %4339 = vmatpush1.bf16.msra.mxu0 %v7010_v45 }
0x174b   :  { %4297 = vmatprep.subr.bf16.mxu1 %v7017_v49  ;;  %4340 = vmatprep.subr.bf16.mxu0 %v7019_v51 }
0x174e   :  { %4298 = vmatpush1.bf16.msra.mxu1 %v7016_v12  ;;  %4341 = vmatpush1.bf16.msra.mxu0 %v7018_v14 }
0x174f   :  { %4299 = vmatprep.subr.bf16.mxu1 %v7025_v63  ;;  %4342 = vmatprep.subr.bf16.mxu0 %v7027_v8 }
0x1752   :  { %4300 = vmatpush1.bf16.msra.mxu1 %v7024_v44  ;;  %4343 = vmatpush1.bf16.msra.mxu0 %v7026_v52 }
0x1753   :  { %5287 = vmatprep.subr.bf16.mxu1 %v7911_v4 }
0x1755   :  { %4302 = vmatmul.mubr.bf16.vlgmr.msra.gmra.mrb[100].mxu1 %v9804_v1  ;;  %4345 = vmatmul.mubr.bf16.vlgmr.msra.gmra.mrb[60].mxu0 %v9804_v1  ;;  %v7929_v1 = vld [vmem:[#allocation23 + $0x64] ss:$8 sps:$4 sm:$0xff]  }
0x1756   :  { %5288 = vmatpush1.bf16.msra.mxu1 %v7909_v26 }
0x1757   :  { %5289 = vmatprep.subr.bf16.mxu1 %v7914_v54 }
0x175a   :  { %5290 = vmatpush1.bf16.msra.mxu1 %v7912_v47 }
0x175b   :  { %5291 = vmatprep.subr.bf16.mxu1 %v7917_v48 }
0x175e   :  { %5292 = vmatpush1.bf16.msra.mxu1 %v7915_v50 }
0x175f   :  { %5293 = vmatprep.subr.bf16.mxu1 %v7920_v36 }
0x1762   :  { %5294 = vmatpush1.bf16.msra.mxu1 %v7918_v37 }
0x1763   :  { %5295 = vmatprep.subr.bf16.mxu1 %v7923_v33 }
0x1766   :  { %5296 = vmatpush1.bf16.msra.mxu1 %v7921_v55 }
0x1767   :  { %5297 = vmatprep.subr.bf16.mxu1 %v7926_v17 }
0x176a   :  { %5298 = vmatpush1.bf16.msra.mxu1 %v7924_v62 }
0x176b   :  { %5299 = vmatprep.subr.bf16.mxu1 %v7929_v1 }
0x176e   :  { %5300 = vmatpush1.bf16.msra.mxu1 %v7927_v7 }
0x176f   :  { %5301 = vmatprep.subr.bf16.mxu1 %v7932_v19 }
0x1772   :  { %5302 = vmatpush1.bf16.msra.mxu1 %v7930_v23 }
0x1773   :  { %5303 = vmatprep.subr.bf16.mxu1 %v7935_v24 }
0x1776   :  { %5304 = vmatpush1.bf16.msra.mxu1 %v7933_v42 }
0x1777   :  { %5305 = vmatprep.subr.bf16.mxu1 %v7938_v10 }
0x177a   :  { %5306 = vmatpush1.bf16.msra.mxu1 %v7936_v3 }
0x177b   :  { %5307 = vmatprep.subr.bf16.mxu1 %v7941_v13 }
0x177e   :  { %5308 = vmatpush1.bf16.msra.mxu1 %v7939_v34 }
0x177f   :  { %5309 = vmatprep.subr.bf16.mxu1 %v7944_v15 }
0x1782   :  { %5310 = vmatpush1.bf16.msra.mxu1 %v7942_v16 }
0x1783   :  { %5311 = vmatprep.subr.bf16.mxu1 %v7947_v56 }
0x1786   :  { %5312 = vmatpush1.bf16.msra.mxu1 %v7945_v18 }
0x1787   :  { %5313 = vmatprep.subr.bf16.mxu1 %v7950_v20 }
0x178a   :  { %5314 = vmatpush1.bf16.msra.mxu1 %v7948_v21 }
0x178b   :  { %5315 = vmatprep.subr.bf16.mxu1 %v7953_v43 }
0x178e   :  { %5316 = vmatpush1.bf16.msra.mxu1 %v7951_v25 }
0x178f   :  { %5317 = vmatprep.subr.bf16.mxu1 %v7956_v31 }
0x1792   :  { %5318 = vmatpush1.bf16.msra.mxu1 %v7954_v22 }
0x1793   :  { %5330 = vmatprep.subr.bf16.mxu1 %v7959_v41 }
0x17e8   :  { %v4217_v9 = vpop.f32.mrb[96].mxu1  ;;  %v4260_v32 = vpop.f32.mrb[56].mxu0 }
0x17e9   :  { %v9820_v35 = vadd.f32 %v4217_v9, %v3506_v53  ;;  %v9822_v59 = vadd.f32 %v4260_v32, %v3514_v57  ;;  %v4219_v45 = vpop.f32.mrb[97].mxu1  ;;  %v4262_v49 = vpop.f32.mrb[57].mxu0 }
0x17ea   :  { %v9824_v51 = vadd.f32 %v4219_v45, %v3510_v58  ;;  %v9826_v46 = vadd.f32 %v4262_v49, %v3518_v2  ;;  %v4221_v0 = vpop.f32.mrb[98].mxu1  ;;  %v4264_v6 = vpop.f32.mrb[58].mxu0 }
0x17eb   :  { %v4355_v28 = vmul.f32 %v9820_v35, %v9820_v35  ;;  %v4357_v12 = vmul.f32 %v9822_v59, %v9822_v59  ;;  %v9832_v14 = vadd.f32 %v4221_v0, %v3506_v53  ;;  %v9834_v63 = vadd.f32 %v4264_v6, %v3514_v57  ;;  %v4223_v8 = vpop.f32.mrb[99].mxu1  ;;  %v4266_v44 = vpop.f32.mrb[59].mxu0 }
0x17ec   :  { %v4356_v52 = vmul.f32 %v9824_v51, %v9824_v51  ;;  %v4358_v4 = vmul.f32 %v9826_v46, %v9826_v46  ;;  %v9840_v26 = vadd.f32 %v4223_v8, %v3510_v58  ;;  %v9842_v54 = vadd.f32 %v4266_v44, %v3518_v2 }
0x17ed   :  { %v4371_v47 = vmul.f32 %v4355_v28, %v9820_v35  ;;  %v4373_v48 = vmul.f32 %v4357_v12, %v9822_v59  ;;  %v4363_v50 = vmul.f32 %v9832_v14, %v9832_v14  ;;  %v4365_v36 = vmul.f32 %v9834_v63, %v9834_v63 }
0x17ee   :  { %v4372_v37 = vmul.f32 %v4356_v52, %v9824_v51  ;;  %v4374_v33 = vmul.f32 %v4358_v4, %v9826_v46  ;;  %v4364_v55 = vmul.f32 %v9840_v26, %v9840_v26  ;;  %v4366_v17 = vmul.f32 %v9842_v54, %v9842_v54 }
0x17ef   :  { %v4387_v62 = vmul.f32 0.044715, %v4371_v47  ;;  %v4389_v1 = vmul.f32 0.044715, %v4373_v48  ;;  %v4379_v7 = vmul.f32 %v4363_v50, %v9832_v14  ;;  %v4381_v19 = vmul.f32 %v4365_v36, %v9834_v63 }
0x17f0   :  { %v4388_v23 = vmul.f32 0.044715, %v4372_v37  ;;  %v4390_v24 = vmul.f32 0.044715, %v4374_v33  ;;  %v4380_v42 = vmul.f32 %v4364_v55, %v9840_v26  ;;  %v4382_v10 = vmul.f32 %v4366_v17, %v9842_v54 }
0x17f1   :  { %v4403_v3 = vadd.f32 %v4387_v62, %v9820_v35  ;;  %v4405_v13 = vadd.f32 %v4389_v1, %v9822_v59  ;;  %v4395_v34 = vmul.f32 0.044715, %v4379_v7  ;;  %v4397_v15 = vmul.f32 0.044715, %v4381_v19 }
0x17f2   :  { %v4404_v16 = vadd.f32 %v4388_v23, %v9824_v51  ;;  %v4406_v56 = vadd.f32 %v4390_v24, %v9826_v46  ;;  %v4396_v18 = vmul.f32 0.044715, %v4380_v42  ;;  %v4398_v20 = vmul.f32 0.044715, %v4382_v10 }
0x17f3   :  { %v4419_v21 = vmul.f32 0.7978846, %v4403_v3  ;;  %v4421_v43 = vmul.f32 0.7978846, %v4405_v13  ;;  %v4411_v25 = vadd.f32 %v4395_v34, %v9832_v14  ;;  %v4413_v31 = vadd.f32 %v4397_v15, %v9834_v63 }
0x17f4   :  { %v4420_v22 = vmul.f32 0.7978846, %v4404_v16  ;;  %v4422_v41 = vmul.f32 0.7978846, %v4406_v56  ;;  %v4412_v53 = vadd.f32 %v4396_v18, %v9840_v26  ;;  %v4414_v57 = vadd.f32 %v4398_v20, %v9842_v54  ;;  %v7957_v20 = vld [vmem:[#allocation23 + $0x100] ss:$8 sps:$4 sm:$0xff]  }
0x17f5   :  { %8313 = vtanh.f32 %v4419_v21  ;;  %v4427_v58 = vmul.f32 0.7978846, %v4411_v25  ;;  %v4429_v2 = vmul.f32 0.7978846, %v4413_v31  ;;  %v7962_v21 = vld [vmem:[#allocation23 + $0x114] ss:$8 sps:$4 sm:$0xff]  }
0x17f6   :  { %8315 = vtanh.f32 %v4421_v43  ;;  %v4428_v9 = vmul.f32 0.7978846, %v4412_v53  ;;  %v4430_v32 = vmul.f32 0.7978846, %v4414_v57  ;;  %v7971_v43 = vld [vmem:[#allocation23 + $0x144] ss:$8 sps:$4 sm:$0xff]  }
0x17f7   :  { %8317 = vtanh.f32 %v4420_v22  ;;  %v7969_v25 = vld [vmem:[#allocation23 + $0x140] ss:$8 sps:$4 sm:$0xff]   ;;  %v7974_v31 = vld [vmem:[#allocation23 + $0x154] ss:$8 sps:$4 sm:$0xff]   ;;  %v7972_v22 = vld [vmem:[#allocation23 + $0x150] ss:$8 sps:$4 sm:$0xff]  }
0x17f8   :  { %8319 = vtanh.f32 %v4422_v41  ;;  %v7977_v41 = vld [vmem:[#allocation23 + $0x164] ss:$8 sps:$4 sm:$0xff]   ;;  %v3521_v53 = vsub.s32 4, %v9180_v38  ;;  %v3529_v57 = vsub.s32 6, %v9180_v38 }
0x17f9   :  { %8321 = vtanh.f32 %v4427_v58  ;;  %v3525_v58 = vsub.s32 5, %v9180_v38 }
0x17fa   :  { %8323 = vtanh.f32 %v4429_v2  ;;  %v3533_v2 = vsub.s32 7, %v9180_v38 }
0x17fb   :  { %8325 = vtanh.f32 %v4428_v9  ;;  %v7975_v9 = vld [vmem:[#allocation23 + $0x160] ss:$8 sps:$4 sm:$0xff]  }
0x17fc   :  { %8327 = vtanh.f32 %v4430_v32  ;;  %v3522_v32 = vrot.slane %v9810_v61, %v3521_v53 }
0x17ff   :  { %v8314_v45 = vpop.eup %8313 }
0x1800   :  { %v8316_v49 = vpop.eup %8315  ;;  %v4451_v0 = vadd.f32 1.0, %v8314_v45  ;;  %v3530_v45 = vrot.slane %v9810_v61, %v3529_v57 }
0x1801   :  { %v8318_v6 = vpop.eup %8317  ;;  %v4453_v28 = vadd.f32 1.0, %v8316_v49  ;;  %v7980_v49 = vld [vmem:[#allocation23 + $0x174] ss:$8 sps:$4 sm:$0xff]  }
0x1802   :  { %v8320_v12 = vpop.eup %8319  ;;  %v4452_v8 = vadd.f32 1.0, %v8318_v6  ;;  %v4467_v47 = vmul.f32 0.5, %v4451_v0  ;;  %v3526_v0 = vrot.slane %v9810_v61, %v3525_v58  ;;  %v3534_v6 = vrot.slane %v9810_v61, %v3533_v2  ;;  %v7989_v58 = vld [vmem:[#allocation23 + $0x1a4] ss:$8 sps:$4 sm:$0xff]  }
0x1803   :  { %v8322_v44 = vpop.eup %8321  ;;  %v4454_v52 = vadd.f32 1.0, %v8320_v12  ;;  %v4469_v36 = vmul.f32 0.5, %v4453_v28 }
0x1804   :  { %v8324_v4 = vpop.eup %8323  ;;  %v4459_v48 = vadd.f32 1.0, %v8322_v44  ;;  %v4468_v62 = vmul.f32 0.5, %v4452_v8  ;;  %v4483_v23 = vmul.f32 %v4467_v47, %v9820_v35  ;;  %v7978_v8 = vld [vmem:[#allocation23 + $0x170] ss:$8 sps:$4 sm:$0xff]   ;;  %v7983_v47 = vld [vmem:[#allocation23 + $0x184] ss:$8 sps:$4 sm:$0xff]  }
0x1805   :  { %v8326_v50 = vpop.eup %8325  ;;  %v4461_v37 = vadd.f32 1.0, %v8324_v4  ;;  %v4470_v19 = vmul.f32 0.5, %v4454_v52  ;;  %v9871_v10 = vmul.f32 %v4469_v36, %v9822_v59 }
0x1806   :  { %v8328_v33 = vpop.eup %8327  ;;  %v4475_v55 = vmul.f32 0.5, %v4459_v48  ;;  %v4460_v17 = vadd.f32 1.0, %v8326_v50  ;;  %v4484_v34 = vmul.f32 %v4468_v62, %v9824_v51  ;;  %v7965_v51 = vld [vmem:[#allocation23 + $0x124] ss:$8 sps:$4 sm:$0xff]  }
0x1807   :  { %v4477_v1 = vmul.f32 0.5, %v4461_v37  ;;  %v4462_v7 = vadd.f32 1.0, %v8328_v33  ;;  %v4486_v56 = vmul.f32 %v4470_v19, %v9826_v46  ;;  %v7968_v46 = vld [vmem:[#allocation23 + $0x134] ss:$8 sps:$4 sm:$0xff]  }
0x1808   :  { %v4491_v24 = vmul.f32 %v4475_v55, %v9832_v14  ;;  %v4476_v42 = vmul.f32 0.5, %v4460_v17 }
0x1809   :  { %v9874_v3 = vmul.f32 %v4477_v1, %v9834_v63  ;;  %v4478_v13 = vmul.f32 0.5, %v4462_v7  ;;  %v7960_v63 = vld [vmem:[#allocation23 + $0x110] ss:$8 sps:$4 sm:$0xff]  }
0x180a   :  { %v4492_v15 = vmul.f32 %v4476_v42, %v9840_v26  ;;  %v4499_v16 = vpack.c.bf16 %v4491_v24, %v4483_v23  ;;  %v7963_v26 = vld [vmem:[#allocation23 + $0x120] ss:$8 sps:$4 sm:$0xff]  }
0x180b   :  { %v4494_v18 = vmul.f32 %v4478_v13, %v9842_v54  ;;  %v4501_v35 = vpack.c.bf16 %v9874_v3, %v9871_v10  ;;  %v7966_v54 = vld [vmem:[#allocation23 + $0x130] ss:$8 sps:$4 sm:$0xff]   ;;  %v7981_v42 = vld [vmem:[#allocation23 + $0x180] ss:$8 sps:$4 sm:$0xff]   ;;  %v8025_v3 = vld [vmem:[#allocation23 + $0x264] ss:$8 sps:$4 sm:$0xff]  }
0x180c   :  { %v4500_v14 = vpack.c.bf16 %v4492_v15, %v4484_v34  ;;  %v8020_v10 = vld [vmem:[#allocation23 + $0x250] ss:$8 sps:$4 sm:$0xff]  }
0x180d   :  { %v4502_v59 = vpack.c.bf16 %v4494_v18, %v4486_v56  ;;  %v7986_v56 = vld [vmem:[#allocation23 + $0x194] ss:$8 sps:$4 sm:$0xff]  }
0x180e   :  { %5319 = vmatprep.mubr.bf16.mxu1 %v4500_v14 }
0x180f   :  { %5320 = vmatmul.mubr.bf16.vlgmr.msra.gmra.mrb[104].mxu1 %v4499_v16 }
0x1810   :  { %5331 = vmatpush1.bf16.msra.mxu1 %v7957_v20  ;;  %5362 = vmatprep.mubr.bf16.mxu1 %v4502_v59 }
0x1811   :  { %5332 = vmatprep.subr.bf16.mxu1 %v7962_v21 }
0x1814   :  { %5333 = vmatpush1.bf16.msra.mxu1 %v7960_v63 }
0x1815   :  { %5334 = vmatprep.subr.bf16.mxu1 %v7965_v51 }
0x1818   :  { %5335 = vmatpush1.bf16.msra.mxu1 %v7963_v26 }
0x1819   :  { %5336 = vmatprep.subr.bf16.mxu1 %v7968_v46 }
0x181c   :  { %5337 = vmatpush1.bf16.msra.mxu1 %v7966_v54 }
0x181d   :  { %5338 = vmatprep.subr.bf16.mxu1 %v7971_v43 }
0x1820   :  { %5339 = vmatpush1.bf16.msra.mxu1 %v7969_v25 }
0x1821   :  { %5340 = vmatprep.subr.bf16.mxu1 %v7974_v31  ;;  %v7984_v31 = vld [vmem:[#allocation23 + $0x190] ss:$8 sps:$4 sm:$0xff]  }
0x1824   :  { %5341 = vmatpush1.bf16.msra.mxu1 %v7972_v22 }
0x1825   :  { %5342 = vmatprep.subr.bf16.mxu1 %v7977_v41 }
0x1828   :  { %5343 = vmatpush1.bf16.msra.mxu1 %v7975_v9  ;;  %v4303_v28 = vpop.f32.mrb[100].mxu1  ;;  %v4346_v12 = vpop.f32.mrb[60].mxu0 }
0x1829   :  { %v9890_v44 = vadd.f32 %v4303_v28, %v3522_v32  ;;  %v9892_v52 = vadd.f32 %v4346_v12, %v3530_v45  ;;  %5344 = vmatprep.subr.bf16.mxu1 %v7980_v49  ;;  %v4305_v38 = vpop.f32.mrb[101].mxu1  ;;  %v4348_v4 = vpop.f32.mrb[61].mxu0 }
0x182a   :  { %v9894_v48 = vadd.f32 %v4305_v38, %v3526_v0  ;;  %v9896_v50 = vadd.f32 %v4348_v4, %v3534_v6  ;;  %v4307_v36 = vpop.f32.mrb[102].mxu1  ;;  %v4350_v37 = vpop.f32.mrb[62].mxu0 }
0x182b   :  { %v4359_v61 = vmul.f32 %v9890_v44, %v9890_v44  ;;  %v4361_v33 = vmul.f32 %v9892_v52, %v9892_v52  ;;  %v9902_v55 = vadd.f32 %v4307_v36, %v3522_v32  ;;  %v9904_v17 = vadd.f32 %v4350_v37, %v3530_v45  ;;  %v4309_v62 = vpop.f32.mrb[103].mxu1  ;;  %v4352_v1 = vpop.f32.mrb[63].mxu0  ;;  %v7992_v37 = vld [vmem:[#allocation23 + $0x1b4] ss:$8 sps:$4 sm:$0xff]  }
0x182c   :  { %v4360_v7 = vmul.f32 %v9894_v48, %v9894_v48  ;;  %v4362_v19 = vmul.f32 %v9896_v50, %v9896_v50  ;;  %5345 = vmatpush1.bf16.msra.mxu1 %v7978_v8  ;;  %v9910_v23 = vadd.f32 %v4309_v62, %v3526_v0  ;;  %v9912_v24 = vadd.f32 %v4352_v1, %v3534_v6  ;;  %v7990_v1 = vld [vmem:[#allocation23 + $0x1b0] ss:$8 sps:$4 sm:$0xff]  }
0x182d   :  { %v4375_v13 = vmul.f32 %v4359_v61, %v9890_v44  ;;  %v4377_v34 = vmul.f32 %v4361_v33, %v9892_v52  ;;  %v4367_v15 = vmul.f32 %v9902_v55, %v9902_v55  ;;  %v4369_v16 = vmul.f32 %v9904_v17, %v9904_v17  ;;  %5346 = vmatprep.subr.bf16.mxu1 %v7983_v47  ;;  %v7987_v47 = vld [vmem:[#allocation23 + $0x1a0] ss:$8 sps:$4 sm:$0xff]  }
0x182e   :  { %v4376_v18 = vmul.f32 %v4360_v7, %v9894_v48  ;;  %v4378_v14 = vmul.f32 %v4362_v19, %v9896_v50  ;;  %v4368_v20 = vmul.f32 %v9910_v23, %v9910_v23  ;;  %v4370_v59 = vmul.f32 %v9912_v24, %v9912_v24  ;;  %v7995_v7 = vld [vmem:[#allocation23 + $0x1c4] ss:$8 sps:$4 sm:$0xff]   ;;  %v7993_v19 = vld [vmem:[#allocation23 + $0x1c0] ss:$8 sps:$4 sm:$0xff]  }
0x182f   :  { %v4391_v21 = vmul.f32 0.044715, %v4375_v13  ;;  %v4393_v63 = vmul.f32 0.044715, %v4377_v34  ;;  %v4383_v51 = vmul.f32 %v4367_v15, %v9902_v55  ;;  %v4385_v26 = vmul.f32 %v4369_v16, %v9904_v17  ;;  %v7996_v16 = vld [vmem:[#allocation23 + $0x1d0] ss:$8 sps:$4 sm:$0xff]  }
0x1830   :  { %v4392_v46 = vmul.f32 0.044715, %v4376_v18  ;;  %v4394_v54 = vmul.f32 0.044715, %v4378_v14  ;;  %v4384_v43 = vmul.f32 %v4368_v20, %v9910_v23  ;;  %v4386_v25 = vmul.f32 %v4370_v59, %v9912_v24  ;;  %5347 = vmatpush1.bf16.msra.mxu1 %v7981_v42  ;;  %v7998_v42 = vld [vmem:[#allocation23 + $0x1d4] ss:$8 sps:$4 sm:$0xff]  }
0x1831   :  { %v4407_v22 = vadd.f32 %v4391_v21, %v9890_v44  ;;  %v4409_v41 = vadd.f32 %v4393_v63, %v9892_v52  ;;  %v4399_v53 = vmul.f32 0.044715, %v4383_v51  ;;  %v4401_v57 = vmul.f32 0.044715, %v4385_v26  ;;  %5348 = vmatprep.subr.bf16.mxu1 %v7986_v56  ;;  %v8001_v14 = vld [vmem:[#allocation23 + $0x1e4] ss:$8 sps:$4 sm:$0xff]  }
0x1832   :  { %v4408_v2 = vadd.f32 %v4392_v46, %v9894_v48  ;;  %v4410_v9 = vadd.f32 %v4394_v54, %v9896_v50  ;;  %v4400_v32 = vmul.f32 0.044715, %v4384_v43  ;;  %v4402_v45 = vmul.f32 0.044715, %v4386_v25  ;;  %v7999_v54 = vld [vmem:[#allocation23 + $0x1e0] ss:$8 sps:$4 sm:$0xff]  }
0x1833   :  { %v4423_v49 = vmul.f32 0.7978846, %v4407_v22  ;;  %v4425_v0 = vmul.f32 0.7978846, %v4409_v41  ;;  %v4415_v6 = vadd.f32 %v4399_v53, %v9902_v55  ;;  %v4417_v28 = vadd.f32 %v4401_v57, %v9904_v17  ;;  %v8004_v22 = vld [vmem:[#allocation23 + $0x1f4] ss:$8 sps:$4 sm:$0xff]  }
0x1834   :  { %v4424_v12 = vmul.f32 0.7978846, %v4408_v2  ;;  %v4426_v8 = vmul.f32 0.7978846, %v4410_v9  ;;  %v4416_v38 = vadd.f32 %v4400_v32, %v9910_v23  ;;  %v4418_v4 = vadd.f32 %v4402_v45, %v9912_v24  ;;  %5349 = vmatpush1.bf16.msra.mxu1 %v7984_v31 }
0x1835   :  { %8329 = vtanh.f32 %v4423_v49  ;;  %v4431_v36 = vmul.f32 0.7978846, %v4415_v6  ;;  %5350 = vmatprep.subr.bf16.mxu1 %v7989_v58  ;;  %v4433_v61 = vmul.f32 0.7978846, %v4417_v28 }
0x1836   :  { %8331 = vtanh.f32 %v4425_v0  ;;  %v4432_v33 = vmul.f32 0.7978846, %v4416_v38  ;;  %v4434_v62 = vmul.f32 0.7978846, %v4418_v4  ;;  %v8002_v0 = vld [vmem:[#allocation23 + $0x1f0] ss:$8 sps:$4 sm:$0xff]  }
0x1837   :  { %8333 = vtanh.f32 %v4424_v12 }
0x1838   :  { %8335 = vtanh.f32 %v4426_v8  ;;  %5351 = vmatpush1.bf16.msra.mxu1 %v7987_v47  ;;  %v8007_v8 = vld [vmem:[#allocation23 + $0x204] ss:$8 sps:$4 sm:$0xff]  }
0x1839   :  { %8337 = vtanh.f32 %v4431_v36  ;;  %5352 = vmatprep.subr.bf16.mxu1 %v7992_v37 }
0x183a   :  { %8339 = vtanh.f32 %v4433_v61  ;;  %v8010_v61 = vld [vmem:[#allocation23 + $0x214] ss:$8 sps:$4 sm:$0xff]  }
0x183b   :  { %8341 = vtanh.f32 %v4432_v33  ;;  %v8016_v33 = vld [vmem:[#allocation23 + $0x234] ss:$8 sps:$4 sm:$0xff]  }
0x183c   :  { %8343 = vtanh.f32 %v4434_v62  ;;  %5353 = vmatpush1.bf16.msra.mxu1 %v7990_v1  ;;  %v8014_v62 = vld [vmem:[#allocation23 + $0x230] ss:$8 sps:$4 sm:$0xff]   ;;  %v8019_v1 = vld [vmem:[#allocation23 + $0x244] ss:$8 sps:$4 sm:$0xff]  }
0x183d   :  { %5354 = vmatprep.subr.bf16.mxu1 %v7995_v7  ;;  %v8017_v7 = vld [vmem:[#allocation23 + $0x240] ss:$8 sps:$4 sm:$0xff]  }
0x183f   :  { %v8330_v13 = vpop.eup %8329 }
0x1840   :  { %v8332_v34 = vpop.eup %8331  ;;  %v4455_v15 = vadd.f32 1.0, %v8330_v13  ;;  %5355 = vmatpush1.bf16.msra.mxu1 %v7993_v19  ;;  %v8022_v19 = vld [vmem:[#allocation23 + $0x254] ss:$8 sps:$4 sm:$0xff]   ;;  %v8026_v13 = vld [vmem:[#allocation23 + $0x270] ss:$8 sps:$4 sm:$0xff]  }
0x1841   :  { %v8334_v56 = vpop.eup %8333  ;;  %v4457_v18 = vadd.f32 1.0, %v8332_v34  ;;  %5356 = vmatprep.subr.bf16.mxu1 %v7998_v42  ;;  %v8028_v42 = vld [vmem:[#allocation23 + $0x274] ss:$8 sps:$4 sm:$0xff]   ;;  %v8031_v34 = vld [vmem:[#allocation23 + $0x284] ss:$8 sps:$4 sm:$0xff]  }
0x1842   :  { %v8336_v20 = vpop.eup %8335  ;;  %v4456_v59 = vadd.f32 1.0, %v8334_v56  ;;  %v4471_v26 = vmul.f32 0.5, %v4455_v15  ;;  %v8029_v15 = vld [vmem:[#allocation23 + $0x280] ss:$8 sps:$4 sm:$0xff]   ;;  %v8032_v56 = vld [vmem:[#allocation23 + $0x290] ss:$8 sps:$4 sm:$0xff]  }
0x1843   :  { %v8338_v21 = vpop.eup %8337  ;;  %v4458_v63 = vadd.f32 1.0, %v8336_v20  ;;  %v4473_v25 = vmul.f32 0.5, %v4457_v18  ;;  %v8037_v18 = vld [vmem:[#allocation23 + $0x2a4] ss:$8 sps:$4 sm:$0xff]   ;;  %v8040_v20 = vld [vmem:[#allocation23 + $0x2b4] ss:$8 sps:$4 sm:$0xff]  }
0x1844   :  { %v8340_v51 = vpop.eup %8339  ;;  %v4463_v46 = vadd.f32 1.0, %v8338_v21  ;;  %5357 = vmatpush1.bf16.msra.mxu1 %v7996_v16  ;;  %v4472_v58 = vmul.f32 0.5, %v4456_v59  ;;  %v9939_v45 = vmul.f32 %v4471_v26, %v9890_v44  ;;  %v8034_v16 = vld [vmem:[#allocation23 + $0x294] ss:$8 sps:$4 sm:$0xff]   ;;  %v8038_v59 = vld [vmem:[#allocation23 + $0x2b0] ss:$8 sps:$4 sm:$0xff]  }
0x1845   :  { %v8342_v43 = vpop.eup %8341  ;;  %v4465_v31 = vadd.f32 1.0, %v8340_v51  ;;  %5358 = vmatprep.subr.bf16.mxu1 %v8001_v14  ;;  %v4474_v32 = vmul.f32 0.5, %v4458_v63  ;;  %v9945_v28 = vmul.f32 %v4473_v25, %v9892_v52  ;;  %v8035_v14 = vld [vmem:[#allocation23 + $0x2a0] ss:$8 sps:$4 sm:$0xff]   ;;  %v8043_v21 = vld [vmem:[#allocation23 + $0x2c4] ss:$8 sps:$4 sm:$0xff]  }
0x1846   :  { %v8344_v41 = vpop.eup %8343  ;;  %v4479_v53 = vmul.f32 0.5, %v4463_v46  ;;  %v4464_v57 = vadd.f32 1.0, %v8342_v43  ;;  %v4488_v4 = vmul.f32 %v4472_v58, %v9894_v48  ;;  %v8041_v63 = vld [vmem:[#allocation23 + $0x2c0] ss:$8 sps:$4 sm:$0xff]   ;;  %v8046_v51 = vld [vmem:[#allocation23 + $0x2d4] ss:$8 sps:$4 sm:$0xff]  }
0x1847   :  { %v4481_v2 = vmul.f32 0.5, %v4465_v31  ;;  %v4466_v9 = vadd.f32 1.0, %v8344_v41  ;;  %v9955_v47 = vmul.f32 %v4474_v32, %v9896_v50  ;;  %v8008_v50 = vld [vmem:[#allocation23 + $0x210] ss:$8 sps:$4 sm:$0xff]   ;;  %v8049_v46 = vld [vmem:[#allocation23 + $0x2e4] ss:$8 sps:$4 sm:$0xff]  }
0x1848   :  { %v9942_v49 = vmul.f32 %v4479_v53, %v9902_v55  ;;  %5359 = vmatpush1.bf16.msra.mxu1 %v7999_v54  ;;  %v4480_v6 = vmul.f32 0.5, %v4464_v57  ;;  %v8044_v26 = vld [vmem:[#allocation23 + $0x2d0] ss:$8 sps:$4 sm:$0xff]   ;;  %v8047_v54 = vld [vmem:[#allocation23 + $0x2e0] ss:$8 sps:$4 sm:$0xff]  }
0x1849   :  { %v9948_v12 = vmul.f32 %v4481_v2, %v9904_v17  ;;  %5360 = vmatprep.subr.bf16.mxu1 %v8004_v22  ;;  %v4482_v38 = vmul.f32 0.5, %v4466_v9  ;;  %v8005_v17 = vld [vmem:[#allocation23 + $0x200] ss:$8 sps:$4 sm:$0xff]   ;;  %v8052_v43 = vld [vmem:[#allocation23 + $0x2f4] ss:$8 sps:$4 sm:$0xff]  }
0x184a   :  { %v4496_v44 = vmul.f32 %v4480_v6, %v9910_v23  ;;  %v4503_v55 = vpack.c.bf16 %v9942_v49, %v9939_v45  ;;  %v8013_v23 = vld [vmem:[#allocation23 + $0x224] ss:$8 sps:$4 sm:$0xff]   ;;  %v8050_v25 = vld [vmem:[#allocation23 + $0x2f0] ss:$8 sps:$4 sm:$0xff]   ;;  %v8053_v22 = vld [vmem:[#allocation23 + $0x300] ss:$8 sps:$4 sm:$0xff]  }
0x184b   :  { %v9958_v36 = vmul.f32 %v4482_v38, %v9912_v24  ;;  %v4505_v52 = vpack.c.bf16 %v9948_v12, %v9945_v28  ;;  %v8011_v24 = vld [vmem:[#allocation23 + $0x220] ss:$8 sps:$4 sm:$0xff]   ;;  %v8055_v31 = vld [vmem:[#allocation23 + $0x304] ss:$8 sps:$4 sm:$0xff]   ;;  %v8058_v41 = vld [vmem:[#allocation23 + $0x314] ss:$8 sps:$4 sm:$0xff]  }
0x184c   :  { %5361 = vmatpush1.bf16.msra.mxu1 %v8002_v0  ;;  %v4504_v37 = vpack.c.bf16 %v4496_v44, %v4488_v4  ;;  %v8056_v53 = vld [vmem:[#allocation23 + $0x310] ss:$8 sps:$4 sm:$0xff]   ;;  %v8061_v57 = vld [vmem:[#allocation23 + $0x324] ss:$8 sps:$4 sm:$0xff]   ;;  %v8059_v58 = vld [vmem:[#allocation23 + $0x320] ss:$8 sps:$4 sm:$0xff]  }
0x184d   :  { %5373 = vmatprep.subr.bf16.mxu1 %v8007_v8  ;;  %v4506_v48 = vpack.c.bf16 %v9958_v36, %v9955_v47  ;;  %v8064_v2 = vld [vmem:[#allocation23 + $0x334] ss:$8 sps:$4 sm:$0xff]   ;;  %v8062_v9 = vld [vmem:[#allocation23 + $0x330] ss:$8 sps:$4 sm:$0xff]   ;;  %v8067_v32 = vld [vmem:[#allocation23 + $0x344] ss:$8 sps:$4 sm:$0xff]  }
0x184e   :  { %v8065_v0 = vld [vmem:[#allocation23 + $0x340] ss:$8 sps:$4 sm:$0xff]   ;;  %v8070_v45 = vld [vmem:[#allocation23 + $0x354] ss:$8 sps:$4 sm:$0xff]   ;;  %v8068_v49 = vld [vmem:[#allocation23 + $0x350] ss:$8 sps:$4 sm:$0xff]  }
0x184f   :  { %5363 = vmatmul.mubr.bf16.vlgmr.msra.gmra.mrb[104].mxu1 %v4501_v35  ;;  %v8023_v35 = vld [vmem:[#allocation23 + $0x260] ss:$8 sps:$4 sm:$0xff]   ;;  %v8073_v6 = vld [vmem:[#allocation23 + $0x364] ss:$8 sps:$4 sm:$0xff]   ;;  %v8076_v38 = vld [vmem:[#allocation23 + $0x374] ss:$8 sps:$4 sm:$0xff]  }
0x1850   :  { %5374 = vmatpush1.bf16.msra.mxu1 %v8005_v17  ;;  %5405 = vmatprep.mubr.bf16.mxu1 %v4504_v37  ;;  %v8071_v8 = vld [vmem:[#allocation23 + $0x360] ss:$8 sps:$4 sm:$0xff]   ;;  %v8074_v4 = vld [vmem:[#allocation23 + $0x370] ss:$8 sps:$4 sm:$0xff]   ;;  %v8079_v44 = vld [vmem:[#allocation23 + $0x384] ss:$8 sps:$4 sm:$0xff]  }
0x1851   :  { %5375 = vmatprep.subr.bf16.mxu1 %v8010_v61  ;;  %v8082_v47 = vld [vmem:[#allocation23 + $0x394] ss:$8 sps:$4 sm:$0xff]   ;;  %v8080_v36 = vld [vmem:[#allocation23 + $0x390] ss:$8 sps:$4 sm:$0xff]   ;;  %v8085_v17 = vld [vmem:[#allocation23 + $0x3a4] ss:$8 sps:$4 sm:$0xff]  }
0x1852   :  { %v8083_v37 = vld [vmem:[#allocation23 + $0x3a0] ss:$8 sps:$4 sm:$0xff]   ;;  %v8088_v61 = vld [vmem:[#allocation23 + $0x3b4] ss:$8 sps:$4 sm:$0xff]  }
0x1854   :  { %5376 = vmatpush1.bf16.msra.mxu1 %v8008_v50  ;;  %v8091_v50 = vld [vmem:[#allocation23 + $0x3c4] ss:$8 sps:$4 sm:$0xff]  }
0x1855   :  { %5377 = vmatprep.subr.bf16.mxu1 %v8013_v23  ;;  %v8089_v23 = vld [vmem:[#allocation23 + $0x3c0] ss:$8 sps:$4 sm:$0xff]  }
0x1858   :  { %5378 = vmatpush1.bf16.msra.mxu1 %v8011_v24  ;;  %v8094_v24 = vld [vmem:[#allocation23 + $0x3d4] ss:$8 sps:$4 sm:$0xff]  }
0x1859   :  { %5379 = vmatprep.subr.bf16.mxu1 %v8016_v33  ;;  %v8092_v33 = vld [vmem:[#allocation23 + $0x3d0] ss:$8 sps:$4 sm:$0xff]  }
0x185c   :  { %5380 = vmatpush1.bf16.msra.mxu1 %v8014_v62  ;;  %v8097_v62 = vld [vmem:[#allocation23 + $0x3e4] ss:$8 sps:$4 sm:$0xff]  }
0x185d   :  { %5381 = vmatprep.subr.bf16.mxu1 %v8019_v1  ;;  %v8095_v1 = vld [vmem:[#allocation23 + $0x3e0] ss:$8 sps:$4 sm:$0xff]  }
0x1860   :  { %5382 = vmatpush1.bf16.msra.mxu1 %v8017_v7  ;;  %v8100_v7 = vld [vmem:[#allocation23 + $0x3f4] ss:$8 sps:$4 sm:$0xff]  }
0x1861   :  { %5383 = vmatprep.subr.bf16.mxu1 %v8022_v19  ;;  %v8098_v19 = vld [vmem:[#allocation23 + $0x3f0] ss:$8 sps:$4 sm:$0xff]  }
0x1864   :  { %5384 = vmatpush1.bf16.msra.mxu1 %v8020_v10  ;;  %v4635_v10 = vld [vmem:[#allocation25] sm:$0x3] }
0x1865   :  { %5385 = vmatprep.subr.bf16.mxu1 %v8025_v3  ;;  %v4640_v3 = vrot.slane %v4635_v10, %v9277_v30 }
0x1868   :  { %5386 = vmatpush1.bf16.msra.mxu1 %v8023_v35  ;;  %v4644_v35 = vrot.slane %v4635_v10, %v9282_v5  ;;  %v8143_v10 = vld [vmem:[#allocation29 + $0x1c0] ss:$16 sps:$4 sm:$0xff]  }
0x1869   :  { %5387 = vmatprep.subr.bf16.mxu1 %v8028_v42 }
0x186c   :  { %5388 = vmatpush1.bf16.msra.mxu1 %v8026_v13 }
0x186d   :  { %5389 = vmatprep.subr.bf16.mxu1 %v8031_v34 }
0x1870   :  { %5390 = vmatpush1.bf16.msra.mxu1 %v8029_v15 }
0x1871   :  { %5391 = vmatprep.subr.bf16.mxu1 %v8034_v16 }
0x1874   :  { %5392 = vmatpush1.bf16.msra.mxu1 %v8032_v56 }
0x1875   :  { %5393 = vmatprep.subr.bf16.mxu1 %v8037_v18 }
0x1878   :  { %5394 = vmatpush1.bf16.msra.mxu1 %v8035_v14 }
0x1879   :  { %5395 = vmatprep.subr.bf16.mxu1 %v8040_v20 }
0x187c   :  { %5396 = vmatpush1.bf16.msra.mxu1 %v8038_v59 }
0x187d   :  { %5397 = vmatprep.subr.bf16.mxu1 %v8043_v21 }
0x1880   :  { %5398 = vmatpush1.bf16.msra.mxu1 %v8041_v63  ;;  %v8101_v63 = vld [vmem:[#allocation29] ss:$16 sps:$4 sm:$0xff]  }
0x1881   :  { %5399 = vmatprep.subr.bf16.mxu1 %v8046_v51  ;;  %v8103_v51 = vld [vmem:[#allocation29 + $0x4] ss:$16 sps:$4 sm:$0xff]  }
0x1882   :  { %5939 = vmatprep.subr.bf16.mxu0 %v8103_v51 }
0x1883   :  { %5940 = vmatpush1.bf16.msra.mxu0 %v8101_v63 }
0x1884   :  { %5400 = vmatpush1.bf16.msra.mxu1 %v8044_v26  ;;  %v8106_v26 = vld [vmem:[#allocation29 + $0x24] ss:$16 sps:$4 sm:$0xff]  }
0x1885   :  { %5401 = vmatprep.subr.bf16.mxu1 %v8049_v46  ;;  %v8104_v46 = vld [vmem:[#allocation29 + $0x20] ss:$16 sps:$4 sm:$0xff]   ;;  %5941 = vmatprep.subr.bf16.mxu0 %v8106_v26 }
0x1887   :  { %5942 = vmatpush1.bf16.msra.mxu0 %v8104_v46 }
0x1888   :  { %5402 = vmatpush1.bf16.msra.mxu1 %v8047_v54  ;;  %v8107_v54 = vld [vmem:[#allocation29 + $0x40] ss:$16 sps:$4 sm:$0xff]  }
0x1889   :  { %5403 = vmatprep.subr.bf16.mxu1 %v8052_v43  ;;  %v8113_v43 = vld [vmem:[#allocation29 + $0x80] ss:$16 sps:$4 sm:$0xff]  }
0x188c   :  { %5404 = vmatpush1.bf16.msra.mxu1 %v8050_v25  ;;  %v8118_v25 = vld [vmem:[#allocation29 + $0xa4] ss:$16 sps:$4 sm:$0xff]  }
0x188d   :  { %5416 = vmatprep.subr.bf16.mxu1 %v8055_v31  ;;  %v8116_v31 = vld [vmem:[#allocation29 + $0xa0] ss:$16 sps:$4 sm:$0xff]  }
0x188f   :  { %5406 = vmatmul.mubr.bf16.vlgmr.msra.gmra.mrb[104].mxu1 %v4503_v55  ;;  %v8077_v55 = vld [vmem:[#allocation23 + $0x380] ss:$8 sps:$4 sm:$0xff]  }
0x1890   :  { %5417 = vmatpush1.bf16.msra.mxu1 %v8053_v22  ;;  %5448 = vmatprep.mubr.bf16.mxu1 %v4506_v48  ;;  %v8086_v48 = vld [vmem:[#allocation23 + $0x3b0] ss:$8 sps:$4 sm:$0xff]  }
0x1891   :  { %5418 = vmatprep.subr.bf16.mxu1 %v8058_v41  ;;  %v8121_v22 = vld [vmem:[#allocation29 + $0xc4] ss:$16 sps:$4 sm:$0xff]   ;;  %v8119_v41 = vld [vmem:[#allocation29 + $0xc0] ss:$16 sps:$4 sm:$0xff]  }
0x1894   :  { %5419 = vmatpush1.bf16.msra.mxu1 %v8056_v53  ;;  %v8124_v53 = vld [vmem:[#allocation29 + $0xe4] ss:$16 sps:$4 sm:$0xff]  }
0x1895   :  { %5420 = vmatprep.subr.bf16.mxu1 %v8061_v57  ;;  %v8122_v57 = vld [vmem:[#allocation29 + $0xe0] ss:$16 sps:$4 sm:$0xff]  }
0x1898   :  { %5421 = vmatpush1.bf16.msra.mxu1 %v8059_v58  ;;  %v8127_v58 = vld [vmem:[#allocation29 + $0x104] ss:$16 sps:$4 sm:$0xff]  }
0x1899   :  { %5422 = vmatprep.subr.bf16.mxu1 %v8064_v2  ;;  %v8125_v2 = vld [vmem:[#allocation29 + $0x100] ss:$16 sps:$4 sm:$0xff]  }
0x189c   :  { %5423 = vmatpush1.bf16.msra.mxu1 %v8062_v9  ;;  %v8130_v9 = vld [vmem:[#allocation29 + $0x124] ss:$16 sps:$4 sm:$0xff]  }
0x189d   :  { %5424 = vmatprep.subr.bf16.mxu1 %v8067_v32  ;;  %v8128_v32 = vld [vmem:[#allocation29 + $0x120] ss:$16 sps:$4 sm:$0xff]  }
0x18a0   :  { %5425 = vmatpush1.bf16.msra.mxu1 %v8065_v0 }
0x18a1   :  { %5426 = vmatprep.subr.bf16.mxu1 %v8070_v45 }
0x18a4   :  { %5427 = vmatpush1.bf16.msra.mxu1 %v8068_v49 }
0x18a5   :  { %5428 = vmatprep.subr.bf16.mxu1 %v8073_v6 }
0x18a8   :  { %5429 = vmatpush1.bf16.msra.mxu1 %v8071_v8 }
0x18a9   :  { %5430 = vmatprep.subr.bf16.mxu1 %v8076_v38 }
0x18ac   :  { %5431 = vmatpush1.bf16.msra.mxu1 %v8074_v4 }
0x18ad   :  { %5432 = vmatprep.subr.bf16.mxu1 %v8079_v44 }
0x18b0   :  { %5433 = vmatpush1.bf16.msra.mxu1 %v8077_v55 }
0x18b1   :  { %5434 = vmatprep.subr.bf16.mxu1 %v8082_v47 }
0x18b4   :  { %5435 = vmatpush1.bf16.msra.mxu1 %v8080_v36 }
0x18b5   :  { %5436 = vmatprep.subr.bf16.mxu1 %v8085_v17 }
0x18b8   :  { %5437 = vmatpush1.bf16.msra.mxu1 %v8083_v37 }
0x18b9   :  { %5438 = vmatprep.subr.bf16.mxu1 %v8088_v61 }
0x18bc   :  { %5439 = vmatpush1.bf16.msra.mxu1 %v8086_v48  ;;  %v8133_v48 = vld [vmem:[#allocation29 + $0x144] ss:$16 sps:$4 sm:$0xff]  }
0x18bd   :  { %5440 = vmatprep.subr.bf16.mxu1 %v8091_v50  ;;  %v8131_v50 = vld [vmem:[#allocation29 + $0x140] ss:$16 sps:$4 sm:$0xff]  }
0x18c0   :  { %5441 = vmatpush1.bf16.msra.mxu1 %v8089_v23  ;;  %v8136_v23 = vld [vmem:[#allocation29 + $0x164] ss:$16 sps:$4 sm:$0xff]  }
0x18c1   :  { %5442 = vmatprep.subr.bf16.mxu1 %v8094_v24  ;;  %v8134_v24 = vld [vmem:[#allocation29 + $0x160] ss:$16 sps:$4 sm:$0xff]  }
0x18c4   :  { %5443 = vmatpush1.bf16.msra.mxu1 %v8092_v33  ;;  %v8139_v33 = vld [vmem:[#allocation29 + $0x184] ss:$16 sps:$4 sm:$0xff]  }
0x18c5   :  { %5444 = vmatprep.subr.bf16.mxu1 %v8097_v62  ;;  %v8137_v62 = vld [vmem:[#allocation29 + $0x180] ss:$16 sps:$4 sm:$0xff]  }
0x18c8   :  { %5445 = vmatpush1.bf16.msra.mxu1 %v8095_v1  ;;  %v8142_v1 = vld [vmem:[#allocation29 + $0x1a4] ss:$16 sps:$4 sm:$0xff]  }
0x18c9   :  { %5446 = vmatprep.subr.bf16.mxu1 %v8100_v7  ;;  %v8140_v7 = vld [vmem:[#allocation29 + $0x1a0] ss:$16 sps:$4 sm:$0xff]  }
0x18cc   :  { %5447 = vmatpush1.bf16.msra.mxu1 %v8098_v19  ;;  %v8145_v19 = vld [vmem:[#allocation29 + $0x1c4] ss:$16 sps:$4 sm:$0xff]  }
0x18cf   :  { %5449 = vmatmul.mubr.bf16.vlgmr.msra.gmra.mrb[104].mxu1 %v4505_v52 }
0x19a2   :  { %v5450_v42 = vpop.f32.mrb[104].mxu1 }
0x19a3   :  { %v7610_v13 = vadd.f32 %v5450_v42, %v4640_v3  ;;  %v5452_v34 = vpop.f32.mrb[105].mxu1  ;;  %v8151_v42 = vld [vmem:[#allocation29 + $0xc] ss:$16 sps:$4 sm:$0xff]  }
0x19a4   :  { %v7611_v15 = vadd.f32 %v5452_v34, %v4644_v35  ;;  %v5454_v16 = vpop.f32.mrb[106].mxu1 }
0x19a5   :  { %v5459_v56 = vadd.f32 %v7610_v13, %v9796_v39  ;;  %v7612_v18 = vadd.f32 %v5454_v16, %v4640_v3  ;;  %v5456_v14 = vpop.f32.mrb[107].mxu1  ;;  %v8109_v39 = vld [vmem:[#allocation29 + $0x44] ss:$16 sps:$4 sm:$0xff]  }
0x19a6   :  { %v5460_v20 = vadd.f32 %v7611_v15, %v9792_v29  ;;  %v7613_v59 = vadd.f32 %v5456_v14, %v4644_v35  ;;  %5943 = vmatprep.subr.bf16.mxu0 %v8109_v39  ;;  %v8112_v29 = vld [vmem:[#allocation29 + $0x64] ss:$16 sps:$4 sm:$0xff]   ;;  %v8146_v35 = vld [vmem:[#allocation29 + $0x1e0] ss:$16 sps:$4 sm:$0xff]   ;;  %v5463_v14 = vld [vmem:[#allocation26] sm:$0x3] }
0x19a7   :  { %v5461_v28 = vadd.f32 %v7612_v18, %v9798_v40  ;;  %5944 = vmatpush1.bf16.msra.mxu0 %v8107_v54  ;;  %v8110_v40 = vld [vmem:[#allocation29 + $0x60] ss:$16 sps:$4 sm:$0xff]   ;;  %v8148_v3 = vld [vmem:[#allocation29 + $0x1e4] ss:$16 sps:$4 sm:$0xff]  }
0x19a8   :  { %v5462_v12 = vadd.f32 %v7613_v59, %v9794_v60  ;;  %v5465_v52 = vadd.f32 %v5460_v20, %v5459_v56  ;;  %5945 = vmatprep.subr.bf16.mxu0 %v8112_v29  ;;  %v8115_v60 = vld [vmem:[#allocation29 + $0x84] ss:$16 sps:$4 sm:$0xff]   ;;  %v5501_v59 = vrot.slane %v5463_v14, %v9277_v30 }
0x19aa   :  { %5466 = vadd.xlane.f32.xlu0 %v5465_v52  ;;  %v5468_v21 = vadd.f32 %v5462_v12, %v5461_v28 }
0x19ab   :  { %5946 = vmatpush1.bf16.msra.mxu0 %v8110_v40 }
0x19ac   :  { %5469 = vadd.xlane.f32.xlu1 %v5468_v21  ;;  %5947 = vmatprep.subr.bf16.mxu0 %v8115_v60 }
0x19af   :  { %5948 = vmatpush1.bf16.msra.mxu0 %v8113_v43 }
0x19b0   :  { %5949 = vmatprep.subr.bf16.mxu0 %v8118_v25 }
0x19b3   :  { %5950 = vmatpush1.bf16.msra.mxu0 %v8116_v31 }
0x19b4   :  { %5951 = vmatprep.subr.bf16.mxu0 %v8121_v22 }
0x19b7   :  { %5952 = vmatpush1.bf16.msra.mxu0 %v8119_v41 }
0x19b8   :  { %5953 = vmatprep.subr.bf16.mxu0 %v8124_v53  ;;  %v8149_v53 = vld [vmem:[#allocation29 + $0x8] ss:$16 sps:$4 sm:$0xff]  }
0x19bb   :  { %5954 = vmatpush1.bf16.msra.mxu0 %v8122_v57 }
0x19bc   :  { %5955 = vmatprep.subr.bf16.mxu0 %v8127_v58  ;;  %v8154_v58 = vld [vmem:[#allocation29 + $0x2c] ss:$16 sps:$4 sm:$0xff]  }
0x19bf   :  { %5956 = vmatpush1.bf16.msra.mxu0 %v8125_v2  ;;  %v8152_v2 = vld [vmem:[#allocation29 + $0x28] ss:$16 sps:$4 sm:$0xff]  }
0x19c0   :  { %5957 = vmatprep.subr.bf16.mxu0 %v8130_v9  ;;  %v8157_v9 = vld [vmem:[#allocation29 + $0x4c] ss:$16 sps:$4 sm:$0xff]  }
0x19c3   :  { %5958 = vmatpush1.bf16.msra.mxu0 %v8128_v32  ;;  %v8155_v32 = vld [vmem:[#allocation29 + $0x48] ss:$16 sps:$4 sm:$0xff]  }
0x19c4   :  { %5959 = vmatprep.subr.bf16.mxu0 %v8133_v48  ;;  %v8181_v48 = vld [vmem:[#allocation29 + $0x14c] ss:$16 sps:$4 sm:$0xff]  }
0x19c7   :  { %5960 = vmatpush1.bf16.msra.mxu0 %v8131_v50  ;;  %v8179_v50 = vld [vmem:[#allocation29 + $0x148] ss:$16 sps:$4 sm:$0xff]  }
0x19c8   :  { %5961 = vmatprep.subr.bf16.mxu0 %v8136_v23  ;;  %v8184_v23 = vld [vmem:[#allocation29 + $0x16c] ss:$16 sps:$4 sm:$0xff]  }
0x19cb   :  { %5962 = vmatpush1.bf16.msra.mxu0 %v8134_v24  ;;  %v8182_v24 = vld [vmem:[#allocation29 + $0x168] ss:$16 sps:$4 sm:$0xff]  }
0x19cc   :  { %5963 = vmatprep.subr.bf16.mxu0 %v8139_v33  ;;  %v8187_v33 = vld [vmem:[#allocation29 + $0x18c] ss:$16 sps:$4 sm:$0xff]  }
0x19cf   :  { %5964 = vmatpush1.bf16.msra.mxu0 %v8137_v62  ;;  %v8185_v62 = vld [vmem:[#allocation29 + $0x188] ss:$16 sps:$4 sm:$0xff]  }
0x19d0   :  { %5965 = vmatprep.subr.bf16.mxu0 %v8142_v1  ;;  %v8190_v1 = vld [vmem:[#allocation29 + $0x1ac] ss:$16 sps:$4 sm:$0xff]  }
0x19d3   :  { %5966 = vmatpush1.bf16.msra.mxu0 %v8140_v7  ;;  %v8188_v7 = vld [vmem:[#allocation29 + $0x1a8] ss:$16 sps:$4 sm:$0xff]  }
0x19d4   :  { %5967 = vmatprep.subr.bf16.mxu0 %v8145_v19  ;;  %v8193_v19 = vld [vmem:[#allocation29 + $0x1cc] ss:$16 sps:$4 sm:$0xff]  }
0x19d7   :  { %5968 = vmatpush1.bf16.msra.mxu0 %v8143_v10  ;;  %v8191_v10 = vld [vmem:[#allocation29 + $0x1c8] ss:$16 sps:$4 sm:$0xff]  }
0x19d8   :  { %5969 = vmatprep.subr.bf16.mxu0 %v8148_v3  ;;  %v8196_v3 = vld [vmem:[#allocation29 + $0x1ec] ss:$16 sps:$4 sm:$0xff]  }
0x19db   :  { %5970 = vmatpush1.bf16.msra.mxu0 %v8146_v35  ;;  %v8194_v35 = vld [vmem:[#allocation29 + $0x1e8] ss:$16 sps:$4 sm:$0xff]  }
0x19dc   :  { %5982 = vmatprep.subr.bf16.mxu0 %v8151_v42  ;;  %v8197_v42 = vld [vmem:[%s10118_s13 + $0x40] sm:$0xff]  }
0x1a37   :  { %v5467_v0 = vpop.xlane.xlu0 %5466 }
0x1a38   :  { %v5471_v45 = vmul.f32 0.00390625, %v5467_v0  ;;  %v8160_v0 = vld [vmem:[#allocation29 + $0x6c] ss:$16 sps:$4 sm:$0xff]  }
0x1a39   :  { %v5470_v49 = vpop.xlane.xlu1 %5469 }
0x1a3a   :  { %v5473_v6 = vsub.f32 %v5459_v56, %v5471_v45  ;;  %v5474_v8 = vsub.f32 %v5460_v20, %v5471_v45  ;;  %v5472_v38 = vmul.f32 0.00390625, %v5470_v49  ;;  %v5464_v20 = vld [vmem:[#allocation28] sm:$0x3]  ;;  %v8158_v45 = vld [vmem:[#allocation29 + $0x68] ss:$16 sps:$4 sm:$0xff]  }
0x1a3b   :  { %v5516_v63 = vrot.slane %v5464_v20, %v9277_v30  ;;  %v5520_v51 = vrot.slane %v5464_v20, %v9282_v5  ;;  %v8163_v49 = vld [vmem:[#allocation29 + $0x8c] ss:$16 sps:$4 sm:$0xff]  }
0x1a3c   :  { %v5475_v4 = vsub.f32 %v5461_v28, %v5472_v38  ;;  %v5476_v44 = vsub.f32 %v5462_v12, %v5472_v38  ;;  %v5477_v55 = vmul.f32 %v5473_v6, %v5473_v6  ;;  %v5478_v47 = vmul.f32 %v5474_v8, %v5474_v8  ;;  %v8164_v38 = vld [vmem:[#allocation29 + $0xa8] ss:$16 sps:$4 sm:$0xff]  }
0x1a3d   :  { %v5505_v28 = vrot.slane %v5463_v14, %v9282_v5  ;;  %v8204_v14 = vld [vmem:[%s10118_s13 + $0x18] sm:$0xff]   ;;  %v8205_v20 = vld [vmem:[%s10118_s13 + $0x60] sm:$0xff]  }
0x1a3e   :  { %v5481_v36 = vadd.f32 %v5478_v47, %v5477_v55  ;;  %v5479_v17 = vmul.f32 %v5475_v4, %v5475_v4  ;;  %v5480_v37 = vmul.f32 %v5476_v44, %v5476_v44  ;;  %v8172_v55 = vld [vmem:[#allocation29 + $0xec] ss:$16 sps:$4 sm:$0xff]   ;;  %v8170_v47 = vld [vmem:[#allocation29 + $0xe8] ss:$16 sps:$4 sm:$0xff]  }
0x1a40   :  { %5482 = vadd.xlane.f32.xlu0 %v5481_v36  ;;  %v5484_v61 = vadd.f32 %v5480_v37, %v5479_v17  ;;  %v8175_v36 = vld [vmem:[#allocation29 + $0x10c] ss:$16 sps:$4 sm:$0xff]   ;;  %v8173_v17 = vld [vmem:[#allocation29 + $0x108] ss:$16 sps:$4 sm:$0xff]  }
0x1a41   :  { %v8178_v37 = vld [vmem:[#allocation29 + $0x12c] ss:$16 sps:$4 sm:$0xff]  }
0x1a42   :  { %5485 = vadd.xlane.f32.xlu1 %v5484_v61  ;;  %v8176_v61 = vld [vmem:[#allocation29 + $0x128] ss:$16 sps:$4 sm:$0xff]  }
0x1acd   :  { %v5483_v13 = vpop.xlane.xlu0 %5482 }
0x1ace   :  { %v5487_v34 = vmul.f32 0.00390625, %v5483_v13  ;;  %v8198_v13 = vld [vmem:[%s10118_s13] sm:$0xff]  }
0x1acf   :  { %v5486_v15 = vpop.xlane.xlu1 %5485 }
0x1ad0   :  { %v5489_v16 = vadd.f32 1e-05, %v5487_v34  ;;  %v5488_v56 = vmul.f32 0.00390625, %v5486_v15  ;;  %v8199_v34 = vld [vmem:[%s10118_s13 + $0x48] sm:$0xff]  }
0x1ad1   :  { %v8200_v15 = vld [vmem:[%s10118_s13 + $0x8] sm:$0xff]  }
0x1ad2   :  { %8345 = vrsqrt.f32 %v5489_v16  ;;  %v5490_v18 = vadd.f32 1e-05, %v5488_v56  ;;  %v8201_v16 = vld [vmem:[%s10118_s13 + $0x50] sm:$0xff]  }
0x1ad3   :  { %v8202_v56 = vld [vmem:[%s10118_s13 + $0x10] sm:$0xff]  }
0x1ad4   :  { %8347 = vrsqrt.f32 %v5490_v18  ;;  %v8203_v18 = vld [vmem:[%s10118_s13 + $0x58] sm:$0xff]  }
0x1adc   :  { %v8346_v12 = vpop.eup %8345 }
0x1add   :  { %v5493_v52 = vmul.f32 %v8346_v12, %v5473_v6  ;;  %v5494_v21 = vmul.f32 %v8346_v12, %v5474_v8  ;;  %v8161_v6 = vld [vmem:[#allocation29 + $0x88] ss:$16 sps:$4 sm:$0xff]   ;;  %v8166_v8 = vld [vmem:[#allocation29 + $0xac] ss:$16 sps:$4 sm:$0xff]  }
0x1ade   :  { %v8348_v26 = vpop.eup %8347  ;;  %v8208_v12 = vld [vmem:[%s10118_s13 + $0x28] sm:$0xff]  }
0x1adf   :  { %v5495_v46 = vmul.f32 %v8348_v26, %v5475_v4  ;;  %v5496_v39 = vmul.f32 %v8348_v26, %v5476_v44  ;;  %v5509_v54 = vmul.f32 %v5505_v28, %v5494_v21  ;;  %v5508_v29 = vmul.f32 %v5501_v59, %v5493_v52  ;;  %v8169_v4 = vld [vmem:[#allocation29 + $0xcc] ss:$16 sps:$4 sm:$0xff]   ;;  %v8167_v44 = vld [vmem:[#allocation29 + $0xc8] ss:$16 sps:$4 sm:$0xff]  }
0x1ae0   :  { %v8209_v52 = vld [vmem:[%s10118_s13 + $0x70] sm:$0xff]   ;;  %v8213_v26 = vld [vmem:[%s10118_s13 + $0xc0] sm:$0xff]  }
0x1ae1   :  { %v5511_v40 = vmul.f32 %v5505_v28, %v5496_v39  ;;  %v5524_v60 = vadd.f32 %v5520_v51, %v5509_v54  ;;  %v5510_v43 = vmul.f32 %v5501_v59, %v5495_v46  ;;  %v5523_v25 = vadd.f32 %v5516_v63, %v5508_v29  ;;  %v8206_v59 = vld [vmem:[%s10118_s13 + $0x20] sm:$0xff]   ;;  %v8207_v28 = vld [vmem:[%s10118_s13 + $0x68] sm:$0xff]   ;;  %v8210_v21 = vld [vmem:[%s10118_s13 + $0x30] sm:$0xff]  }
0x1ae2   :  { %v10011_v46 = vld [vmem:[#allocation31] sm:$0xf] }
0x1ae3   :  { %v5526_v31 = vadd.f32 %v5520_v51, %v5511_v40  ;;  %5528 = vst [vmem:[#allocation35 + $0x8] sm:$0xff] %v5524_v60  ;;  %v5525_v22 = vadd.f32 %v5516_v63, %v5510_v43  ;;  %5527 = vst [vmem:[#allocation35] sm:$0xff] %v5523_v25  ;;  %v8211_v63 = vld [vmem:[%s10118_s13 + $0x78] sm:$0xff]   ;;  %v5602_v39 = vrot.slane %v10011_v46, %v9277_v30 }
0x1ae4   :  { %v8212_v51 = vld [vmem:[%s10118_s13 + $0x38] sm:$0xff]   ;;  %v5606_v54 = vrot.slane %v10011_v46, %v9282_v5 }
0x1ae5   :  { %5530 = vst [vmem:[#allocation35 + $0x18] sm:$0xff] %v5526_v31  ;;  %v9986_v41 = vpack.c.bf16 %v5526_v31, %v5524_v60  ;;  %v9988_v57 = vpack.c.bf16 %v5525_v22, %v5523_v25  ;;  %5529 = vst [vmem:[#allocation35 + $0x10] sm:$0xff] %v5525_v22 }
0x1ae7   :  { %5971 = vmatprep.mubr.bf16.mxu0 %v9986_v41 }
0x1ae8   :  { %5972 = vmatmul.mubr.bf16.vlgmr.msra.gmra.mrb[64].mxu0 %v9988_v57 }
0x1ae9   :  { %5983 = vmatpush1.bf16.msra.mxu0 %v8149_v53  ;;  %6014 = vmatprep.mubr.bf16.mxu0 %v9986_v41 }
0x1aea   :  { %5984 = vmatprep.subr.bf16.mxu0 %v8154_v58 }
0x1aed   :  { %5985 = vmatpush1.bf16.msra.mxu0 %v8152_v2 }
0x1aee   :  { %5986 = vmatprep.subr.bf16.mxu0 %v8157_v9 }
0x1af1   :  { %5987 = vmatpush1.bf16.msra.mxu0 %v8155_v32 }
0x1af2   :  { %5988 = vmatprep.subr.bf16.mxu0 %v8160_v0 }
0x1af5   :  { %5989 = vmatpush1.bf16.msra.mxu0 %v8158_v45 }
0x1af6   :  { %5990 = vmatprep.subr.bf16.mxu0 %v8163_v49 }
0x1af9   :  { %5991 = vmatpush1.bf16.msra.mxu0 %v8161_v6 }
0x1afa   :  { %5992 = vmatprep.subr.bf16.mxu0 %v8166_v8 }
0x1afd   :  { %5993 = vmatpush1.bf16.msra.mxu0 %v8164_v38 }
0x1afe   :  { %5994 = vmatprep.subr.bf16.mxu0 %v8169_v4 }
0x1b01   :  { %5995 = vmatpush1.bf16.msra.mxu0 %v8167_v44 }
0x1b02   :  { %5996 = vmatprep.subr.bf16.mxu0 %v8172_v55 }
0x1b05   :  { %5997 = vmatpush1.bf16.msra.mxu0 %v8170_v47 }
0x1b06   :  { %5998 = vmatprep.subr.bf16.mxu0 %v8175_v36 }
0x1b09   :  { %5999 = vmatpush1.bf16.msra.mxu0 %v8173_v17 }
0x1b0a   :  { %6000 = vmatprep.subr.bf16.mxu0 %v8178_v37 }
0x1b0d   :  { %6001 = vmatpush1.bf16.msra.mxu0 %v8176_v61 }
0x1b0e   :  { %6002 = vmatprep.subr.bf16.mxu0 %v8181_v48 }
0x1b11   :  { %6003 = vmatpush1.bf16.msra.mxu0 %v8179_v50 }
0x1b12   :  { %6004 = vmatprep.subr.bf16.mxu0 %v8184_v23  ;;  %v8214_v23 = vld [vmem:[%s10118_s13 + $0x80] sm:$0xff]  }
0x1b15   :  { %6005 = vmatpush1.bf16.msra.mxu0 %v8182_v24  ;;  %v8215_v24 = vld [vmem:[%s10118_s13 + $0xc8] sm:$0xff]  }
0x1b16   :  { %6006 = vmatprep.subr.bf16.mxu0 %v8187_v33  ;;  %v8216_v33 = vld [vmem:[%s10118_s13 + $0x88] sm:$0xff]  }
0x1b19   :  { %6007 = vmatpush1.bf16.msra.mxu0 %v8185_v62  ;;  %v8217_v62 = vld [vmem:[%s10118_s13 + $0xd0] sm:$0xff]  }
0x1b1a   :  { %6008 = vmatprep.subr.bf16.mxu0 %v8190_v1  ;;  %v8218_v1 = vld [vmem:[%s10118_s13 + $0x90] sm:$0xff]  }
0x1b1d   :  { %6009 = vmatpush1.bf16.msra.mxu0 %v8188_v7  ;;  %v8219_v7 = vld [vmem:[%s10118_s13 + $0xd8] sm:$0xff]  }
0x1b1e   :  { %6010 = vmatprep.subr.bf16.mxu0 %v8193_v19  ;;  %v8220_v19 = vld [vmem:[%s10118_s13 + $0x98] sm:$0xff]  }
0x1b21   :  { %6011 = vmatpush1.bf16.msra.mxu0 %v8191_v10  ;;  %v8221_v10 = vld [vmem:[%s10118_s13 + $0xe0] sm:$0xff]  }
0x1b22   :  { %6012 = vmatprep.subr.bf16.mxu0 %v8196_v3  ;;  %v8222_v3 = vld [vmem:[%s10118_s13 + $0xa0] sm:$0xff]  }
0x1b25   :  { %6013 = vmatpush1.bf16.msra.mxu0 %v8194_v35  ;;  %v8223_v35 = vld [vmem:[%s10118_s13 + $0xe8] sm:$0xff]  }
0x1b26   :  { %7352 = vmatprep.subr.bf16.mxu0 %v8197_v42  ;;  %v8224_v42 = vld [vmem:[%s10118_s13 + $0xa8] sm:$0xff]  }
0x1b28   :  { %6015 = vmatmul.mubr.bf16.vlgmr.msra.gmra.mrb[68].mxu0 %v9988_v57 }
0x1b29   :  { %7353 = vmatpush3.bf16.msra.mxu0 %v8198_v13  ;;  %v8225_v13 = vld [vmem:[%s10118_s13 + $0xf0] sm:$0xff]  }
0x1b2a   :  { %7354 = vmatprep.subr.bf16.mxu0 %v8199_v34  ;;  %v8226_v34 = vld [vmem:[%s10118_s13 + $0xb0] sm:$0xff]  }
0x1b2d   :  { %7355 = vmatpush3.bf16.msra.mxu0 %v8200_v15  ;;  %v8227_v15 = vld [vmem:[%s10118_s13 + $0xf8] sm:$0xff]  }
0x1b2e   :  { %7356 = vmatprep.subr.bf16.mxu0 %v8201_v16  ;;  %v8228_v16 = vld [vmem:[%s10118_s13 + $0xb8] sm:$0xff]  }
0x1b31   :  { %7357 = vmatpush3.bf16.msra.mxu0 %v8202_v56  ;;  %v8229_v56 = vld [vmem:[%s10119_s12 + $0x40] sm:$0xff]  }
0x1b32   :  { %7358 = vmatprep.subr.bf16.mxu0 %v8203_v18  ;;  %v5610_v18 = vrot.slane %v10011_v46, %v9381_v27 }
0x1b35   :  { %7359 = vmatpush3.bf16.msra.mxu0 %v8204_v14  ;;  %v5614_v14 = vrot.slane %v10011_v46, %v9384_v11 }
0x1b36   :  { %7360 = vmatprep.subr.bf16.mxu0 %v8205_v20 }
0x1b39   :  { %7361 = vmatpush3.bf16.msra.mxu0 %v8206_v59 }
0x1b3a   :  { %7362 = vmatprep.subr.bf16.mxu0 %v8207_v28 }
0x1b3d   :  { %7363 = vmatpush3.bf16.msra.mxu0 %v8208_v12 }
0x1b3e   :  { %7364 = vmatprep.subr.bf16.mxu0 %v8209_v52 }
0x1b41   :  { %7365 = vmatpush3.bf16.msra.mxu0 %v8210_v21 }
0x1b42   :  { %7366 = vmatprep.subr.bf16.mxu0 %v8211_v63 }
0x1b45   :  { %7367 = vmatpush3.bf16.msra.mxu0 %v8212_v51 }
0x1b46   :  { %7374 = vmatprep.subr.bf16.mxu0 %v8213_v26 }
0x1bbb   :  { %v5973_v29 = vpop.f32.mrb[64].mxu0 }
0x1bbc   :  { %v5974_v40 = vadd.f32 %v5973_v29, %v5602_v39  ;;  %v5975_v60 = vpop.f32.mrb[65].mxu0 }
0x1bbd   :  { %v5976_v43 = vadd.f32 %v5975_v60, %v5606_v54  ;;  %v5977_v25 = vpop.f32.mrb[66].mxu0 }
0x1bbe   :  { %v6033_v31 = vmin.f32 %v5974_v40, 0.0  ;;  %v5978_v22 = vadd.f32 %v5977_v25, %v5602_v39  ;;  %v5979_v53 = vpop.f32.mrb[67].mxu0  ;;  %vm6025_vm14 = vcmp.gt.f32.partialorder %v5974_v40, 0.0 }
0x1bbf   :  { %v6034_v58 = vmin.f32 %v5976_v43, 0.0  ;;  %v5980_v2 = vadd.f32 %v5979_v53, %v5606_v54  ;;  %vm6026_vm0 = vcmp.gt.f32.partialorder %v5976_v43, 0.0 }
0x1bc0   :  { %v6041_v9 = vmul.f32 1.442695, %v6033_v31  ;;  %v6037_v32 = vmin.f32 %v5978_v22, 0.0  ;;  %vm6029_vm15 = vcmp.gt.f32.partialorder %v5978_v22, 0.0 }
0x1bc1   :  { %v6043_v0 = vmul.f32 1.442695, %v6034_v58  ;;  %v6038_v45 = vmin.f32 %v5980_v2, 0.0  ;;  %vm6030_vm1 = vcmp.gt.f32.partialorder %v5980_v2, 0.0 }
0x1bc2   :  { %8349 = vpow2.f32 %v6041_v9  ;;  %v6049_v49 = vmul.f32 1.442695, %v6037_v32 }
0x1bc3   :  { %8351 = vpow2.f32 %v6043_v0  ;;  %v6051_v30 = vmul.f32 1.442695, %v6038_v45 }
0x1bc4   :  { %8353 = vpow2.f32 %v6049_v49 }
0x1bc5   :  { %8355 = vpow2.f32 %v6051_v30 }
0x1bcc   :  { %v8350_v5 = vpop.eup %8349 }
0x1bcd   :  { %v8352_v6 = vpop.eup %8351  ;;  %v7220_v8 = vadd.f32 -1.0, %v8350_v5  ;;  %v8230_v5 = vld [vmem:[%s10119_s12] sm:$0xff]  }
0x1bce   :  { %v8354_v38 = vpop.eup %8353  ;;  %v7221_v4 = vadd.f32 -1.0, %v8352_v6  ;;  %v8231_v6 = vld [vmem:[%s10119_s12 + $0x48] sm:$0xff]  }
0x1bcf   :  { %v8356_v44 = vpop.eup %8355  ;;  %v7224_v55 = vadd.f32 -1.0, %v8354_v38  ;;  %v6065_v36 = vsel %vm6025_vm14, %v5974_v40, %v7220_v8  ;;  %v8232_v8 = vld [vmem:[%s10119_s12 + $0x8] sm:$0xff]   ;;  %v8233_v38 = vld [vmem:[%s10119_s12 + $0x50] sm:$0xff]  }
0x1bd0   :  { %v7225_v47 = vadd.f32 -1.0, %v8356_v44  ;;  %v6066_v61 = vsel %vm6026_vm0, %v5976_v43, %v7221_v4  ;;  %v8234_v4 = vld [vmem:[%s10119_s12 + $0x10] sm:$0xff]   ;;  %v8235_v44 = vld [vmem:[%s10119_s12 + $0x58] sm:$0xff]  }
0x1bd1   :  { %v6069_v17 = vsel %vm6029_vm15, %v5978_v22, %v7224_v55  ;;  %v8236_v55 = vld [vmem:[%s10119_s12 + $0x18] sm:$0xff]  }
0x1bd2   :  { %v6073_v37 = vpack.c.bf16 %v6069_v17, %v6065_v36  ;;  %v6070_v48 = vsel %vm6030_vm1, %v5980_v2, %v7225_v47  ;;  %v8237_v47 = vld [vmem:[%s10119_s12 + $0x60] sm:$0xff]   ;;  %v8240_v17 = vld [vmem:[%s10119_s12 + $0x28] sm:$0xff]  }
0x1bd3   :  { %v6074_v50 = vpack.c.bf16 %v6070_v48, %v6066_v61  ;;  %v8238_v36 = vld [vmem:[%s10119_s12 + $0x20] sm:$0xff]   ;;  %v8242_v61 = vld [vmem:[%s10119_s12 + $0x30] sm:$0xff]   ;;  %v8243_v48 = vld [vmem:[%s10119_s12 + $0x78] sm:$0xff]  }
0x1bd5   :  { %6372 = vmatprep.mubr.bf16.mxu0 %v6074_v50  ;;  %v8244_v50 = vld [vmem:[%s10119_s12 + $0x38] sm:$0xff]  }
0x1bd6   :  { %6373 = vmatmul.mubr.bf16.vlgmr.msra.gmra.mrb[72].mxu0 %v6073_v37  ;;  %v8241_v37 = vld [vmem:[%s10119_s12 + $0x70] sm:$0xff]  }
0x1bd7   :  { %7375 = vmatpush3.bf16.msra.mxu0 %v8214_v23 }
0x1bd8   :  { %7376 = vmatprep.subr.bf16.mxu0 %v8215_v24 }
0x1bdb   :  { %7377 = vmatpush3.bf16.msra.mxu0 %v8216_v33 }
0x1bdc   :  { %7378 = vmatprep.subr.bf16.mxu0 %v8217_v62 }
0x1bdf   :  { %7379 = vmatpush3.bf16.msra.mxu0 %v8218_v1 }
0x1be0   :  { %7380 = vmatprep.subr.bf16.mxu0 %v8219_v7 }
0x1be3   :  { %7381 = vmatpush3.bf16.msra.mxu0 %v8220_v19  ;;  %v7228_v19 = vld [vmem:[#allocation32] ss:$0 sm:$0xff] }
0x1be4   :  { %7382 = vmatprep.subr.bf16.mxu0 %v8221_v10 }
0x1be7   :  { %7383 = vmatpush3.bf16.msra.mxu0 %v8222_v3 }
0x1be8   :  { %7384 = vmatprep.subr.bf16.mxu0 %v8223_v35 }
0x1beb   :  { %7385 = vmatpush3.bf16.msra.mxu0 %v8224_v42 }
0x1bec   :  { %7386 = vmatprep.subr.bf16.mxu0 %v8225_v13 }
0x1bef   :  { %7387 = vmatpush3.bf16.msra.mxu0 %v8226_v34 }
0x1bf0   :  { %7388 = vmatprep.subr.bf16.mxu0 %v8227_v15 }
0x1bf3   :  { %7389 = vmatpush3.bf16.msra.mxu0 %v8228_v16 }
0x1bf4   :  { %7396 = vmatprep.subr.bf16.mxu0 %v8229_v56 }
0x1bfb   :  { %v6016_v20 = vpop.f32.mrb[68].mxu0 }
0x1bfc   :  { %v6017_v59 = vadd.f32 %v6016_v20, %v5610_v18  ;;  %v6018_v28 = vpop.f32.mrb[69].mxu0  ;;  %v7263_v20 = vld [vmem:[#allocation34] ss:$0 sm:$0xff] }
0x1bfd   :  { %v6019_v12 = vadd.f32 %v6018_v28, %v5614_v14  ;;  %v6020_v52 = vpop.f32.mrb[70].mxu0 }
0x1bfe   :  { %v6035_v21 = vmin.f32 %v6017_v59, 0.0  ;;  %v6021_v63 = vadd.f32 %v6020_v52, %v5610_v18  ;;  %v6022_v51 = vpop.f32.mrb[71].mxu0  ;;  %vm6027_vm2 = vcmp.gt.f32.partialorder %v6017_v59, 0.0 }
0x1bff   :  { %v6036_v26 = vmin.f32 %v6019_v12, 0.0  ;;  %v6023_v39 = vadd.f32 %v6022_v51, %v5614_v14  ;;  %vm6028_vm5 = vcmp.gt.f32.partialorder %v6019_v12, 0.0 }
0x1c00   :  { %v6045_v54 = vmul.f32 1.442695, %v6035_v21  ;;  %v6039_v29 = vmin.f32 %v6021_v63, 0.0  ;;  %vm6031_vm3 = vcmp.gt.f32.partialorder %v6021_v63, 0.0 }
0x1c01   :  { %v6047_v40 = vmul.f32 1.442695, %v6036_v26  ;;  %v6040_v60 = vmin.f32 %v6023_v39, 0.0  ;;  %vm6032_vm6 = vcmp.gt.f32.partialorder %v6023_v39, 0.0 }
0x1c02   :  { %8357 = vpow2.f32 %v6045_v54  ;;  %v6053_v43 = vmul.f32 1.442695, %v6039_v29 }
0x1c03   :  { %8359 = vpow2.f32 %v6047_v40  ;;  %v6055_v27 = vmul.f32 1.442695, %v6040_v60  ;;  %v7282_v60 = vld [vmem:[%s9054_s8] ss:$0 sm:$0xff] }
0x1c04   :  { %8361 = vpow2.f32 %v6053_v43 }
0x1c05   :  { %8363 = vpow2.f32 %v6055_v27 }
0x1c0c   :  { %v8358_v11 = vpop.eup %8357 }
0x1c0d   :  { %v8360_v46 = vpop.eup %8359  ;;  %v7222_v25 = vadd.f32 -1.0, %v8358_v11 }
0x1c0e   :  { %v8362_v31 = vpop.eup %8361  ;;  %v7223_v22 = vadd.f32 -1.0, %v8360_v46 }
0x1c0f   :  { %v8364_v53 = vpop.eup %8363  ;;  %v7226_v58 = vadd.f32 -1.0, %v8362_v31  ;;  %v6067_v9 = vsel %vm6027_vm2, %v6017_v59, %v7222_v25 }
0x1c10   :  { %v7227_v2 = vadd.f32 -1.0, %v8364_v53  ;;  %v6068_v45 = vsel %vm6028_vm5, %v6019_v12, %v7223_v22 }
0x1c11   :  { %v6071_v32 = vsel %vm6031_vm3, %v6021_v63, %v7226_v58 }
0x1c12   :  { %v6075_v0 = vpack.c.bf16 %v6071_v32, %v6067_v9  ;;  %v6072_v49 = vsel %vm6032_vm6, %v6023_v39, %v7227_v2 }
0x1c13   :  { %v6076_v30 = vpack.c.bf16 %v6072_v49, %v6068_v45 }
0x1c15   :  { %6413 = vmatprep.mubr.bf16.mxu0 %v6076_v30 }
0x1c16   :  { %6414 = vmatmul.mubr.bf16.vlgmr.msra.gmra.mrb[76].mxu0 %v6075_v0 }
0x1c17   :  { %7397 = vmatpush3.bf16.msra.mxu0 %v8230_v5  ;;  %6605 = vmatprep.mubr.bf16.mxu0 %v9986_v41  ;;  %v8239_v41 = vld [vmem:[%s10119_s12 + $0x68] sm:$0xff]  }
0x1c18   :  { %7398 = vmatprep.subr.bf16.mxu0 %v8231_v6 }
0x1c1b   :  { %7399 = vmatpush3.bf16.msra.mxu0 %v8232_v8 }
0x1c1c   :  { %7400 = vmatprep.subr.bf16.mxu0 %v8233_v38 }
0x1c1f   :  { %7401 = vmatpush3.bf16.msra.mxu0 %v8234_v4 }
0x1c20   :  { %7402 = vmatprep.subr.bf16.mxu0 %v8235_v44 }
0x1c23   :  { %7403 = vmatpush3.bf16.msra.mxu0 %v8236_v55 }
0x1c24   :  { %7404 = vmatprep.subr.bf16.mxu0 %v8237_v47 }
0x1c27   :  { %7405 = vmatpush3.bf16.msra.mxu0 %v8238_v36 }
0x1c28   :  { %7406 = vmatprep.subr.bf16.mxu0 %v8239_v41 }
0x1c2b   :  { %7407 = vmatpush3.bf16.msra.mxu0 %v8240_v17 }
0x1c2c   :  { %7408 = vmatprep.subr.bf16.mxu0 %v8241_v37 }
0x1c2f   :  { %7409 = vmatpush3.bf16.msra.mxu0 %v8242_v61 }
0x1c30   :  { %7410 = vmatprep.subr.bf16.mxu0 %v8243_v48 }
0x1c33   :  { %7411 = vmatpush3.bf16.msra.mxu0 %v8244_v50 }
0x1c36   :  { %6606 = vmatmul.mubr.bf16.vlgmr.msra.gmra.mrb[80].mxu0 %v9988_v57 }
0x1ca9   :  { %v7368_v23 = vpop.f32.mrb[72].mxu0 }
0x1caa   :  { %v7369_v24 = vpop.f32.mrb[73].mxu0 }
0x1cab   :  { %v7370_v33 = vadd.f32 %v7369_v24, %v7368_v23  ;;  %v7371_v62 = vpop.f32.mrb[74].mxu0 }
0x1cac   :  { %v7372_v1 = vpop.f32.mrb[75].mxu0 }
0x1cad   :  { %v7373_v7 = vadd.f32 %v7372_v1, %v7371_v62  ;;  %v6375_v35 = vadd.f32 %v7370_v33, %v7228_v19 }
0x1caf   :  { %v6378_v15 = vadd.f32 %v7373_v7, %v7228_v19 }
0x1ce9   :  { %v7390_v10 = vpop.f32.mrb[76].mxu0 }
0x1cea   :  { %v7391_v3 = vpop.f32.mrb[77].mxu0 }
0x1ceb   :  { %v7392_v42 = vadd.f32 %v7391_v3, %v7390_v10  ;;  %v7393_v13 = vpop.f32.mrb[78].mxu0 }
0x1cec   :  { %v7394_v34 = vpop.f32.mrb[79].mxu0 }
0x1ced   :  { %v6416_v16 = vadd.f32 %v7392_v42, %v6375_v35  ;;  %v7395_v56 = vadd.f32 %v7394_v34, %v7393_v13 }
0x1cef   :  { %v6419_v18 = vadd.f32 %v7395_v56, %v6378_v15 }
0x1d09   :  { %v7412_v14 = vpop.f32.mrb[80].mxu0 }
0x1d0a   :  { %v7413_v57 = vpop.f32.mrb[81].mxu0 }
0x1d0b   :  { %v7414_v59 = vadd.f32 %v7413_v57, %v7412_v14  ;;  %v7415_v28 = vpop.f32.mrb[82].mxu0 }
0x1d0c   :  { %v7416_v12 = vpop.f32.mrb[83].mxu0 }
0x1d0d   :  { %v6608_v52 = vadd.f32 %v7414_v59, %v7263_v20  ;;  %v7417_v21 = vadd.f32 %v7416_v12, %v7415_v28 }
0x1d0f   :  { %v6616_v63 = vmin.f32 %v6608_v52, 0.0  ;;  %v6611_v51 = vadd.f32 %v7417_v21, %v7263_v20  ;;  %vm6614_vm7 = vcmp.gt.f32.partialorder %v6608_v52, 0.0 }
0x1d11   :  { %v6618_v26 = vmul.f32 1.442695, %v6616_v63  ;;  %v6617_v39 = vmin.f32 %v6611_v51, 0.0  ;;  %vm6615_vm8 = vcmp.gt.f32.partialorder %v6611_v51, 0.0 }
0x1d13   :  { %8365 = vpow2.f32 %v6618_v26  ;;  %v6620_v54 = vmul.f32 1.442695, %v6617_v39 }
0x1d15   :  { %8367 = vpow2.f32 %v6620_v54 }
0x1d1d   :  { %v8366_v29 = vpop.eup %8365 }
0x1d1e   :  { %v7280_v40 = vadd.f32 -1.0, %v8366_v29 }
0x1d1f   :  { %v8368_v43 = vpop.eup %8367 }
0x1d20   :  { %v6624_v27 = vsel %vm6614_vm7, %v6608_v52, %v7280_v40  ;;  %v7281_v11 = vadd.f32 -1.0, %v8368_v43 }
0x1d21   :  { %v6633_v46 = vmul.f32 %v7282_v60, %v6624_v27 }
0x1d22   :  { %v6625_v25 = vsel %vm6615_vm8, %v6611_v51, %v7281_v11 }
0x1d23   :  { %v6635_v31 = vsel %vm3045_vm12, %v6633_v46, 0.0  ;;  %v6634_v22 = vmul.f32 %v7282_v60, %v6625_v25 }
0x1d24   :  { %6636 = vadd.xlane.f32.xlu0 %v6635_v31 }
0x1d25   :  { %v6638_v53 = vsel %vm3045_vm12, %v6634_v22, 0.0 }
0x1d26   :  { %6639 = vadd.xlane.f32.xlu1 %v6638_v53 }
0x1d27   :  { %8798 = shalt.err (!%p8795_p2)
}
0x1d28   :  { %s8799_s8 = scalar_lea.hbm %s9062_s4, 512 }
0x1d29   :  { %p8800_p3 = scmp.ne.s32.totalorder %s9062_s4, %s8799_s8  ;;  %p8803_p4 = scmp.lt.u32.totalorder %s8799_s8, %s9062_s4 }
0x1d2b   :  { %p8805_p5 = pnand %p8803_p4, %p8800_p3 }
0x1d2d   :  { %8808 = shalt.err (!%p8805_p5)
}
0x1d2e   :  { %s10120_s27 = sld [smem:[#allocation52_spill]]  ;;  %v7283_v58 = vld [vmem:[#allocation4] ss:$0 sm:$0xff]  ;;  %vm6660_vm9 = vcmask 269312   ;;  %s8915_s7 = smov [#allocation36]  }
0x1d2f   :  { %6676 = dma.vmem_to_hbm [thread:$0]  %s6671_s1, 512, %s9062_s4, [#allocation7], %s8897_s19, %s8897_s19, %s8898_s17  }
0x1d30   :  { %s6682_s0 = sshll.u32 %s8915_s7, 4  ;;  %s6683_s0 = int_to_ptr.vmem [resolvable:$true] %s6682_s0 }
0x1d31   :  { %s8809_s4 = scalar_lea.vmem %s6683_s0, 256  ;;  %p8814_p7 = scmp.lt.s32.totalorder %s6683_s0, %s6683_s0 }
0x1d32   :  { %p8810_p6 = scmp.ne.s32.totalorder %s6683_s0, %s8809_s4  ;;  %p8815_p8 = scmp.lt.s32.totalorder %s8809_s4, %s8809_s4 }
0x1d34   :  { %v7261_v45 = vld [vmem:[%s10120_s27] ss:$0 sm:$0xff]  ;;  %v7262_v49 = vld [vmem:[%s10120_s27 + $0x1] ss:$0 sm:$0xff]  ;;  %p8816_p9 = por %p8815_p8, %p8814_p7 }
0x1d35   :  { %v6436_v30 = vadd.f32 %v7261_v45, %v6416_v16  ;;  %v6437_v6 = vadd.f32 %v7262_v49, %v6419_v18 }
0x1d36   :  { %p8817_p10 = pnand %p8816_p9, %p8810_p6 }
0x1db1   :  { %v6637_v2 = vpop.xlane.xlu0 %6636 }
0x1db2   :  { %v6648_v9 = vadd.f32 %v7283_v58, %v6637_v2 }
0x1db3   :  { %v6640_v32 = vpop.xlane.xlu1 %6639 }
0x1db4   :  { %v6649_v0 = vadd.f32 %v7283_v58, %v6640_v32  ;;  %6652 = vrot.lane.b32.xlu0 %v6648_v9, %s8892_s30 }
0x1db6   :  { %6654 = vrot.lane.b32.xlu1 %v6649_v0, %s8892_s30 }
0x1e26   :  { %v6653_v5 = vpop.permute.xlu0 %6652 }
0x1e27   :  { %v6658_v8 = vsel %vm1230_vm4, %v6436_v30, %v6653_v5 }
0x1e28   :  { %v6661_v38 = vsel %vm6660_vm9, %v6658_v8, 0.0  ;;  %v6655_v4 = vpop.permute.xlu1 %6654 }
0x1e29   :  { %6663 = vst [vmem:[#allocation36] sm:$0xff] %v6661_v38  ;;  %v6659_v44 = vsel %vm1230_vm4, %v6437_v6, %v6655_v4 }
0x1e2a   :  { %v6662_v55 = vsel %vm6660_vm9, %v6659_v44, 0.0 }
0x1e2b   :  { %6664 = vst [vmem:[#allocation36 + $0x8] sm:$0xff] %v6662_v55 }
0x1e2c   :  { %8820 = shalt.err (!%p8817_p10)
}
0x1e2d   :  { %s8821_s30 = scalar_lea.hbm %s9067_s5, 256 }
0x1e2e   :  { %p8822_p11 = scmp.ne.s32.totalorder %s9067_s5, %s8821_s30  ;;  %p8825_p12 = scmp.lt.u32.totalorder %s8821_s30, %s9067_s5 }
0x1e30   :  { %p8827_p13 = pnand %p8825_p12, %p8822_p11 }
0x1e32   :  { %8830 = shalt.err (!%p8827_p13)
}
0x1e33   :  { %6688 = dma.vmem_to_hbm [thread:$0]  %s6683_s0, 256, %s9067_s5, [#allocation37], %s8888_s2, %s8888_s2, %s8889_s3  }
0x1e34   :  { %8851 = dma.done.wait [#allocation7], 512  }
0x1e35   :  { %8852 = vsyncadd [#allocation7], 4294966784 }
0x1e36   :  { %8853 = dma.done.wait [#allocation37], 256  }
0x1e37   :  { %8854 = vsyncadd [#allocation37], 4294967040 }
0x1e38   :  { %6695 = vsyncpa [#allocation6], 1 }
0x1e39   :  { %6696 = vsyncpa [#allocation9], 1 }
0x1e3a   :  { %6697 = vsyncpa [#allocation12], 1 }
0x1e3b   :  { %6698 = vsyncpa [#allocation15], 1 }
0x1e3c   :  { %6699 = vsyncpa [#allocation18], 1 }
0x1e3d   :  { %6700 = vsyncpa [#allocation21], 1 }
0x1e3e   :  { %6701 = vsyncpa [#allocation24], 1 }
0x1e3f   :  { %6702 = vsyncpa [#allocation27], 1 }
0x1e40   :  { %6703 = vsyncpa [#allocation30], 1 }
0x1e41   :  { %6704 = vsyncpa [#allocation33], 1 }
0x1e42   :  { %6705 = vsyncpa [#allocation7], 1 }
0x1e43   :  { %6706 = vsyncpa [#allocation37], 1 }

</bundles_post_ra>
